<compile_context>
chip_gen: v6e
topology: v6e:2x2x1
jax: 0.10.0
libtpu: 0.0.40
codegen_flags: <defaults>
</compile_context>

<pallas_src>
import jax
import jax.numpy as jnp
from jax.experimental import pallas as pl
from jax.experimental.pallas import tpu as pltpu


_ROW_STRIDE = 32   # 28 input rows padded to 32 so merged row blocks stay 8-aligned


# ----------------------------- in-kernel helpers --------------------------- #

def _conv3x3_wide_merged(x, w_mat, bias_row):
    """3x3 VALID conv (stride 1) + bias + ReLU as ONE "width-in-N" MXU matmul.

    x:        (R, W*Cin) f32, rows of all BT samples merged (stride 32/sample),
              lane index = wi*Cin + ci
    w_mat:    (3*W*Cin, (W-2)*Cout) bf16 banded weight (host-prepared)
    bias_row: (1, (W-2)*Cout) f32, bias tiled per output-width position
    Returns   (R-2, (W-2)*Cout) f32, lane index = wo*Cout + co.
    """
    r = x.shape[0]
    # LHS K = (kh, wi, ci): lane-axis concat of the 3 kh-shifted row slabs.
    lhs = jnp.concatenate([x[kh:kh + r - 2, :] for kh in range(3)], axis=-1)
    lhs = lhs.astype(jnp.bfloat16)
    acc = jnp.dot(lhs, w_mat, preferred_element_type=jnp.float32)
    return jnp.maximum(acc + bias_row, 0.0)                       # f32 bias + ReLU


def _maxpool3x3_merged(x, c):
    """MaxPool2d((3,3), stride 1, VALID) on lane-dense merged rows.

    x: (R, W*c) f32, lane = w*c + channel.  Returns (R-2, (W-2)*c).
    dh shifts are row slices, dw shifts are lane slices of c lanes.
    """
    r, wc = x.shape
    w = wc // c
    wo = w - 2
    out = None
    for dh in range(3):
        for dw in range(3):
            s = x[dh:dh + r - 2, dw * c:dw * c + wo * c]
            out = s if out is None else jnp.maximum(out, s)
    return out


# ----------------------------- fused kernel -------------------------------- #

def _cnn_fused_kernel(x_ref, w1_ref, b1_ref, w2_ref, b2_ref,
                      wa_ref, mask_ref, seg_ref, sel_ref, bfc_ref, o_ref):
    # x_ref:   (BT*32, 28*Cin) f32 lane-dense, row-merged, row-padded input
    # w1_ref:  (3*28*Cin, 26*8)  bf16     b1_ref: (1, 26*8)  f32
    # w2_ref:  (3*24*8,   22*16) bf16     b2_ref: (1, 22*16) f32
    # wa_ref:  (20*16, 20*ncls)  bf16     mask_ref: (BT*32-8, 20*ncls) f32
    # seg_ref: (BT, BT*32-8) f32          sel_ref: (20*ncls, ncls) f32
    # bfc_ref: (1, ncls) f32              o_ref: (1, BT, ncls) f32
    x = x_ref[...]

    a1 = _conv3x3_wide_merged(x, w1_ref[...], b1_ref[...])     # (BT*32-2, 208)
    p1 = _maxpool3x3_merged(a1, 8)                             # (BT*32-4, 192)
    a2 = _conv3x3_wide_merged(p1, w2_ref[...], b2_ref[...])    # (BT*32-6, 352)
    p2 = _maxpool3x3_merged(a2, 16)                            # (BT*32-8, 320)

    # ----- FC on the MXU -----
    # Contract the (wo, c) lanes of every pooled row against every (h, class)
    # column of the pre-permuted FC weight (single bf16 MXU matmul), zero the
    # rows whose within-sample index != h (this also kills the padded/garbage
    # rows), segment-sum rows per sample, then collapse the 20 per-h partials of
    # each class with a 0/1 selector matmul.
    z = jnp.dot(p2.astype(jnp.bfloat16), wa_ref[...],
                preferred_element_type=jnp.float32)            # (BT*32-8, 20*ncls)
    z = z * mask_ref[...]
    r = jnp.dot(seg_ref[...], z, preferred_element_type=jnp.float32)    # (BT, 20*ncls)
    out = jnp.dot(r, sel_ref[...], preferred_element_type=jnp.float32)  # (BT, ncls)
    o_ref[0] = out + bfc_ref[...]


# ----------------------------- host-side prep ------------------------------ #

def init_params(key, in_channels, num_classes):
    """Deterministic torch-style U(-1/sqrt(fan_in), 1/sqrt(fan_in)) init, kept in
    the original torch layouts (OIHW conv weights, (out,in) FC weight)."""
    ks = jax.random.split(key, 6)

    def uinit(k, shape, fan_in):
        bound = 1.0 / (fan_in ** 0.5)
        return jax.random.uniform(k, shape, jnp.float32, -bound, bound)

    flat = 16 * 20 * 20
    return dict(
        w1=uinit(ks[0], (8, in_channels, 3, 3), in_channels * 9),
        b1=uinit(ks[1], (8,), in_channels * 9),
        w2=uinit(ks[2], (16, 8, 3, 3), 8 * 9),
        b2=uinit(ks[3], (16,), 8 * 9),
        wf=uinit(ks[4], (num_classes, flat), flat),
        bf=uinit(ks[5], (num_classes,), flat),
    )


def _conv_wide_weight(w, w_in):
    """Banded "width-in-N" matmul weight for a 3x3 stride-1 VALID conv.

    w: (Cout, Cin, 3, 3) PyTorch OIHW weight.  Returns the bf16 matrix Wm of
    shape (3*w_in*Cin, (w_in-2)*Cout) with
        Wm[kh*w_in*Cin + wi*Cin + ci, wo*Cout + co] =
            w[co, ci, kh, wi - wo]  if 0 <= wi - wo <= 2 else 0,
    so that for LHS rows built as concat_kh(x[row+kh, :]) (lane = wi*Cin + ci):
        (LHS @ Wm)[row, wo*Cout + co] = Conv2d(x, w)[co, row, wo].
    The zero entries are free MACs; K and N stay well within MXU headroom here.
    """
    cout, cin = w.shape[0], w.shape[1]
    assert w.shape[2:] == (3, 3)
    wo = w_in - 2
    wi_idx = jnp.arange(w_in)[:, None]                  # (w_in, 1)
    o_idx = jnp.arange(wo)[None, :]                     # (1, wo)
    per_kh = []
    for kh in range(3):
        acc = jnp.zeros((w_in, cin, wo, cout), jnp.float32)
        for kw in range(3):
            band = (wi_idx == o_idx + kw).astype(jnp.float32)          # (w_in, wo)
            wt = jnp.transpose(w[:, :, kh, kw]).astype(jnp.float32)    # (cin, cout)
            acc = acc + band[:, None, :, None] * wt[None, :, None, :]
        per_kh.append(acc)
    wm = jnp.stack(per_kh, axis=0)                      # (3, w_in, cin, wo, cout)
    return wm.reshape(3 * w_in * cin, wo * cout).astype(jnp.bfloat16)


def prepare_params(params):
    """One-time host-side layout prep (hoisted out of the forward):
       - conv weights OIHW -> banded "width-in-N" matmul weights, bf16,
       - conv biases tiled to the lane-dense (wo, co) layout,
       - FC weight permuted to rows (wo*16 + c), cols (h*ncls + n) and cast to
         bf16 (the torch NCHW .view() flatten is folded into the permutation),
       - 0/1 selector for the per-class collapse of the FC tail."""
    w1, w2, wf = params["w1"], params["w2"], params["wf"]
    c2 = w2.shape[0]                                    # 16
    ncls = wf.shape[0]
    ph = pw = 20                                        # spatial after the 2nd pool

    w1m = _conv_wide_weight(w1, w_in=28)                # (3*28*Cin, 26*8)
    w2m = _conv_wide_weight(w2, w_in=24)                # (3*24*8,   22*16)

    # wa[wo*16 + c, h*ncls + n] = wf[n, c*400 + h*20 + wo]
    wf4 = wf.reshape(ncls, c2, ph, pw)                  # [n, c, h, wo]
    wa = (jnp.transpose(wf4, (3, 1, 2, 0))              # [wo, c, h, n]
             .reshape(pw * c2, ph * ncls).astype(jnp.bfloat16))
    # sel[h*ncls + m, n] = (m == n)
    sel = jnp.tile(jnp.eye(ncls, dtype=jnp.float32), (ph, 1))

    return dict(
        w1m=w1m,
        b1r=jnp.tile(params["b1"].astype(jnp.float32), 26)[None, :],
        w2m=w2m,
        b2r=jnp.tile(params["b2"].astype(jnp.float32), 22)[None, :],
        wa=wa, sel=sel,
        bfc=params["bf"].astype(jnp.float32)[None, :],
    )


def _choose_block_batch(b, max_bt=8):
    """Largest divisor of b (capped) that keeps >=2 grid steps when b >= 2, so
    the 'parallel' batch axis can still shard across both v7x TensorCores."""
    best = 1
    for cand in range(1, min(b, max_bt) + 1):
        if b % cand == 0 and (b // cand >= 2 or b == 1):
            best = cand
    return best


def cnn_forward(prepped, x_nchw, block_batch=None):
    """Fused forward pass.  x_nchw: (B, Cin, 28, 28) float32 (PyTorch layout)."""
    x = jnp.transpose(x_nchw, (0, 2, 3, 1)).astype(jnp.float32)       # NHWC
    b, h, w, cin = x.shape
    assert (h, w) == (28, 28), "fc1 size (16*20*20) implies 28x28 inputs"
    ncls = prepped["bfc"].shape[-1]
    bt = block_batch if block_batch is not None else _choose_block_batch(b)
    assert b % bt == 0

    # Lane-dense, row-merged, row-padded input: (B*32, 28*Cin), lane = wi*Cin+ci.
    xd = x.reshape(b, h, w * cin)
    xp = jnp.pad(xd, ((0, 0), (0, _ROW_STRIDE - h), (0, 0)))
    xm = xp.reshape(b * _ROW_STRIDE, w * cin)

    # Small per-launch 0/1 constants that depend on the batch tile BT.
    ph = 20
    rows = bt * _ROW_STRIDE - 8                       # pooled-2 rows per grid step
    row_in_sample = jnp.arange(rows) % _ROW_STRIDE
    col_h = jnp.arange(ph * ncls) // ncls
    mask = (row_in_sample[:, None] == col_h[None, :]).astype(jnp.float32)
    seg = (jnp.arange(bt)[:, None] ==
           (jnp.arange(rows)[None, :] // _ROW_STRIDE)).astype(jnp.float32)

    out3 = pl.pallas_call(
        _cnn_fused_kernel,
        out_shape=jax.ShapeDtypeStruct((b // bt, bt, ncls), jnp.float32),
        grid_spec=pl.GridSpec(
            grid=(b // bt,),
            in_specs=[
                pl.BlockSpec((bt * _ROW_STRIDE, w * cin), lambda g: (g, 0)),
                pl.BlockSpec(prepped["w1m"].shape, lambda g: (0, 0)),
                pl.BlockSpec(prepped["b1r"].shape, lambda g: (0, 0)),
                pl.BlockSpec(prepped["w2m"].shape, lambda g: (0, 0)),
                pl.BlockSpec(prepped["b2r"].shape, lambda g: (0, 0)),
                pl.BlockSpec(prepped["wa"].shape, lambda g: (0, 0)),
                pl.BlockSpec(mask.shape, lambda g: (0, 0)),
                pl.BlockSpec(seg.shape, lambda g: (0, 0)),
                pl.BlockSpec(prepped["sel"].shape, lambda g: (0, 0)),
                pl.BlockSpec(prepped["bfc"].shape, lambda g: (0, 0)),
            ],
            out_specs=pl.BlockSpec((1, bt, ncls), lambda g: (g, 0, 0)),
        ),
        compiler_params=pltpu.CompilerParams(
            dimension_semantics=("parallel",),   # batch tiles shard across TCs on v7x
        ),
    )(xm, prepped["w1m"], prepped["b1r"], prepped["w2m"], prepped["b2r"],
      prepped["wa"], mask, seg, prepped["sel"], prepped["bfc"])
    return out3.reshape(b, ncls)


# ----------------------------- pure-JAX reference --------------------------- #

def cnn_reference(params, x_nchw):
    """f32 reference matching the PyTorch module exactly (for tolerance check)."""
    def conv_relu(x, w, b):
        y = jax.lax.conv_general_dilated(
            x, w, window_strides=(1, 1), padding="VALID",
            dimension_numbers=("NCHW", "OIHW", "NCHW"))
        return jax.nn.relu(y + b[None, :, None, None])

    def maxpool(x):
        return jax.lax.reduce_window(
            x, -jnp.inf, jax.lax.max, (1, 1, 3, 3), (1, 1, 1, 1), "VALID")

    h = maxpool(conv_relu(x_nchw.astype(jnp.float32), params["w1"], params["b1"]))
    h = maxpool(conv_relu(h, params["w2"], params["b2"]))
    h = h.reshape(h.shape[0], -1)                      # NCHW flatten, like .view()
    return h @ params["wf"].T + params["bf"]


if __name__ == "__main__":
    key = jax.random.PRNGKey(0)
    pkey, xkey = jax.random.split(key)

    batch, in_channels, num_classes = 4, 4, 10         # 28x28 input implied by fc1
    params = init_params(pkey, in_channels, num_classes)
    prepped = prepare_params(params)                   # one-time layout prep
    x = jax.random.normal(xkey, (batch, in_channels, 28, 28), jnp.float32)

    fwd = jax.jit(cnn_forward)
    out = jax.block_until_ready(fwd(prepped, x))       # BT=2 -> grid of 2 steps

    assert out.shape == (batch, num_classes), out.shape
    assert out.dtype == jnp.float32
    assert bool(jnp.all(jnp.isfinite(out)))

    # bf16 MXU operands (f32 accumulation) vs. the f32 reference: ~1e-2 relative.
    ref = jax.jit(cnn_reference)(params, x)
    rel_err = float(jnp.max(jnp.abs(out - ref)) / (jnp.max(jnp.abs(ref)) + 1e-6))
    assert rel_err < 5e-2, f"mismatch vs f32 reference: rel_err={rel_err}"
    print("KERNEL_OK")
</pallas_src>

<mosaic_0001>
module attributes {stable_mosaic.version = 11 : i64} {
  func.func @_cnn_fused_kernel(%arg0: i32, %arg1: memref<64x112xf32, #tpu.memory_space<vmem>>, %arg2: memref<336x208xbf16, #tpu.memory_space<vmem>>, %arg3: memref<1x208xf32, #tpu.memory_space<vmem>>, %arg4: memref<576x352xbf16, #tpu.memory_space<vmem>>, %arg5: memref<1x352xf32, #tpu.memory_space<vmem>>, %arg6: memref<320x200xbf16, #tpu.memory_space<vmem>>, %arg7: memref<56x200xf32, #tpu.memory_space<vmem>>, %arg8: memref<2x56xf32, #tpu.memory_space<vmem>>, %arg9: memref<200x10xf32, #tpu.memory_space<vmem>>, %arg10: memref<1x10xf32, #tpu.memory_space<vmem>>, %arg11: memref<1x2x10xf32, #tpu.memory_space<vmem>>) attributes {dimension_semantics = [#tpu.dimension_semantics<parallel>], iteration_bounds = array<i64: 2>, scalar_prefetch = 0 : i64, scratch_operands = 0 : i64, tpu.core_type = #tpu.core_type<tc>, window_params = [{transform_indices = @transform_0, window_bounds = array<i64: 64, 112>}, {pipeline_mode = #tpu.pipeline_mode<synchronous>, transform_indices = @transform_1, window_bounds = array<i64: 336, 208>}, {pipeline_mode = #tpu.pipeline_mode<synchronous>, transform_indices = @transform_2, window_bounds = array<i64: 1, 208>}, {pipeline_mode = #tpu.pipeline_mode<synchronous>, transform_indices = @transform_3, window_bounds = array<i64: 576, 352>}, {pipeline_mode = #tpu.pipeline_mode<synchronous>, transform_indices = @transform_4, window_bounds = array<i64: 1, 352>}, {pipeline_mode = #tpu.pipeline_mode<synchronous>, transform_indices = @transform_5, window_bounds = array<i64: 320, 200>}, {pipeline_mode = #tpu.pipeline_mode<synchronous>, transform_indices = @transform_6, window_bounds = array<i64: 56, 200>}, {pipeline_mode = #tpu.pipeline_mode<synchronous>, transform_indices = @transform_7, window_bounds = array<i64: 2, 56>}, {pipeline_mode = #tpu.pipeline_mode<synchronous>, transform_indices = @transform_8, window_bounds = array<i64: 200, 10>}, {pipeline_mode = #tpu.pipeline_mode<synchronous>, transform_indices = @transform_9, window_bounds = array<i64: 1, 10>}, {transform_indices = @transform_10, window_bounds = array<i64: 1, 2, 10>}]} {
    %c0 = arith.constant 0 : index
    %c0_0 = arith.constant 0 : index
    %0 = vector.load %arg1[%c0, %c0_0] : memref<64x112xf32, #tpu.memory_space<vmem>>, vector<64x112xf32>
    %c0_1 = arith.constant 0 : index
    %c0_2 = arith.constant 0 : index
    %1 = vector.load %arg2[%c0_1, %c0_2] : memref<336x208xbf16, #tpu.memory_space<vmem>>, vector<336x208xbf16>
    %c0_3 = arith.constant 0 : index
    %c0_4 = arith.constant 0 : index
    %2 = vector.load %arg3[%c0_3, %c0_4] : memref<1x208xf32, #tpu.memory_space<vmem>>, vector<1x208xf32>
    %3 = vector.extract_strided_slice %0 {offsets = [0, 0], sizes = [62, 112], strides = [1, 1]} : vector<64x112xf32> to vector<62x112xf32>
    %4 = vector.extract_strided_slice %0 {offsets = [1, 0], sizes = [62, 112], strides = [1, 1]} : vector<64x112xf32> to vector<62x112xf32>
    %5 = vector.extract_strided_slice %0 {offsets = [2, 0], sizes = [62, 112], strides = [1, 1]} : vector<64x112xf32> to vector<62x112xf32>
    %6 = tpu.concatenate %3, %4, %5 in 1 : vector<62x112xf32>, vector<62x112xf32>, vector<62x112xf32> -> vector<62x336xf32>
    %7 = arith.truncf %6 : vector<62x336xf32> to vector<62x336xbf16>
    %cst = arith.constant dense<0.000000e+00> : vector<62x208xf32>
    %8 = tpu.matmul %7, %1, %cst {dimension_numbers = #tpu.dot_dimension_numbers<[1], [0], [0], [1], [0, 0, 1, 1], [], []>} : vector<62x336xbf16>, vector<336x208xbf16>, vector<62x208xf32> -> vector<62x208xf32>
    %9 = vector.broadcast %2 : vector<1x208xf32> to vector<62x208xf32>
    %10 = arith.addf %8, %9 : vector<62x208xf32>
    %cst_5 = arith.constant 0.000000e+00 : f32
    %11 = vector.broadcast %cst_5 : f32 to vector<62x208xf32>
    %12 = arith.maximumf %10, %11 : vector<62x208xf32>
    %13 = vector.extract_strided_slice %12 {offsets = [0, 0], sizes = [60, 192], strides = [1, 1]} : vector<62x208xf32> to vector<60x192xf32>
    %14 = vector.extract_strided_slice %12 {offsets = [0, 8], sizes = [60, 192], strides = [1, 1]} : vector<62x208xf32> to vector<60x192xf32>
    %15 = arith.maximumf %13, %14 : vector<60x192xf32>
    %16 = vector.extract_strided_slice %12 {offsets = [0, 16], sizes = [60, 192], strides = [1, 1]} : vector<62x208xf32> to vector<60x192xf32>
    %17 = arith.maximumf %15, %16 : vector<60x192xf32>
    %18 = vector.extract_strided_slice %12 {offsets = [1, 0], sizes = [60, 192], strides = [1, 1]} : vector<62x208xf32> to vector<60x192xf32>
    %19 = arith.maximumf %17, %18 : vector<60x192xf32>
    %20 = vector.extract_strided_slice %12 {offsets = [1, 8], sizes = [60, 192], strides = [1, 1]} : vector<62x208xf32> to vector<60x192xf32>
    %21 = arith.maximumf %19, %20 : vector<60x192xf32>
    %22 = vector.extract_strided_slice %12 {offsets = [1, 16], sizes = [60, 192], strides = [1, 1]} : vector<62x208xf32> to vector<60x192xf32>
    %23 = arith.maximumf %21, %22 : vector<60x192xf32>
    %24 = vector.extract_strided_slice %12 {offsets = [2, 0], sizes = [60, 192], strides = [1, 1]} : vector<62x208xf32> to vector<60x192xf32>
    %25 = arith.maximumf %23, %24 : vector<60x192xf32>
    %26 = vector.extract_strided_slice %12 {offsets = [2, 8], sizes = [60, 192], strides = [1, 1]} : vector<62x208xf32> to vector<60x192xf32>
    %27 = arith.maximumf %25, %26 : vector<60x192xf32>
    %28 = vector.extract_strided_slice %12 {offsets = [2, 16], sizes = [60, 192], strides = [1, 1]} : vector<62x208xf32> to vector<60x192xf32>
    %29 = arith.maximumf %27, %28 : vector<60x192xf32>
    %c0_6 = arith.constant 0 : index
    %c0_7 = arith.constant 0 : index
    %30 = vector.load %arg4[%c0_6, %c0_7] : memref<576x352xbf16, #tpu.memory_space<vmem>>, vector<576x352xbf16>
    %c0_8 = arith.constant 0 : index
    %c0_9 = arith.constant 0 : index
    %31 = vector.load %arg5[%c0_8, %c0_9] : memref<1x352xf32, #tpu.memory_space<vmem>>, vector<1x352xf32>
    %32 = vector.extract_strided_slice %29 {offsets = [0, 0], sizes = [58, 192], strides = [1, 1]} : vector<60x192xf32> to vector<58x192xf32>
    %33 = vector.extract_strided_slice %29 {offsets = [1, 0], sizes = [58, 192], strides = [1, 1]} : vector<60x192xf32> to vector<58x192xf32>
    %34 = vector.extract_strided_slice %29 {offsets = [2, 0], sizes = [58, 192], strides = [1, 1]} : vector<60x192xf32> to vector<58x192xf32>
    %35 = tpu.concatenate %32, %33, %34 in 1 : vector<58x192xf32>, vector<58x192xf32>, vector<58x192xf32> -> vector<58x576xf32>
    %36 = arith.truncf %35 : vector<58x576xf32> to vector<58x576xbf16>
    %cst_10 = arith.constant dense<0.000000e+00> : vector<58x352xf32>
    %37 = tpu.matmul %36, %30, %cst_10 {dimension_numbers = #tpu.dot_dimension_numbers<[1], [0], [0], [1], [0, 0, 1, 1], [], []>} : vector<58x576xbf16>, vector<576x352xbf16>, vector<58x352xf32> -> vector<58x352xf32>
    %38 = vector.broadcast %31 : vector<1x352xf32> to vector<58x352xf32>
    %39 = arith.addf %37, %38 : vector<58x352xf32>
    %cst_11 = arith.constant 0.000000e+00 : f32
    %40 = vector.broadcast %cst_11 : f32 to vector<58x352xf32>
    %41 = arith.maximumf %39, %40 : vector<58x352xf32>
    %42 = vector.extract_strided_slice %41 {offsets = [0, 0], sizes = [56, 320], strides = [1, 1]} : vector<58x352xf32> to vector<56x320xf32>
    %43 = vector.extract_strided_slice %41 {offsets = [0, 16], sizes = [56, 320], strides = [1, 1]} : vector<58x352xf32> to vector<56x320xf32>
    %44 = arith.maximumf %42, %43 : vector<56x320xf32>
    %45 = vector.extract_strided_slice %41 {offsets = [0, 32], sizes = [56, 320], strides = [1, 1]} : vector<58x352xf32> to vector<56x320xf32>
    %46 = arith.maximumf %44, %45 : vector<56x320xf32>
    %47 = vector.extract_strided_slice %41 {offsets = [1, 0], sizes = [56, 320], strides = [1, 1]} : vector<58x352xf32> to vector<56x320xf32>
    %48 = arith.maximumf %46, %47 : vector<56x320xf32>
    %49 = vector.extract_strided_slice %41 {offsets = [1, 16], sizes = [56, 320], strides = [1, 1]} : vector<58x352xf32> to vector<56x320xf32>
    %50 = arith.maximumf %48, %49 : vector<56x320xf32>
    %51 = vector.extract_strided_slice %41 {offsets = [1, 32], sizes = [56, 320], strides = [1, 1]} : vector<58x352xf32> to vector<56x320xf32>
    %52 = arith.maximumf %50, %51 : vector<56x320xf32>
    %53 = vector.extract_strided_slice %41 {offsets = [2, 0], sizes = [56, 320], strides = [1, 1]} : vector<58x352xf32> to vector<56x320xf32>
    %54 = arith.maximumf %52, %53 : vector<56x320xf32>
    %55 = vector.extract_strided_slice %41 {offsets = [2, 16], sizes = [56, 320], strides = [1, 1]} : vector<58x352xf32> to vector<56x320xf32>
    %56 = arith.maximumf %54, %55 : vector<56x320xf32>
    %57 = vector.extract_strided_slice %41 {offsets = [2, 32], sizes = [56, 320], strides = [1, 1]} : vector<58x352xf32> to vector<56x320xf32>
    %58 = arith.maximumf %56, %57 : vector<56x320xf32>
    %59 = arith.truncf %58 : vector<56x320xf32> to vector<56x320xbf16>
    %c0_12 = arith.constant 0 : index
    %c0_13 = arith.constant 0 : index
    %60 = vector.load %arg6[%c0_12, %c0_13] : memref<320x200xbf16, #tpu.memory_space<vmem>>, vector<320x200xbf16>
    %cst_14 = arith.constant dense<0.000000e+00> : vector<56x200xf32>
    %61 = tpu.matmul %59, %60, %cst_14 {dimension_numbers = #tpu.dot_dimension_numbers<[1], [0], [0], [1], [0, 0, 1, 1], [], []>} : vector<56x320xbf16>, vector<320x200xbf16>, vector<56x200xf32> -> vector<56x200xf32>
    %c0_15 = arith.constant 0 : index
    %c0_16 = arith.constant 0 : index
    %62 = vector.load %arg7[%c0_15, %c0_16] : memref<56x200xf32, #tpu.memory_space<vmem>>, vector<56x200xf32>
    %63 = arith.mulf %61, %62 : vector<56x200xf32>
    %c0_17 = arith.constant 0 : index
    %c0_18 = arith.constant 0 : index
    %64 = vector.load %arg8[%c0_17, %c0_18] : memref<2x56xf32, #tpu.memory_space<vmem>>, vector<2x56xf32>
    %cst_19 = arith.constant dense<0.000000e+00> : vector<2x200xf32>
    %65 = tpu.matmul %64, %63, %cst_19 {dimension_numbers = #tpu.dot_dimension_numbers<[1], [0], [0], [1], [0, 0, 1, 1], [], []>} : vector<2x56xf32>, vector<56x200xf32>, vector<2x200xf32> -> vector<2x200xf32>
    %c0_20 = arith.constant 0 : index
    %c0_21 = arith.constant 0 : index
    %66 = vector.load %arg9[%c0_20, %c0_21] : memref<200x10xf32, #tpu.memory_space<vmem>>, vector<200x10xf32>
    %cst_22 = arith.constant dense<0.000000e+00> : vector<2x10xf32>
    %67 = tpu.matmul %65, %66, %cst_22 {dimension_numbers = #tpu.dot_dimension_numbers<[1], [0], [0], [1], [0, 0, 1, 1], [], []>} : vector<2x200xf32>, vector<200x10xf32>, vector<2x10xf32> -> vector<2x10xf32>
    %c0_23 = arith.constant 0 : index
    %c0_24 = arith.constant 0 : index
    %68 = vector.load %arg10[%c0_23, %c0_24] : memref<1x10xf32, #tpu.memory_space<vmem>>, vector<1x10xf32>
    %69 = vector.broadcast %68 : vector<1x10xf32> to vector<2x10xf32>
    %70 = arith.addf %67, %69 : vector<2x10xf32>
    %c0_25 = arith.constant 0 : index
    %c0_26 = arith.constant 0 : index
    %c0_27 = arith.constant 0 : index
    %71 = vector.load %arg11[%c0_25, %c0_26, %c0_27] : memref<1x2x10xf32, #tpu.memory_space<vmem>>, vector<1x2x10xf32>
    %72 = vector.shape_cast %71 : vector<1x2x10xf32> to vector<2x10xf32>
    %73 = vector.shape_cast %70 : vector<2x10xf32> to vector<1x2x10xf32>
    tpu.vector_store %arg11[%c0_25, %c0_26, %c0_27], %73 {strides = array<i32>} : memref<1x2x10xf32, #tpu.memory_space<vmem>>, vector<1x2x10xf32>,
    return
  }
  func.func @transform_0(%arg0: i32) -> (i32, i32) {
    %c0_i32 = arith.constant 0 : i32
    %c0_i32_0 = arith.constant 0 : i32
    return %arg0, %c0_i32 : i32, i32
  }
  func.func @transform_1(%arg0: i32) -> (i32, i32) {
    %c0_i32 = arith.constant 0 : i32
    %c0_i32_0 = arith.constant 0 : i32
    %c0_i32_1 = arith.constant 0 : i32
    return %c0_i32, %c0_i32_0 : i32, i32
  }
  func.func @transform_2(%arg0: i32) -> (i32, i32) {
    %c0_i32 = arith.constant 0 : i32
    %c0_i32_0 = arith.constant 0 : i32
    %c0_i32_1 = arith.constant 0 : i32
    return %c0_i32, %c0_i32_0 : i32, i32
  }
  func.func @transform_3(%arg0: i32) -> (i32, i32) {
    %c0_i32 = arith.constant 0 : i32
    %c0_i32_0 = arith.constant 0 : i32
    %c0_i32_1 = arith.constant 0 : i32
    return %c0_i32, %c0_i32_0 : i32, i32
  }
  func.func @transform_4(%arg0: i32) -> (i32, i32) {
    %c0_i32 = arith.constant 0 : i32
    %c0_i32_0 = arith.constant 0 : i32
    %c0_i32_1 = arith.constant 0 : i32
    return %c0_i32, %c0_i32_0 : i32, i32
  }
  func.func @transform_5(%arg0: i32) -> (i32, i32) {
    %c0_i32 = arith.constant 0 : i32
    %c0_i32_0 = arith.constant 0 : i32
    %c0_i32_1 = arith.constant 0 : i32
    return %c0_i32, %c0_i32_0 : i32, i32
  }
  func.func @transform_6(%arg0: i32) -> (i32, i32) {
    %c0_i32 = arith.constant 0 : i32
    %c0_i32_0 = arith.constant 0 : i32
    %c0_i32_1 = arith.constant 0 : i32
    return %c0_i32, %c0_i32_0 : i32, i32
  }
  func.func @transform_7(%arg0: i32) -> (i32, i32) {
    %c0_i32 = arith.constant 0 : i32
    %c0_i32_0 = arith.constant 0 : i32
    %c0_i32_1 = arith.constant 0 : i32
    return %c0_i32, %c0_i32_0 : i32, i32
  }
  func.func @transform_8(%arg0: i32) -> (i32, i32) {
    %c0_i32 = arith.constant 0 : i32
    %c0_i32_0 = arith.constant 0 : i32
    %c0_i32_1 = arith.constant 0 : i32
    return %c0_i32, %c0_i32_0 : i32, i32
  }
  func.func @transform_9(%arg0: i32) -> (i32, i32) {
    %c0_i32 = arith.constant 0 : i32
    %c0_i32_0 = arith.constant 0 : i32
    %c0_i32_1 = arith.constant 0 : i32
    return %c0_i32, %c0_i32_0 : i32, i32
  }
  func.func @transform_10(%arg0: i32) -> (i32, i32, i32) {
    %c0_i32 = arith.constant 0 : i32
    %c0_i32_0 = arith.constant 0 : i32
    %c0_i32_1 = arith.constant 0 : i32
    return %arg0, %c0_i32, %c0_i32_0 : i32, i32, i32
  }
}

</mosaic_0001>

<bundles_post_ra>
// kernel: cnn_forward.1
= control target key start
LH: loop header
LB: loop body
LE: loop exit
PB: predicated region body
PF: predicated region fallthrough
CT: control target
= control target key end

     0   :  { %s8456_s0 = inlined_call_operand.vmem [shape: f32[128,112], index: 0, kind: input, shape index: {}]   ;;  %s8457_s1 = inlined_call_operand.vmem [shape: bf16[336,208], index: 1, kind: input, shape index: {}]   ;;  %s8458_s2 = inlined_call_operand.vmem [shape: f32[1,208], index: 2, kind: input, shape index: {}]   ;;  %s8459_s3 = inlined_call_operand.vmem [shape: bf16[576,352], index: 3, kind: input, shape index: {}]   ;;  %s8460_s4 = inlined_call_operand.vmem [shape: f32[1,352], index: 4, kind: input, shape index: {}]   ;;  %s8461_s5 = inlined_call_operand.vmem [shape: bf16[320,200], index: 5, kind: input, shape index: {}]   ;;  %s8462_s6 = inlined_call_operand.vmem [shape: f32[56,200], index: 6, kind: input, shape index: {}]   ;;  %s8463_s7 = inlined_call_operand.vmem [shape: f32[2,56], index: 7, kind: input, shape index: {}]   ;;  %s8464_s8 = inlined_call_operand.vmem [shape: f32[200,10], index: 8, kind: input, shape index: {}]   ;;  %s8465_s9 = inlined_call_operand.vmem [shape: f32[1,10], index: 9, kind: input, shape index: {}]   ;;  %s8466_s10 = inlined_call_operand.hbm [shape: f32[2,2,10], index: 10, kind: output, shape index: {}]  }
   0x1   :  { %8553 = sst [smem:[#allocation47_spill]] %s8456_s0 }
   0x2   :  { %15 = vsyncpa [#allocation3], 0 }
   0x3   :  { %17 = vsyncpa [#allocation3 + $0x1], 0  ;;  %s5730_s13 = smov 0   ;;  %s5732_s14 = smov 0  }
   0x4   :  { %s5734_s15 = smov 0   ;;  %s5736_s16 = smov 0  }
   0x5 LB: > { %s5751_s17 = sadd.s32 4294967295, %s5666_s16   ;;  %s4340_s18 = sadd.s32 4294967294, %s5666_s16   ;;  %s5666_s16 = sphi %s5736_s16, %s8753_s16   ;;  %s5662_s15 = sphi %s5734_s15, %s8752_s15   ;;  %s5658_s14 = sphi %s5732_s14, %s8751_s14   ;;  %s5654_s13 = sphi %s5730_s13, %s8750_s13  }
   0x6   : > { %s5755_s19 = sadd.s32 1, %s5666_s16   ;;  %s245_s20 = sadd.s32 1, %s5662_s15 }
   0x7   : > { %s242_s21 = ssub.s32 %s5666_s16, %s5755_s19  ;;  %p255_p0 = scmp.ne.s32.totalorder %s5662_s15, %s5658_s14 }
   0x8   : > { %p243_p1 = scmp.eq.s32.totalorder %s242_s21, 0  ;;  %p256_p2 = scmp.eq.s32.totalorder %s5751_s17, 1 }
   0x9   : > { %p261_p3 = scmp.ne.s32.totalorder %s5658_s14, %s5654_s13  ;;  %p262_p4 = scmp.eq.s32.totalorder %s4340_s18, 1 }
   0xa   : > { %s5766_s22 = scalar_select %p243_p1, %s5662_s15, %s245_s20  }
   0xb   : > { %p5768_p5 = por %p256_p2, %p255_p0  ;;  %p5772_p6 = por %p262_p4, %p261_p3 }
   0xc   : > { %p4343_p7 = scmp.ge.s32.totalorder %s5666_s16, 1  ;;  %p316_p8 = scmp.lt.s32.totalorder %s5666_s16, 3 }
   0xe   : > { %p317_p9 = pnand %p4343_p7, %p316_p8 }
  0x10   : > { %320 = sbr.rel (%p317_p9) target bundleno = 1845 (0x735), region = 60 }
  0x15   : > { %s4345_s25 = sshll.u32 %s5751_s17, 3  ;;  %v5339_v0 = vld [vmem:[%s8457_s1 + $0x74] ss:$8 sps:$4 sm:$0xff]   ;;  %v5341_v1 = vld [vmem:[%s8457_s1 + $0x70] ss:$8 sps:$4 sm:$0xff]   ;;  %s8556_s0 = sld [smem:[#allocation47_spill]] }
  0x16   : > { %p355_p10 = scmp.lt.s32.totalorder %s4345_s25, 15  ;;  %v5342_v2 = vld [vmem:[%s8457_s1 + $0x64] ss:$8 sps:$4 sm:$0xff]   ;;  %764 = vmatprep.subr.bf16.mxu0 %v5339_v0  ;;  %v5344_v3 = vld [vmem:[%s8457_s1 + $0x60] ss:$8 sps:$4 sm:$0xff]   ;;  %vm420_vm0 = vcmask 1046528  }
  0x17   : > { %765 = vmatpush1.bf16.msra.mxu0 %v5341_v1  ;;  %v5345_v4 = vld [vmem:[%s8457_s1 + $0x54] ss:$8 sps:$4 sm:$0xff]   ;;  %v5347_v5 = vld [vmem:[%s8457_s1 + $0x50] ss:$8 sps:$4 sm:$0xff]   ;;  %vm460_vm1 = vcmask 1045504   ;;  %v8471_v9 = vmov 0  }
  0x18   : > { %s8755_s25 = smov (!%p355_p10, %s4345_s25), 15  ;;  %766 = vmatprep.subr.bf16.mxu0 %v5342_v2  ;;  %869 = vmatprep.mubr.bf16.mxu1 %v8471_v9  ;;  %v5348_v20 = vld [vmem:[%s8457_s1 + $0x44] ss:$8 sps:$4 sm:$0xff]   ;;  %v5350_v35 = vld [vmem:[%s8457_s1 + $0x40] ss:$8 sps:$4 sm:$0xff]   ;;  %s5669_s21 = smov 112  }
  0x19   : > { %s4346_s20 = sshll.u32 %s8755_s25, 3  ;;  %v5351_v40 = vld [vmem:[%s8457_s1 + $0x34] ss:$8 sps:$4 sm:$0xff]   ;;  %v5353_v50 = vld [vmem:[%s8457_s1 + $0x30] ss:$8 sps:$4 sm:$0xff]   ;;  %s8467_s30 = smov 96  }
  0x1a   : > { %v5354_v52 = vld [vmem:[%s8457_s1 + $0x24] ss:$8 sps:$4 sm:$0xff]   ;;  %v5356_v55 = vld [vmem:[%s8457_s1 + $0x20] ss:$8 sps:$4 sm:$0xff]   ;;  %v5357_v60 = vld [vmem:[%s8457_s1 + $0x14] ss:$8 sps:$4 sm:$0xff]  }
  0x1b   : > { %s5797_s29 = scalar_lea.vmem %s8556_s0, %s4346_s20  ;;  %767 = vmatpush1.bf16.msra.mxu0 %v5344_v3  ;;  %v5372_v57 = vld [vmem:[%s8457_s1 + $0x144] ss:$8 sps:$4 sm:$0xff]   ;;  %v5374_v58 = vld [vmem:[%s8457_s1 + $0x140] ss:$8 sps:$4 sm:$0xff]   ;;  %v5378_v61 = vld [vmem:[%s8457_s1 + $0x134] ss:$8 sps:$4 sm:$0xff]  }
  0x1c   : > { %v5803_v6 = vld [vmem:[%s5797_s29] sm:$0xff]  ;;  %v5806_v7 = vld [vmem:[%s5797_s29 + $0x8] sm:$0xff]  ;;  %v5809_v8 = vld [vmem:[%s5797_s29 + $0x10] sm:$0xff]  ;;  %768 = vmatprep.subr.bf16.mxu0 %v5345_v4  ;;  %843 = vmatprep.subr.bf16.mxu1 %v5372_v57  ;;  %vm500_vm2 = vcmask 916480   ;;  %vm509_vm3 = vcmask 785408   ;;  %vm751_vm4 = vcmask 654336  }
  0x1d   : > { %v421_v10 = vrot.slane %v5803_v6, 1  ;;  %v422_v11 = vrot.slane %v5806_v7, 1  ;;  %v424_v12 = vrot.slane %v5809_v8, 1  ;;  %v461_v13 = vrot.slane %v5803_v6, 2  ;;  %v5817_v14 = vld [vmem:[%s5797_s29 + $0x18] sm:$0xff]  ;;  %v5820_v15 = vld [vmem:[%s5797_s29 + $0x20] sm:$0xff]  ;;  %844 = vmatpush1.bf16.msra.mxu1 %v5374_v58 }
  0x1e   : > { %v462_v16 = vrot.slane %v5806_v7, 2  ;;  %v464_v17 = vrot.slane %v5809_v8, 2  ;;  %v426_v18 = vrot.slane %v5817_v14, 1  ;;  %v428_v19 = vrot.slane %v5820_v15, 1  ;;  %v5834_v25 = vld [vmem:[%s5797_s29 + $0x28] sm:$0xff]  ;;  %v5837_v26 = vld [vmem:[%s5797_s29 + $0x30] sm:$0xff]  ;;  %845 = vmatprep.subr.bf16.mxu1 %v5378_v61 }
  0x1f   : > { %v423_v21 = vsel %vm420_vm0, %v421_v10, %v422_v11  ;;  %v425_v22 = vsel %vm420_vm0, %v422_v11, %v424_v12  ;;  %v466_v23 = vrot.slane %v5817_v14, 2  ;;  %v468_v24 = vrot.slane %v5820_v15, 2  ;;  %v5843_v31 = vld [vmem:[%s5797_s29 + $0x38] sm:$0xff]  ;;  %769 = vmatpush1.bf16.msra.mxu0 %v5347_v5  ;;  %v5360_v1 = vld [vmem:[%s8457_s1 + $0x4] ss:$8 sps:$4 sm:$0xff]   ;;  %s5671_s29 = smov 120  }
  0x20   : > { %v4709_v27 = vpack.i.bf16 %v425_v22, %v423_v21  ;;  %v463_v28 = vsel %vm460_vm1, %v461_v13, %v462_v16  ;;  %v465_v29 = vsel %vm460_vm1, %v462_v16, %v464_v17  ;;  %v427_v30 = vsel %vm420_vm0, %v424_v12, %v426_v18  ;;  %770 = vmatprep.subr.bf16.mxu0 %v5348_v20  ;;  %v5380_v63 = vld [vmem:[%s8457_s1 + $0x130] ss:$8 sps:$4 sm:$0xff]   ;;  %v5384_v2 = vld [vmem:[%s8457_s1 + $0x124] ss:$8 sps:$4 sm:$0xff]   ;;  %v5386_v3 = vld [vmem:[%s8457_s1 + $0x120] ss:$8 sps:$4 sm:$0xff]  }
  0x21   : > { %v429_v32 = vsel %vm420_vm0, %v426_v18, %v428_v19  ;;  %v467_v33 = vsel %vm460_vm1, %v464_v17, %v466_v23  ;;  %v469_v34 = vsel %vm460_vm1, %v466_v23, %v468_v24  ;;  %v4714_v36 = vpack.i.bf16 %v465_v29, %v463_v28  ;;  %v5359_v0 = vld [vmem:[%s8457_s1 + $0x10] ss:$8 sps:$4 sm:$0xff]   ;;  %846 = vmatpush1.bf16.msra.mxu1 %v5380_v63  ;;  %v5362_v4 = vld [vmem:[%s8457_s1] ss:$8 sps:$4 sm:$0xff]   ;;  %v5390_v5 = vld [vmem:[%s8457_s1 + $0x114] ss:$8 sps:$4 sm:$0xff]  }
  0x22   : > { %4710 = vrot.lane.b32.xlu0 %v4709_v27, %s5669_s21  ;;  %v4719_v37 = vpack.i.bf16 %v429_v32, %v427_v30  ;;  %v470_v38 = vrot.slane %v5834_v25, 2  ;;  %v472_v39 = vrot.slane %v5837_v26, 2  ;;  %v430_v41 = vrot.slane %v5834_v25, 1  ;;  %847 = vmatprep.subr.bf16.mxu1 %v5384_v2  ;;  %v5363_v10 = vld [vmem:[%s8457_s1 + $0xf4] ss:$8 sps:$4 sm:$0xff]   ;;  %s5672_s28 = smov 64  }
  0x23   : > { %v432_v42 = vrot.slane %v5837_v26, 1  ;;  %v434_v43 = vrot.slane %v5843_v31, 1  ;;  %v4724_v44 = vpack.i.bf16 %v469_v34, %v467_v33  ;;  %v474_v45 = vrot.slane %v5843_v31, 2  ;;  %771 = vmatpush1.bf16.msra.mxu0 %v5350_v35  ;;  %v5365_v11 = vld [vmem:[%s8457_s1 + $0xf0] ss:$8 sps:$4 sm:$0xff]   ;;  %s8612_s12 = smov 96  }
  0x24   : > { %4720 = vrot.lane.b32.xlu1 %v4719_v37, %s5669_s21  ;;  %v471_v46 = vsel %vm460_vm1, %v468_v24, %v470_v38  ;;  %v473_v47 = vsel %vm460_vm1, %v470_v38, %v472_v39  ;;  %v431_v48 = vsel %vm420_vm0, %v428_v19, %v430_v41  ;;  %772 = vmatprep.subr.bf16.mxu0 %v5351_v40  ;;  %v5392_v12 = vld [vmem:[%s8457_s1 + $0x110] ss:$8 sps:$4 sm:$0xff]   ;;  %v5366_v13 = vld [vmem:[%s8457_s1 + $0xe4] ss:$8 sps:$4 sm:$0xff]   ;;  %v5398_v17 = vld [vmem:[%s8457_s1 + $0x100] ss:$8 sps:$4 sm:$0xff]  }
  0x25   : > { %v433_v49 = vsel %vm420_vm0, %v430_v41, %v432_v42  ;;  %v435_v53 = vsel %vm420_vm0, %v432_v42, %v434_v43  ;;  %v4734_v54 = vpack.i.bf16 %v473_v47, %v471_v46  ;;  %v475_v56 = vsel %vm460_vm1, %v472_v39, %v474_v45  ;;  %848 = vmatpush1.bf16.msra.mxu1 %v5386_v3  ;;  %v5396_v16 = vld [vmem:[%s8457_s1 + $0x104] ss:$8 sps:$4 sm:$0xff]   ;;  %v5368_v18 = vld [vmem:[%s8457_s1 + $0xe0] ss:$8 sps:$4 sm:$0xff]   ;;  %v5369_v19 = vld [vmem:[%s8457_s1 + $0xd4] ss:$8 sps:$4 sm:$0xff]  }
  0x26   : > { %4715 = vrot.lane.b32.xlu0 %v4714_v36, %s8467_s30  ;;  %v4729_v51 = vpack.i.bf16 %v433_v49, %v431_v48  ;;  %v4739_v59 = vpack.i.bf16 %v434_v43, %v435_v53  ;;  %v4744_v62 = vpack.i.bf16 %v474_v45, %v475_v56  ;;  %849 = vmatprep.subr.bf16.mxu1 %v5390_v5  ;;  %v5371_v20 = vld [vmem:[%s8457_s1 + $0xd0] ss:$8 sps:$4 sm:$0xff]   ;;  %v5375_v21 = vld [vmem:[%s8457_s1 + $0xc4] ss:$8 sps:$4 sm:$0xff]   ;;  %v5377_v22 = vld [vmem:[%s8457_s1 + $0xc0] ss:$8 sps:$4 sm:$0xff]  }
  0x27   : > { %773 = vmatpush1.bf16.msra.mxu0 %v5353_v50  ;;  %v5381_v23 = vld [vmem:[%s8457_s1 + $0xb4] ss:$8 sps:$4 sm:$0xff]   ;;  %v5383_v24 = vld [vmem:[%s8457_s1 + $0xb0] ss:$8 sps:$4 sm:$0xff]   ;;  %v5387_v27 = vld [vmem:[%s8457_s1 + $0xa4] ss:$8 sps:$4 sm:$0xff]  }
  0x28   : > { %4725 = vrot.lane.b32.xlu1 %v4724_v44, %s8467_s30  ;;  %774 = vmatprep.subr.bf16.mxu0 %v5354_v52  ;;  %v5389_v28 = vld [vmem:[%s8457_s1 + $0xa0] ss:$8 sps:$4 sm:$0xff]   ;;  %v5393_v29 = vld [vmem:[%s8457_s1 + $0x94] ss:$8 sps:$4 sm:$0xff]   ;;  %v5395_v30 = vld [vmem:[%s8457_s1 + $0x90] ss:$8 sps:$4 sm:$0xff]  }
  0x29   : > { %850 = vmatpush1.bf16.msra.mxu1 %v5392_v12  ;;  %v5399_v32 = vld [vmem:[%s8457_s1 + $0x84] ss:$8 sps:$4 sm:$0xff]   ;;  %v5401_v33 = vld [vmem:[%s8457_s1 + $0x80] ss:$8 sps:$4 sm:$0xff]   ;;  %vm974_vm5 = vcmask 982016   ;;  %vm1722_vm6 = vcmask 523264  }
  0x2a   : > { %4730 = vrot.lane.b32.xlu0 %v4729_v51, %s5669_s21  ;;  %851 = vmatprep.subr.bf16.mxu1 %v5396_v16  ;;  %vm4084_vm7 = vcmask 457728   ;;  %vm4191_vm8 = vcmask 588800   ;;  %s351_s18 = sand.u32 1, %s5658_s14   ;;  %vm4265_vm9 = vcmask 74752  }
  0x2b   : > { %775 = vmatpush1.bf16.msra.mxu0 %v5356_v55  ;;  %s4344_s20 = sshll.u32 %s351_s18, 1  ;;  %s4268_s25 = scalar_lea.sflag [#allocation3], %s351_s18 }
  0x2c   : > { %4735 = vrot.lane.b32.xlu1 %v4734_v54, %s8467_s30  ;;  %776 = vmatprep.subr.bf16.mxu0 %v5357_v60 }
  0x2d   : > { %852 = vmatpush1.bf16.msra.mxu1 %v5398_v17 }
  0x2e   : > { %4740 = vrot.lane.b32.xlu0 %v4739_v59, %s5669_s21 }
  0x2f   : > { %777 = vmatpush1.bf16.msra.mxu0 %v5359_v0 }
  0x30   : > { %4745 = vrot.lane.b32.xlu1 %v4744_v62, %s8467_s30  ;;  %778 = vmatprep.subr.bf16.mxu0 %v5360_v1 }
  0x33   : > { %779 = vmatpush1.bf16.msra.mxu0 %v5362_v4 }
  0x34   : > { %780 = vmatprep.subr.bf16.mxu0 %v5363_v10 }
  0x37   : > { %781 = vmatpush2.bf16.msra.mxu0 %v5365_v11 }
  0x38   : > { %782 = vmatprep.subr.bf16.mxu0 %v5366_v13 }
  0x3b   : > { %783 = vmatpush2.bf16.msra.mxu0 %v5368_v18 }
  0x3c   : > { %784 = vmatprep.subr.bf16.mxu0 %v5369_v19 }
  0x3f   : > { %785 = vmatpush2.bf16.msra.mxu0 %v5371_v20 }
  0x40   : > { %786 = vmatprep.subr.bf16.mxu0 %v5375_v21 }
  0x43   : > { %787 = vmatpush2.bf16.msra.mxu0 %v5377_v22  ;;  %v531_v22 = vlaneseq }
  0x44   : > { %788 = vmatprep.subr.bf16.mxu0 %v5381_v23 }
  0x45   : > { %v6004_v23 = vshrl.u32 %v531_v22, 7 }
  0x47   : > { %789 = vmatpush2.bf16.msra.mxu0 %v5383_v24  ;;  %8557 = vst [vmem:[#allocation5_spill] sm:$0xff] %v6004_v23  ;;  %v8469_v24 = vsub.s32 0, %v6004_v23 }
  0x48   : > { %790 = vmatprep.subr.bf16.mxu0 %v5387_v27  ;;  %v411_v27 = vld [vmem:[%s8458_s2] sm:$0x3] }
  0x4b   : > { %791 = vmatpush2.bf16.msra.mxu0 %v5389_v28  ;;  %v8470_v28 = vsub.s32 1, %v6004_v23 }
  0x4c   : > { %792 = vmatprep.subr.bf16.mxu0 %v5393_v29 }
  0x4d   : > { %v6017_v29 = vrot.slane %v411_v27, %v8470_v28  ;;  %v5428_v28 = vld [vmem:[%s8459_s3 + $0x16c] ss:$12 sps:$4 sm:$0xff]  }
  0x4f   : > { %793 = vmatpush2.bf16.msra.mxu0 %v5395_v30 }
  0x50   : > { %794 = vmatprep.subr.bf16.mxu0 %v5399_v32 }
  0x53   : > { %795 = vmatpush2.bf16.msra.mxu0 %v5401_v33 }
  0x94   : > { %v4711_v34 = vpop.permute.xlu0 %4710 }
  0x95   : > { %v4713_v35 = vunpack.i.h.bf16 %v4711_v34  ;;  %v4712_v36 = vunpack.i.l.bf16 %v4711_v34 }
  0x96   : > { %v4721_v37 = vpop.permute.xlu1 %4720 }
  0x97   : > { %v4723_v41 = vunpack.i.h.bf16 %v4721_v37  ;;  %v4722_v42 = vunpack.i.l.bf16 %v4721_v37  ;;  %v501_v43 = vsel %vm500_vm2, %v5803_v6, %v4712_v36  ;;  %v502_v44 = vsel %vm500_vm2, %v5806_v7, %v4713_v35 }
  0x98   : > { %v4716_v38 = vpop.permute.xlu0 %4715  ;;  %v518_v53 = vpack.c.bf16 %v502_v44, %v501_v43 }
  0x99   : > { %v4718_v39 = vunpack.i.h.bf16 %v4716_v38  ;;  %v4717_v40 = vunpack.i.l.bf16 %v4716_v38  ;;  %v503_v60 = vsel %vm500_vm2, %v5809_v8, %v4722_v42  ;;  %v504_v61 = vsel %vm500_vm2, %v5817_v14, %v4723_v41 }
  0x9a   : > { %v4726_v45 = vpop.permute.xlu1 %4725  ;;  %v521_v3 = vpack.c.bf16 %v504_v61, %v503_v60 }
  0x9b   : > { %v520_v46 = vpack.c.bf16 %v4718_v39, %v4717_v40  ;;  %v510_v47 = vsel %vm509_vm3, %v4712_v36, %v4717_v40  ;;  %v511_v48 = vsel %vm509_vm3, %v4713_v35, %v4718_v39  ;;  %v4728_v49 = vunpack.i.h.bf16 %v4726_v45 }
  0x9c   : > { %v519_v50 = vpack.c.bf16 %v511_v48, %v510_v47  ;;  %v4727_v51 = vunpack.i.l.bf16 %v4726_v45  ;;  %v4731_v52 = vpop.permute.xlu0 %4730 }
  0x9d   : > { %4389 = vmatmul.mubr.msk.bf16.vlgmr.msra.gmra.mxu1 %vm751_vm4, %v520_v46  ;;  %v513_v54 = vsel %vm509_vm3, %v4723_v41, %v4728_v49  ;;  %v4733_v55 = vunpack.i.h.bf16 %v4731_v52  ;;  %v4732_v6 = vunpack.i.l.bf16 %v4731_v52 }
  0x9e   : > { %796 = vmatprep.mubr.bf16.mxu0 %v519_v50  ;;  %v512_v7 = vsel %vm509_vm3, %v4722_v42, %v4727_v51  ;;  %879 = vmatprep.mubr.bf16.mxu1 %v8471_v9  ;;  %v4736_v56 = vpop.permute.xlu1 %4735  ;;  %v523_v62 = vpack.c.bf16 %v4728_v49, %v4727_v51 }
  0x9f   : > { %797 = vmatmul.mubr.bf16.vlgmr.msra.gmra.mxu0 %v518_v53  ;;  %v522_v57 = vpack.c.bf16 %v513_v54, %v512_v7  ;;  %v4738_v58 = vunpack.i.h.bf16 %v4736_v56  ;;  %v4737_v59 = vunpack.i.l.bf16 %v4736_v56  ;;  %v505_v8 = vsel %vm500_vm2, %v5820_v15, %v4732_v6 }
  0xa0   : > { %v4741_v2 = vpop.permute.xlu0 %4740  ;;  %v506_v14 = vsel %vm500_vm2, %v5834_v25, %v4733_v55 }
  0xa1   : > { %806 = vmatprep.mubr.bf16.mxu0 %v522_v57  ;;  %v514_v63 = vsel %vm509_vm3, %v4732_v6, %v4737_v59  ;;  %v515_v0 = vsel %vm509_vm3, %v4733_v55, %v4738_v58  ;;  %v4743_v11 = vunpack.i.h.bf16 %v4741_v2  ;;  %v4742_v12 = vunpack.i.l.bf16 %v4741_v2 }
  0xa2   : > { %v4746_v1 = vpop.permute.xlu1 %4745  ;;  %v525_v4 = vpack.c.bf16 %v515_v0, %v514_v63  ;;  %v526_v13 = vpack.c.bf16 %v4738_v58, %v4737_v59  ;;  %v524_v18 = vpack.c.bf16 %v506_v14, %v505_v8 }
  0xa3   : > { %v4748_v5 = vunpack.i.h.bf16 %v4746_v1  ;;  %v4747_v10 = vunpack.i.l.bf16 %v4746_v1  ;;  %v507_v20 = vsel %vm500_vm2, %v5837_v26, %v4742_v12  ;;  %v508_v15 = vsel %vm500_vm2, %v5843_v31, %v4743_v11 }
  0xa4   : > { %v527_v21 = vpack.c.bf16 %v508_v15, %v507_v20  ;;  %v6013_v26 = vrot.slane %v411_v27, %v8469_v24 }
  0xa5   : > { %4390 = vmatmul.mubr.msk.bf16.gmra.mxu1 %vm751_vm4, %v523_v62  ;;  %v516_v16 = vsel %vm509_vm3, %v4742_v12, %v4747_v10  ;;  %v517_v17 = vsel %vm509_vm3, %v4743_v11, %v4748_v5  ;;  %v529_v25 = vpack.c.bf16 %v4748_v5, %v4747_v10 }
  0xa6   : > { %889 = vmatprep.mubr.bf16.mxu1 %v8471_v9  ;;  %v528_v19 = vpack.c.bf16 %v517_v17, %v516_v16 }
  0xa7   : > { %807 = vmatmul.mubr.bf16.gmra.mxu0 %v521_v3 }
  0xa8   : > { %816 = vmatprep.mubr.bf16.mxu0 %v525_v4 }
  0xad   : > { %4391 = vmatmul.mubr.msk.bf16.gmra.mxu1 %vm751_vm4, %v526_v13 }
  0xae   : > { %899 = vmatprep.mubr.bf16.mxu1 %v8471_v9 }
  0xaf   : > { %817 = vmatmul.mubr.bf16.gmra.mxu0 %v524_v18 }
  0xb0   : > { %826 = vmatprep.mubr.bf16.mxu0 %v528_v19 }
  0xb5   : > { %4392 = vmatmul.mubr.msk.bf16.gmra.mxu1 %vm751_vm4, %v529_v25 }
  0xb7   : > { %827 = vmatmul.mubr.bf16.gmra.mxu0 %v527_v21 }
 0x15d   : > { %v871_v31 = vpop.f32.mrf.mxu1 }
 0x15f   : > { %v798_v30 = vpop.f32.mrf.mxu0  ;;  %v873_v32 = vpop.f32.mrf.mxu1 }
 0x160   : > { %v799_v33 = vadd.f32 %v798_v30, %v6013_v26 }
 0x161   : > { %v800_v34 = vpop.f32.mrf.mxu0  ;;  %v875_v37 = vpop.f32.mrf.mxu1 }
 0x162   : > { %v872_v35 = vadd.f32 %v871_v31, %v799_v33  ;;  %v801_v36 = vadd.f32 %v800_v34, %v6017_v29 }
 0x163   : > { %v802_v38 = vpop.f32.mrf.mxu0  ;;  %v877_v45 = vpop.f32.mrf.mxu1 }
 0x164   : > { %v874_v39 = vadd.f32 %v873_v32, %v801_v36  ;;  %v803_v40 = vadd.f32 %v802_v38, %v6013_v26  ;;  %v6022_v42 = vmax.f32 %v872_v35, 0.0 }
 0x165   : > { %v804_v41 = vpop.f32.mrf.mxu0  ;;  %v881_v50 = vpop.f32.mrf.mxu1 }
 0x166   : > { %v6024_v43 = vmax.f32 %v874_v39, 0.0  ;;  %v876_v44 = vadd.f32 %v875_v37, %v803_v40  ;;  %v805_v46 = vadd.f32 %v804_v41, %v6017_v29  ;;  %v1087_v57 = vrot.slane %v6022_v42, 1 }
 0x167   : > { %v808_v47 = vpop.f32.mrf.mxu0  ;;  %v883_v7 = vpop.f32.mrf.mxu1  ;;  %v1293_v10 = vrot.slane %v6022_v42, 2 }
 0x168   : > { %v6027_v48 = vmax.f32 %v876_v44, 0.0  ;;  %v878_v49 = vadd.f32 %v877_v45, %v805_v46  ;;  %v4754_v51 = vpack.i.bf16 %v6024_v43, %v6022_v42  ;;  %v809_v55 = vadd.f32 %v808_v47, %v6013_v26 }
 0x169   : > { %v810_v52 = vpop.f32.mrf.mxu0  ;;  %v1090_v59 = vrot.slane %v6024_v43, 1  ;;  %v1296_v62 = vrot.slane %v6024_v43, 2  ;;  %v885_v13 = vpop.f32.mrf.mxu1 }
 0x16a   : > { %v6031_v53 = vmax.f32 %v878_v49, 0.0  ;;  %v811_v54 = vadd.f32 %v810_v52, %v6017_v29  ;;  %4755 = vrot.lane.b32.xlu1 %v4754_v51, %s5669_s21  ;;  %4750 = vrot.lane.b32.xlu0 %v4754_v51, %s5671_s29  ;;  %v1088_v6 = vrot.slane %v6027_v48, 1  ;;  %v882_v0 = vadd.f32 %v881_v50, %v809_v55 }
 0x16b   : > { %v812_v61 = vpop.f32.mrf.mxu0  ;;  %v1294_v3 = vrot.slane %v6027_v48, 2  ;;  %v887_v15 = vpop.f32.mrf.mxu1 }
 0x16c   : > { %v4759_v56 = vpack.i.bf16 %v6031_v53, %v6027_v48  ;;  %v884_v58 = vadd.f32 %v883_v7, %v811_v54  ;;  %v1091_v60 = vrot.slane %v6031_v53, 1  ;;  %v1297_v63 = vrot.slane %v6031_v53, 2 }
 0x16d   : > { %v6048_v1 = vsel %vm420_vm0, %v1087_v57, %v1088_v6  ;;  %v814_v12 = vpop.f32.mrf.mxu0  ;;  %v6063_v8 = vmax.f32 %v882_v0, 0.0  ;;  %v6067_v14 = vsel %vm460_vm1, %v1293_v10, %v1294_v3  ;;  %v813_v19 = vadd.f32 %v812_v61, %v6013_v26  ;;  %v891_v37 = vpop.f32.mrf.mxu1 }
 0x16e   : > { %4760 = vrot.lane.b32.xlu1 %v4759_v56, %s5671_s29  ;;  %4765 = vrot.lane.b32.xlu0 %v4759_v56, %s5669_s21  ;;  %v6051_v2 = vsel %vm420_vm0, %v1090_v59, %v1091_v60  ;;  %v6056_v5 = vmax.f32 %v884_v58, 0.0  ;;  %v6060_v11 = vsel %vm460_vm1, %v1296_v62, %v1297_v63  ;;  %v815_v17 = vadd.f32 %v814_v12, %v6017_v29 }
 0x16f   : > { %v4774_v4 = vpack.i.bf16 %v6051_v2, %v6048_v1  ;;  %v4784_v16 = vpack.i.bf16 %v6060_v11, %v6067_v14  ;;  %v1093_v20 = vrot.slane %v6063_v8, 1  ;;  %v818_v22 = vpop.f32.mrf.mxu0  ;;  %v886_v30 = vadd.f32 %v885_v13, %v813_v19  ;;  %v893_v46 = vpop.f32.mrf.mxu1 }
 0x170   : > { %v1095_v18 = vrot.slane %v6056_v5, 1  ;;  %v4794_v25 = vpack.i.bf16 %v6056_v5, %v6063_v8  ;;  %v888_v21 = vadd.f32 %v887_v15, %v815_v17  ;;  %v1301_v31 = vrot.slane %v6056_v5, 2 }
 0x171   : > { %v6086_v32 = vsel %vm420_vm0, %v1088_v6, %v1093_v20  ;;  %v1299_v33 = vrot.slane %v6063_v8, 2  ;;  %v820_v36 = vpop.f32.mrf.mxu0  ;;  %v6097_v39 = vmax.f32 %v886_v30, 0.0  ;;  %v819_v49 = vadd.f32 %v818_v22, %v6013_v26  ;;  %v895_v55 = vpop.f32.mrf.mxu1 }
 0x172   : > { %4775 = vrot.lane.b32.xlu1 %v4774_v4, %s5669_s21  ;;  %4770 = vrot.lane.b32.xlu0 %v4774_v4, %s5671_s29  ;;  %v6080_v27 = vsel %vm420_vm0, %v1091_v60, %v1095_v18  ;;  %v6091_v35 = vmax.f32 %v888_v21, 0.0  ;;  %v6094_v38 = vsel %vm460_vm1, %v1297_v63, %v1301_v31  ;;  %v821_v41 = vadd.f32 %v820_v36, %v6017_v29 }
 0x173   : > { %v4799_v34 = vpack.i.bf16 %v6080_v27, %v6086_v32  ;;  %v6101_v40 = vsel %vm460_vm1, %v1294_v3, %v1299_v33  ;;  %v822_v44 = vpop.f32.mrf.mxu0  ;;  %v1097_v50 = vrot.slane %v6097_v39, 1  ;;  %v892_v58 = vadd.f32 %v891_v37, %v819_v49  ;;  %v897_v62 = vpop.f32.mrf.mxu1 }
 0x174   : > { %v4809_v45 = vpack.i.bf16 %v6094_v38, %v6101_v40  ;;  %v1099_v47 = vrot.slane %v6091_v35, 1  ;;  %v894_v51 = vadd.f32 %v893_v46, %v821_v41  ;;  %v823_v52 = vadd.f32 %v822_v44, %v6013_v26 }
 0x175   : > { %v824_v54 = vpop.f32.mrf.mxu0  ;;  %v4819_v6 = vpack.i.bf16 %v6091_v35, %v6097_v39  ;;  %v1305_v57 = vrot.slane %v6091_v35, 2  ;;  %v6122_v59 = vsel %vm420_vm0, %v1093_v20, %v1097_v50  ;;  %v1303_v60 = vrot.slane %v6097_v39, 2  ;;  %v901_v46 = vpop.f32.mrf.mxu1 }
 0x176   : > { %4785 = vrot.lane.b32.xlu1 %v4784_v16, %s5669_s21  ;;  %4780 = vrot.lane.b32.xlu0 %v4784_v16, %s5671_s29  ;;  %v825_v7 = vadd.f32 %v824_v54, %v6017_v29  ;;  %v6116_v56 = vsel %vm420_vm0, %v1095_v18, %v1099_v47  ;;  %v6125_v61 = vmax.f32 %v894_v51, 0.0  ;;  %v896_v0 = vadd.f32 %v895_v55, %v823_v52 }
 0x177   : > { %v4834_v63 = vpack.i.bf16 %v6116_v56, %v6122_v59  ;;  %v6130_v4 = vsel %vm460_vm1, %v1301_v31, %v1305_v57  ;;  %v6133_v10 = vmax.f32 %v892_v58, 0.0  ;;  %v6137_v12 = vsel %vm460_vm1, %v1299_v33, %v1303_v60  ;;  %v828_v22 = vpop.f32.mrf.mxu0 }
 0x178   : > { %v898_v3 = vadd.f32 %v897_v62, %v825_v7  ;;  %v4844_v13 = vpack.i.bf16 %v6130_v4, %v6137_v12  ;;  %v6141_v16 = vmax.f32 %v896_v0, 0.0  ;;  %v1103_v18 = vrot.slane %v6125_v61, 1  ;;  %v903_v7 = vpop.f32.mrf.mxu1 }
 0x179   : > { %v1101_v19 = vrot.slane %v6133_v10, 1  ;;  %v4854_v20 = vpack.i.bf16 %v6125_v61, %v6133_v10  ;;  %v1309_v31 = vrot.slane %v6125_v61, 2  ;;  %v829_v49 = vadd.f32 %v828_v22, %v6013_v26 }
 0x17a   : > { %4795 = vrot.lane.b32.xlu1 %v4794_v25, %s5669_s21  ;;  %4790 = vrot.lane.b32.xlu0 %v4794_v25, %s5671_s29  ;;  %v6143_v17 = vmax.f32 %v898_v3, 0.0  ;;  %v6152_v15 = vsel %vm420_vm0, %v1099_v47, %v1103_v18  ;;  %v1105_v25 = vrot.slane %v6141_v16, 1  ;;  %v1311_v41 = vrot.slane %v6141_v16, 2  ;;  %v905_v0 = vpop.f32.mrf.mxu1 }
 0x17b   : > { %v6160_v30 = vsel %vm420_vm0, %v1097_v50, %v1101_v19  ;;  %v6175_v47 = vsel %vm460_vm1, %v1305_v57, %v1309_v31 }
 0x17c   : > { %v1107_v21 = vrot.slane %v6143_v17, 1  ;;  %v4859_v33 = vpack.i.bf16 %v6152_v15, %v6160_v30  ;;  %v6166_v36 = vsel %vm420_vm0, %v1101_v19, %v1105_v25  ;;  %v1313_v44 = vrot.slane %v6143_v17, 2  ;;  %v907_v22 = vpop.f32.mrf.mxu1 }
 0x17e   : > { %4800 = vrot.lane.b32.xlu1 %v4799_v34, %s5671_s29  ;;  %4805 = vrot.lane.b32.xlu0 %v4799_v34, %s5669_s21  ;;  %v1307_v34 = vrot.slane %v6133_v10, 2  ;;  %v6169_v37 = vsel %vm420_vm0, %v1103_v18, %v1107_v21 }
 0x17f   : > { %v4894_v50 = vpack.i.bf16 %v6169_v37, %v6166_v36 }
 0x180   : > { %v6182_v51 = vsel %vm460_vm1, %v1303_v60, %v1307_v34  ;;  %v6188_v55 = vsel %vm460_vm1, %v1307_v34, %v1311_v41  ;;  %v902_v60 = vadd.f32 %v901_v46, %v829_v49 }
 0x181   : > { %v4869_v54 = vpack.i.bf16 %v6175_v47, %v6182_v51 }
 0x182   : > { %4810 = vrot.lane.b32.xlu1 %v4809_v45, %s5671_s29  ;;  %4815 = vrot.lane.b32.xlu0 %v4809_v45, %s5669_s21  ;;  %v830_v45 = vpop.f32.mrf.mxu0 }
 0x183   : > { %v831_v52 = vadd.f32 %v830_v45, %v6017_v29 }
 0x184   : > { %v832_v57 = vpop.f32.mrf.mxu0 }
 0x185   : > { %v904_v62 = vadd.f32 %v903_v7, %v831_v52  ;;  %v833_v3 = vadd.f32 %v832_v57, %v6013_v26 }
 0x186   : > { %4820 = vrot.lane.b32.xlu1 %v4819_v6, %s5671_s29  ;;  %4825 = vrot.lane.b32.xlu0 %v4819_v6, %s5669_s21  ;;  %v6191_v6 = vsel %vm460_vm1, %v1309_v31, %v1313_v44 }
 0x187   : > { %v4899_v58 = vpack.i.bf16 %v6191_v6, %v6188_v55  ;;  %v6202_v18 = vmax.f32 %v904_v62, 0.0  ;;  %v906_v31 = vadd.f32 %v905_v0, %v833_v3 }
 0x189   : > { %v1111_v45 = vrot.slane %v6202_v18, 1  ;;  %v1317_v7 = vrot.slane %v6202_v18, 2 }
 0x18a   : > { %4835 = vrot.lane.b32.xlu1 %v4834_v63, %s5669_s21  ;;  %4830 = vrot.lane.b32.xlu0 %v4834_v63, %s5671_s29  ;;  %v834_v63 = vpop.f32.mrf.mxu0 }
 0x18b   : > { %v835_v19 = vadd.f32 %v834_v63, %v6017_v29  ;;  %v6215_v29 = vmax.f32 %v906_v31, 0.0  ;;  %v6223_v52 = vsel %vm420_vm0, %v1107_v21, %v1111_v45 }
 0x18d   : > { %v908_v34 = vadd.f32 %v907_v22, %v835_v19  ;;  %8558 = vst [vmem:[#allocation6_spill] sm:$0xff] %v6215_v29 }
 0x18e   : > { %4845 = vrot.lane.b32.xlu1 %v4844_v13, %s5669_s21  ;;  %4840 = vrot.lane.b32.xlu0 %v4844_v13, %s5671_s29  ;;  %v6200_v13 = vmax.f32 %v902_v60, 0.0  ;;  %v6242_v60 = vsel %vm460_vm1, %v1313_v44, %v1317_v7  ;;  %v6262_v44 = vrot.slane %v6215_v29, 2 }
 0x18f   : > { %v6217_v46 = vmax.f32 %v908_v34, 0.0  ;;  %8563 = vst [vmem:[#allocation11_spill] sm:$0xff] %v6242_v60  ;;  %v5402_v34 = vld [vmem:[%s8459_s3 + $0xa8] ss:$12 sps:$4 sm:$0xff]  }
 0x190   : > { %v1109_v26 = vrot.slane %v6200_v13, 1  ;;  %8566 = vst [vmem:[#allocation14_spill] sm:$0xff] %v6262_v44 }
 0x191   : > { %8559 = vst [vmem:[#allocation7_spill] sm:$0xff] %v6217_v46  ;;  %v6265_v3 = vrot.slane %v6217_v46, 2 }
 0x192   : > { %4855 = vrot.lane.b32.xlu1 %v4854_v20, %s5669_s21  ;;  %4850 = vrot.lane.b32.xlu0 %v4854_v20, %s5671_s29  ;;  %v4879_v20 = vpack.i.bf16 %v6143_v17, %v6141_v16  ;;  %v6220_v49 = vsel %vm420_vm0, %v1105_v25, %v1109_v26  ;;  %v6235_v25 = vrot.slane %v6217_v46, 1 }
 0x193   : > { %v4924_v57 = vpack.i.bf16 %v6223_v52, %v6220_v49  ;;  %8567 = vst [vmem:[#allocation15_spill] sm:$0xff] %v6265_v3 }
 0x194   : > { %8561 = vst [vmem:[#allocation9_spill] sm:$0xff] %v6235_v25  ;;  %v6255_v0 = vsel %vm420_vm0, %v1111_v45, %v6235_v25  ;;  %v5407_v45 = vld [vmem:[%s8459_s3 + $0x94] ss:$12 sps:$4 sm:$0xff]  }
 0x195   : > { %8565 = vst [vmem:[#allocation13_spill] sm:$0xff] %v6255_v0 }
 0x196   : > { %4860 = vrot.lane.b32.xlu1 %v4859_v33, %s5671_s29  ;;  %4865 = vrot.lane.b32.xlu0 %v4859_v33, %s5669_s21  ;;  %v4909_v33 = vpack.i.bf16 %v6202_v18, %v6200_v13 }
 0x19a   : > { %4895 = vrot.lane.b32.xlu1 %v4894_v50, %s5669_s21  ;;  %4870 = vrot.lane.b32.xlu0 %v4869_v54, %s5671_s29 }
 0x19e   : > { %4900 = vrot.lane.b32.xlu1 %v4899_v58, %s5671_s29  ;;  %4875 = vrot.lane.b32.xlu0 %v4869_v54, %s5669_s21  ;;  %v1315_v54 = vrot.slane %v6200_v13, 2 }
 0x1a0   : > { %v6239_v21 = vsel %vm460_vm1, %v1311_v41, %v1315_v54  ;;  %v6271_v19 = vsel %vm460_vm1, %v1315_v54, %v6262_v44  ;;  %v5405_v54 = vld [vmem:[%s8459_s3 + $0x90] ss:$12 sps:$4 sm:$0xff]  }
 0x1a1   : > { %8562 = vst [vmem:[#allocation10_spill] sm:$0xff] %v6239_v21  ;;  %v4929_v62 = vpack.i.bf16 %v6242_v60, %v6239_v21  ;;  %8568 = vst [vmem:[#allocation16_spill] sm:$0xff] %v6271_v19 }
 0x1a2   : > { %4905 = vrot.lane.b32.xlu1 %v4899_v58, %s5669_s21  ;;  %4880 = vrot.lane.b32.xlu0 %v4879_v20, %s5671_s29  ;;  %v6232_v58 = vrot.slane %v6215_v29, 1 }
 0x1a4   : > { %8560 = vst [vmem:[#allocation8_spill] sm:$0xff] %v6232_v58  ;;  %v6251_v63 = vsel %vm420_vm0, %v1109_v26, %v6232_v58  ;;  %v4954_v31 = vpack.i.bf16 %v6235_v25, %v6232_v58  ;;  %v5404_v26 = vld [vmem:[%s8459_s3 + $0xac] ss:$12 sps:$4 sm:$0xff]   ;;  %v5434_v25 = vld [vmem:[%s8459_s3 + $0x13c] ss:$12 sps:$4 sm:$0xff]  }
 0x1a5   : > { %8564 = vst [vmem:[#allocation12_spill] sm:$0xff] %v6251_v63  ;;  %v4944_v41 = vpack.i.bf16 %v6255_v0, %v6251_v63  ;;  %2425 = vmatprep.subr.bf16.mxu1 %v5404_v26  ;;  %v5419_v26 = vld [vmem:[%s8459_s3 + $0x34] ss:$12 sps:$4 sm:$0xff]  }
 0x1a6   : > { %4910 = vrot.lane.b32.xlu1 %v4909_v33, %s5671_s29  ;;  %4885 = vrot.lane.b32.xlu0 %v4879_v20, %s5669_s21  ;;  %v6275_v20 = vsel %vm460_vm1, %v1317_v7, %v6265_v3  ;;  %v5410_v7 = vld [vmem:[%s8459_s3 + $0x7c] ss:$12 sps:$4 sm:$0xff]  }
 0x1a7   : > { %8569 = vst [vmem:[#allocation17_spill] sm:$0xff] %v6275_v20  ;;  %v4964_v22 = vpack.i.bf16 %v6275_v20, %v6271_v19  ;;  %2426 = vmatpush1.bf16.msra.mxu1 %v5402_v34  ;;  %v5449_v34 = vld [vmem:[%s8459_s3 + $0x214] ss:$12 sps:$4 sm:$0xff]  }
 0x1a8   : > { %2427 = vmatprep.subr.bf16.mxu1 %v5407_v45  ;;  %v5447_v45 = vld [vmem:[%s8459_s3 + $0x210] ss:$12 sps:$4 sm:$0xff]  }
 0x1aa   : > { %4915 = vrot.lane.b32.xlu1 %v4909_v33, %s5669_s21  ;;  %4890 = vrot.lane.b32.xlu0 %v4894_v50, %s5671_s29  ;;  %v4939_v50 = vpack.i.bf16 %v6217_v46, %v6215_v29  ;;  %v4984_v33 = vpack.i.bf16 %v6265_v3, %v6262_v44 }
 0x1ab   : > { %2428 = vmatpush1.bf16.msra.mxu1 %v5405_v54  ;;  %v5417_v54 = vld [vmem:[%s8459_s3 + $0x30] ss:$12 sps:$4 sm:$0xff]  }
 0x1ac   : > { %2429 = vmatprep.subr.bf16.mxu1 %v5410_v7 }
 0x1ae   : > { %4925 = vrot.lane.b32.xlu1 %v4924_v57, %s5669_s21  ;;  %4920 = vrot.lane.b32.xlu0 %v4924_v57, %s5671_s29  ;;  %v5408_v57 = vld [vmem:[%s8459_s3 + $0x78] ss:$12 sps:$4 sm:$0xff]  }
 0x1af   : > { %2430 = vmatpush1.bf16.msra.mxu1 %v5408_v57  ;;  %v5422_v57 = vld [vmem:[%s8459_s3 + $0x1c] ss:$12 sps:$4 sm:$0xff]  }
 0x1b2   : > { %4940 = vrot.lane.b32.xlu1 %v4939_v50, %s5669_s21  ;;  %4930 = vrot.lane.b32.xlu0 %v4929_v62, %s5671_s29 }
 0x1b6   : > { %4945 = vrot.lane.b32.xlu1 %v4944_v41, %s5671_s29  ;;  %4935 = vrot.lane.b32.xlu0 %v4939_v50, %s5671_s29  ;;  %v5413_v50 = vld [vmem:[%s8459_s3 + $0x64] ss:$12 sps:$4 sm:$0xff]  }
 0x1b7   : > { %2431 = vmatprep.subr.bf16.mxu1 %v5413_v50 }
 0x1ba   : > { %4960 = vrot.lane.b32.xlu1 %v4929_v62, %s5669_s21  ;;  %4950 = vrot.lane.b32.xlu0 %v4944_v41, %s5669_s21  ;;  %v5411_v62 = vld [vmem:[%s8459_s3 + $0x60] ss:$12 sps:$4 sm:$0xff]  }
 0x1bb   : > { %v5416_v41 = vld [vmem:[%s8459_s3 + $0x4c] ss:$12 sps:$4 sm:$0xff]   ;;  %2432 = vmatpush1.bf16.msra.mxu1 %v5411_v62 }
 0x1bc   : > { %2433 = vmatprep.subr.bf16.mxu1 %v5416_v41  ;;  %v5420_v62 = vld [vmem:[%s8459_s3 + $0x18] ss:$12 sps:$4 sm:$0xff]  }
 0x1be   : > { %4965 = vrot.lane.b32.xlu1 %v4964_v22, %s5671_s29  ;;  %4955 = vrot.lane.b32.xlu0 %v4954_v31, %s5671_s29 }
 0x1c2   : > { %4975 = vrot.lane.b32.xlu1 %v4954_v31, %s5669_s21  ;;  %4970 = vrot.lane.b32.xlu0 %v4964_v22, %s5669_s21  ;;  %v5441_v22 = vld [vmem:[%s8459_s3 + $0x228] ss:$12 sps:$4 sm:$0xff]   ;;  %v5443_v31 = vld [vmem:[%s8459_s3 + $0x22c] ss:$12 sps:$4 sm:$0xff]  }
 0x1c3   : > { %2498 = vmatprep.subr.bf16.mxu0 %v5443_v31 }
 0x1c4   : > { %2499 = vmatpush1.bf16.msra.mxu0 %v5441_v22 }
 0x1c5   : > { %2500 = vmatprep.subr.bf16.mxu0 %v5449_v34 }
 0x1c6   : > { %4985 = vrot.lane.b32.xlu1 %v4984_v33, %s5669_s21  ;;  %4980 = vrot.lane.b32.xlu0 %v4984_v33, %s5671_s29  ;;  %v5414_v33 = vld [vmem:[%s8459_s3 + $0x48] ss:$12 sps:$4 sm:$0xff]   ;;  %s4557_s29 = sshll.u32 %s5751_s17, 5  ;;  %s5674_s17 = smov [#allocation2]  }
 0x1c7   : > { %2434 = vmatpush1.bf16.msra.mxu1 %v5414_v33  ;;  %v5425_v33 = vld [vmem:[%s8459_s3 + $0x4] ss:$12 sps:$4 sm:$0xff]  }
 0x1c8   : > { %2435 = vmatprep.subr.bf16.mxu1 %v5419_v26  ;;  %2501 = vmatpush1.bf16.msra.mxu0 %v5447_v45  ;;  %v5429_v26 = vld [vmem:[%s8459_s3 + $0x150] ss:$12 sps:$4 sm:$0xff]  }
 0x1cb   : > { %2436 = vmatpush1.bf16.msra.mxu1 %v5417_v54  ;;  %v5423_v54 = vld [vmem:[%s8459_s3] ss:$12 sps:$4 sm:$0xff]  }
 0x1cc   : > { %2437 = vmatprep.subr.bf16.mxu1 %v5422_v57 }
 0x1cf   : > { %2438 = vmatpush1.bf16.msra.mxu1 %v5420_v62 }
 0x1d0   : > { %2439 = vmatprep.subr.bf16.mxu1 %v5425_v33 }
 0x1d3   : > { %2440 = vmatpush1.bf16.msra.mxu1 %v5423_v54 }
 0x1d4   : > { %2441 = vmatprep.subr.bf16.mxu1 %v5428_v28 }
 0x1dc   : > { %v6339_v7 = vpop.permute.xlu1 %4755  ;;  %v6344_v50 = vpop.permute.xlu0 %4750 }
 0x1dd   : > { %v8477_v41 = vunpack.i.h.bf16 %v6344_v50  ;;  %v4752_v22 = vunpack.i.l.bf16 %v6344_v50  ;;  %v4757_v62 = vunpack.i.l.bf16 %v6339_v7 }
 0x1df   : > { %v975_v57 = vsel %vm974_vm5, %v4752_v22, %v8477_v41  ;;  %v5426_v22 = vld [vmem:[%s8459_s3 + $0x168] ss:$12 sps:$4 sm:$0xff]  }
 0x1e0   : > { %v6351_v31 = vpop.permute.xlu1 %4760  ;;  %v6356_v34 = vpop.permute.xlu0 %4765  ;;  %v999_v23 = vmax.f32 %v6022_v42, %v975_v57  ;;  %v5431_v41 = vld [vmem:[%s8459_s3 + $0x154] ss:$12 sps:$4 sm:$0xff]   ;;  %2442 = vmatpush2.bf16.msra.mxu1 %v5426_v22 }
 0x1e1   : > { %v4762_v45 = vunpack.i.l.bf16 %v6351_v31  ;;  %v8570_v44 = vunpack.i.h.bf16 %v6351_v31  ;;  %v4767_v42 = vunpack.i.l.bf16 %v6356_v34  ;;  %2443 = vmatprep.subr.bf16.mxu1 %v5431_v41  ;;  %v5432_v41 = vld [vmem:[%s8459_s3 + $0x138] ss:$12 sps:$4 sm:$0xff]  }
 0x1e3   : > { %v976_v3 = vsel %vm974_vm5, %v4762_v45, %v8570_v44  ;;  %v8571_v44 = vunpack.i.h.bf16 %v6339_v7 }
 0x1e4   : > { %v6366_v24 = vpop.permute.xlu1 %4775  ;;  %v6371_v9 = vpop.permute.xlu0 %4770  ;;  %v1001_v54 = vmax.f32 %v6027_v48, %v976_v3  ;;  %2444 = vmatpush2.bf16.msra.mxu1 %v5429_v26 }
 0x1e5   : > { %v1047_v45 = vsel %vm500_vm2, %v4757_v62, %v8571_v44  ;;  %v8483_v20 = vunpack.i.h.bf16 %v6371_v9  ;;  %v4772_v28 = vunpack.i.l.bf16 %v6371_v9  ;;  %v8572_v62 = vunpack.i.h.bf16 %v6356_v34  ;;  %2445 = vmatprep.subr.bf16.mxu1 %v5434_v25 }
 0x1e6   : > { %v1071_v58 = vmax.f32 %v999_v23, %v1047_v45  ;;  %v4777_v19 = vunpack.i.l.bf16 %v6366_v24 }
 0x1e7   : > { %v1048_v48 = vsel %vm500_vm2, %v4767_v42, %v8572_v62  ;;  %v1181_v23 = vsel %vm974_vm5, %v4772_v28, %v8483_v20 }
 0x1e8   : > { %v6382_v33 = vpop.permute.xlu1 %4785  ;;  %v6389_v57 = vpop.permute.xlu0 %4780  ;;  %v1073_v44 = vmax.f32 %v1001_v54, %v1048_v48  ;;  %v1133_v22 = vmax.f32 %v1071_v58, %v6048_v1  ;;  %v5437_v1 = vld [vmem:[%s8459_s3 + $0x124] ss:$12 sps:$4 sm:$0xff]   ;;  %2446 = vmatpush2.bf16.msra.mxu1 %v5432_v41  ;;  %v5440_v41 = vld [vmem:[%s8459_s3 + $0x10c] ss:$12 sps:$4 sm:$0xff]  }
 0x1e9   : > { %2447 = vmatprep.subr.bf16.mxu1 %v5437_v1 }
 0x1ea   : > { %v1205_v58 = vmax.f32 %v1133_v22, %v1181_v23  ;;  %v1135_v20 = vmax.f32 %v1073_v44, %v6086_v32  ;;  %v5435_v23 = vld [vmem:[%s8459_s3 + $0x120] ss:$12 sps:$4 sm:$0xff]   ;;  %v8573_v22 = vunpack.i.h.bf16 %v6366_v24 }
 0x1ec   : > { %v6400_v60 = vpop.permute.xlu1 %4795  ;;  %v6408_v3 = vpop.permute.xlu0 %4790  ;;  %v1253_v29 = vsel %vm500_vm2, %v4777_v19, %v8573_v22  ;;  %2448 = vmatpush2.bf16.msra.mxu1 %v5435_v23 }
 0x1ed   : > { %v4792_v62 = vunpack.i.l.bf16 %v6408_v3  ;;  %v8574_v46 = vunpack.i.h.bf16 %v6408_v3  ;;  %v1277_v21 = vmax.f32 %v1205_v58, %v1253_v29  ;;  %v8489_v63 = vunpack.i.h.bf16 %v6400_v60  ;;  %2449 = vmatprep.subr.bf16.mxu1 %v5440_v41 }
 0x1ef   : > { %v977_v32 = vsel %vm974_vm5, %v4792_v62, %v8574_v46 }
 0x1f0   : > { %v6421_v54 = vpop.permute.xlu1 %4800  ;;  %v6428_v48 = vpop.permute.xlu0 %4805 }
 0x1f1   : > { %v8486_v26 = vunpack.i.h.bf16 %v6421_v54  ;;  %v4802_v28 = vunpack.i.l.bf16 %v6421_v54  ;;  %v4807_v45 = vunpack.i.l.bf16 %v6428_v48  ;;  %v8576_v19 = vunpack.i.h.bf16 %v6428_v48 }
 0x1f3   : > { %v1182_v25 = vsel %vm974_vm5, %v4802_v28, %v8486_v26  ;;  %v8575_v28 = vunpack.i.h.bf16 %v6344_v50  ;;  %v1254_v22 = vsel %vm500_vm2, %v4807_v45, %v8576_v19  ;;  %v1003_v50 = vmax.f32 %v6063_v8, %v977_v32 }
 0x1f4   : > { %v1207_v44 = vmax.f32 %v1135_v20, %v1182_v25  ;;  %v6445_v42 = vpop.permute.xlu1 %4810  ;;  %v6457_v46 = vpop.permute.xlu0 %4815  ;;  %v4797_v20 = vunpack.i.l.bf16 %v6400_v60  ;;  %v4782_v45 = vunpack.i.l.bf16 %v6389_v57  ;;  %v8577_v8 = vunpack.i.h.bf16 %v6339_v7 }
 0x1f5   : > { %v1000_v26 = vmax.f32 %v6024_v43, %v8575_v28  ;;  %v8490_v1 = vunpack.i.h.bf16 %v6445_v42  ;;  %v4812_v25 = vunpack.i.l.bf16 %v6445_v42  ;;  %v5438_v43 = vld [vmem:[%s8459_s3 + $0x108] ss:$12 sps:$4 sm:$0xff]   ;;  %v1339_v32 = vmax.f32 %v1277_v21, %v6067_v14 }
 0x1f6   : > { %v1279_v62 = vmax.f32 %v1207_v44, %v1254_v22  ;;  %v5446_v44 = vld [vmem:[%s8459_s3 + $0xf4] ss:$12 sps:$4 sm:$0xff]   ;;  %v8492_v19 = vunpack.i.h.bf16 %v6457_v46  ;;  %v4817_v22 = vunpack.i.l.bf16 %v6457_v46  ;;  %v1049_v41 = vsel %vm500_vm2, %v4797_v20, %v8489_v63  ;;  %2450 = vmatpush2.bf16.msra.mxu1 %v5438_v43 }
 0x1f7   : > { %v1072_v23 = vmax.f32 %v1000_v26, %v8577_v8  ;;  %v1388_v7 = vsel %vm974_vm5, %v4812_v25, %v8490_v1  ;;  %v1075_v26 = vmax.f32 %v1003_v50, %v1049_v41  ;;  %v8579_v20 = vunpack.i.h.bf16 %v6389_v57  ;;  %2451 = vmatprep.subr.bf16.mxu1 %v5446_v44  ;;  %v5452_v50 = vld [vmem:[%s8459_s3 + $0xdc] ss:$12 sps:$4 sm:$0xff]  }
 0x1f8   : > { %v1341_v58 = vmax.f32 %v1279_v62, %v6101_v40  ;;  %v6469_v28 = vpop.permute.xlu1 %4820  ;;  %v6479_v29 = vpop.permute.xlu0 %4825  ;;  %v8578_v40 = vunpack.i.h.bf16 %v6351_v31  ;;  %v5444_v31 = vld [vmem:[%s8459_s3 + $0xf0] ss:$12 sps:$4 sm:$0xff]   ;;  %v1460_v41 = vsel %vm500_vm2, %v4817_v22, %v8492_v19  ;;  %v8582_v22 = vunpack.i.h.bf16 %v6371_v9 }
 0x1f9   : > { %v4822_v8 = vunpack.i.l.bf16 %v6469_v28  ;;  %v1387_v63 = vsel %vm974_vm5, %v4782_v45, %v8579_v20  ;;  %v1134_v43 = vmax.f32 %v1072_v23, %v6051_v2  ;;  %v8581_v2 = vunpack.i.h.bf16 %v6469_v28 }
 0x1fa   : > { %v1002_v62 = vmax.f32 %v6031_v53, %v8578_v40  ;;  %v1413_v14 = vmax.f32 %v1341_v58, %v1388_v7  ;;  %v4787_v40 = vunpack.i.l.bf16 %v6382_v33  ;;  %v1411_v58 = vmax.f32 %v1339_v32, %v1387_v63  ;;  %2452 = vmatpush2.bf16.msra.mxu1 %v5444_v31  ;;  %v5450_v32 = vld [vmem:[%s8459_s3 + $0xd8] ss:$12 sps:$4 sm:$0xff]  }
 0x1fb   : > { %v8580_v53 = vunpack.i.h.bf16 %v6356_v34  ;;  %v978_v63 = vsel %vm974_vm5, %v4822_v8, %v8581_v2  ;;  %v1137_v23 = vmax.f32 %v1075_v26, %v6122_v59  ;;  %v1206_v19 = vmax.f32 %v1134_v43, %v8582_v22  ;;  %2453 = vmatprep.subr.bf16.mxu1 %v5452_v50 }
 0x1fc   : > { %v6500_v25 = vpop.permute.xlu1 %4835  ;;  %v6509_v7 = vpop.permute.xlu0 %4830  ;;  %v6517_v0 = vmax.f32 %v1413_v14, %v1460_v41  ;;  %v8583_v1 = vunpack.i.h.bf16 %v6382_v33  ;;  %v4828_v9 = vunpack.i.h.bf16 %v6479_v29  ;;  %v4827_v31 = vunpack.i.l.bf16 %v6479_v29 }
 0x1fd   : > { %v4837_v45 = vunpack.i.l.bf16 %v6500_v25  ;;  %v4833_v20 = vunpack.i.h.bf16 %v6509_v7  ;;  %v4832_v44 = vunpack.i.l.bf16 %v6509_v7  ;;  %v1074_v21 = vmax.f32 %v1002_v62, %v8580_v53 }
 0x1fe   : > { %v1459_v34 = vsel %vm500_vm2, %v4787_v40, %v8583_v1  ;;  %v8584_v62 = vunpack.i.h.bf16 %v6408_v3  ;;  %v1005_v3 = vmax.f32 %v6097_v39, %v978_v63  ;;  %2454 = vmatpush2.bf16.msra.mxu1 %v5450_v32  ;;  %v1050_v32 = vsel %vm500_vm2, %v4827_v31, %v4828_v9 }
 0x1ff   : > { %v1183_v59 = vsel %vm974_vm5, %v4832_v44, %v4833_v20  ;;  %v6539_v8 = vmax.f32 %v1411_v58, %v1459_v34  ;;  %v8586_v44 = vunpack.i.h.bf16 %v6366_v24  ;;  %v1136_v34 = vmax.f32 %v1074_v21, %v6080_v27  ;;  %v5456_v27 = vld [vmem:[%s8459_s3 + $0xc0] ss:$12 sps:$4 sm:$0xff]  }
 0x200   : > { %v1004_v14 = vmax.f32 %v6056_v5, %v8584_v62  ;;  %v6537_v26 = vpop.permute.xlu1 %4845  ;;  %v1209_v53 = vmax.f32 %v1137_v23, %v1183_v59  ;;  %v6543_v43 = vpop.permute.xlu0 %4840  ;;  %v8585_v5 = vunpack.i.h.bf16 %v6500_v25  ;;  %v5455_v59 = vld [vmem:[%s8459_s3 + $0x1fc] ss:$12 sps:$4 sm:$0xff]  }
 0x201   : > { %v4843_v40 = vunpack.i.h.bf16 %v6543_v43  ;;  %v4842_v41 = vunpack.i.l.bf16 %v6543_v43  ;;  %v6553_v58 = vpack.c.bf16 %v6517_v0, %v6539_v8  ;;  %v6557_v2 = vmax.f32 %v1206_v19, %v8586_v44  ;;  %v5453_v19 = vld [vmem:[%s8459_s3 + $0x1f8] ss:$12 sps:$4 sm:$0xff]   ;;  %2502 = vmatprep.subr.bf16.mxu0 %v5455_v59 }
 0x202   : > { %v1255_v1 = vsel %vm500_vm2, %v4837_v45, %v8585_v5  ;;  %v4848_v39 = vunpack.i.h.bf16 %v6537_v26  ;;  %v4847_v63 = vunpack.i.l.bf16 %v6537_v26  ;;  %v8587_v45 = vunpack.i.h.bf16 %v6400_v60  ;;  %2503 = vmatpush1.bf16.msra.mxu0 %v5453_v19 }
 0x203   : > { %v1281_v50 = vmax.f32 %v1209_v53, %v1255_v1  ;;  %v1077_v60 = vmax.f32 %v1005_v3, %v1050_v32  ;;  %v1389_v21 = vsel %vm974_vm5, %v4842_v41, %v4843_v40  ;;  %v1340_v5 = vmax.f32 %v6557_v2, %v6060_v11 }
 0x204   : > { %v6561_v23 = vpop.permute.xlu1 %4855  ;;  %v1076_v22 = vmax.f32 %v1004_v14, %v8587_v45  ;;  %v6570_v24 = vpop.permute.xlu0 %4850  ;;  %v8588_v14 = vunpack.i.h.bf16 %v6421_v54  ;;  %v1461_v3 = vsel %vm500_vm2, %v4847_v63, %v4848_v39  ;;  %v1747_v41 = vrot.slane %v6539_v8, 2 }
 0x205   : > { %v1343_v62 = vmax.f32 %v1281_v50, %v6137_v12  ;;  %v5458_v12 = vld [vmem:[%s8459_s3 + $0xc4] ss:$12 sps:$4 sm:$0xff]   ;;  %v1748_v50 = vrot.slane %v6517_v0, 2  ;;  %v1139_v63 = vmax.f32 %v1077_v60, %v6160_v30  ;;  %v8589_v19 = vunpack.i.h.bf16 %v6428_v48 }
 0x206   : > { %v1208_v31 = vmax.f32 %v1136_v34, %v8588_v14  ;;  %2455 = vmatprep.subr.bf16.mxu1 %v5458_v12  ;;  %v1138_v54 = vmax.f32 %v1076_v22, %v6116_v56  ;;  %v5459_v56 = vld [vmem:[%s8459_s3 + $0x1e0] ss:$12 sps:$4 sm:$0xff]   ;;  %v5461_v22 = vld [vmem:[%s8459_s3 + $0x1e4] ss:$12 sps:$4 sm:$0xff]   ;;  %v1661_v60 = vrot.slane %v6517_v0, 1  ;;  %v4852_v0 = vunpack.i.l.bf16 %v6570_v24 }
 0x207   : > { %v1415_v53 = vmax.f32 %v1343_v62, %v1389_v21  ;;  %2456 = vmatpush2.bf16.msra.mxu1 %v5456_v27  ;;  %v1660_v62 = vrot.slane %v6539_v8, 1  ;;  %v5464_v8 = vld [vmem:[%s8459_s3 + $0x1cc] ss:$12 sps:$4 sm:$0xff]   ;;  %v8590_v21 = vunpack.i.h.bf16 %v6469_v28  ;;  %v1749_v48 = vsel %vm460_vm1, %v1747_v41, %v1748_v50  ;;  %2504 = vmatprep.subr.bf16.mxu0 %v5461_v22  ;;  %v5462_v28 = vld [vmem:[%s8459_s3 + $0x1c8] ss:$12 sps:$4 sm:$0xff]  }
 0x208   : > { %v6594_v1 = vpop.permute.xlu1 %4860  ;;  %v6603_v2 = vpop.permute.xlu0 %4865  ;;  %v1280_v59 = vmax.f32 %v1208_v31, %v8589_v19  ;;  %2505 = vmatpush1.bf16.msra.mxu0 %v5459_v56 }
 0x209   : > { %v6599_v44 = vmax.f32 %v1415_v53, %v1461_v3  ;;  %v4863_v45 = vunpack.i.h.bf16 %v6594_v1  ;;  %v4862_v11 = vunpack.i.l.bf16 %v6594_v1  ;;  %v4868_v34 = vunpack.i.h.bf16 %v6603_v2  ;;  %2506 = vmatprep.subr.bf16.mxu0 %v5464_v8  ;;  %v5476_v1 = vld [vmem:[%s8459_s3 + $0x2ec] ss:$12 sps:$4 sm:$0xff]  }
 0x20a   : > { %v4867_v32 = vunpack.i.l.bf16 %v6603_v2  ;;  %v1006_v12 = vmax.f32 %v6091_v35, %v8590_v21  ;;  %v4853_v3 = vunpack.i.h.bf16 %v6570_v24  ;;  %v1662_v56 = vsel %vm420_vm0, %v1660_v62, %v1661_v60 }
 0x20b   : > { %v1184_v30 = vsel %vm974_vm5, %v4862_v11, %v4863_v45  ;;  %v1753_v27 = vrot.slane %v6599_v44, 2  ;;  %v1666_v31 = vrot.slane %v6599_v44, 1 }
 0x20c   : > { %v1211_v14 = vmax.f32 %v1139_v63, %v1184_v30  ;;  %v6628_v53 = vpop.permute.xlu1 %4895  ;;  %v1256_v11 = vsel %vm500_vm2, %v4867_v32, %v4868_v34  ;;  %v6637_v19 = vpop.permute.xlu0 %4870  ;;  %v5467_v32 = vld [vmem:[%s8459_s3 + $0x1b4] ss:$12 sps:$4 sm:$0xff]   ;;  %v1342_v30 = vmax.f32 %v1280_v59, %v6094_v38  ;;  %v1078_v38 = vmax.f32 %v1006_v12, %v4828_v9  ;;  %2507 = vmatpush1.bf16.msra.mxu0 %v5462_v28  ;;  %v5470_v9 = vld [vmem:[%s8459_s3 + $0x19c] ss:$12 sps:$4 sm:$0xff]  }
 0x20d   : > { %v1754_v35 = vsel %vm460_vm1, %v1748_v50, %v1753_v27  ;;  %v4873_v63 = vunpack.i.h.bf16 %v6637_v19  ;;  %v4872_v24 = vunpack.i.l.bf16 %v6637_v19  ;;  %v1210_v50 = vmax.f32 %v1138_v54, %v4833_v20  ;;  %2508 = vmatprep.subr.bf16.mxu0 %v5467_v32 }
 0x20e   : > { %v1283_v41 = vmax.f32 %v1211_v14, %v1256_v11  ;;  %v6647_v22 = vpack.c.bf16 %v1754_v35, %v1749_v48  ;;  %v1667_v21 = vsel %vm420_vm0, %v1661_v60, %v1666_v31  ;;  %v8591_v11 = vunpack.i.h.bf16 %v6389_v57 }
 0x20f   : > { %v4989_v8 = vpack.i.bf16 %v1667_v21, %v1662_v56  ;;  %v1390_v7 = vsel %vm974_vm5, %v4872_v24, %v4873_v63  ;;  %v979_v54 = vsel %vm974_vm5, %v4852_v0, %v4853_v3  ;;  %v8593_v60 = vunpack.i.h.bf16 %v6500_v25  ;;  %v5468_v25 = vld [vmem:[%s8459_s3 + $0x198] ss:$12 sps:$4 sm:$0xff]  }
 0x210   : > { %v1345_v14 = vmax.f32 %v1283_v41, %v6182_v51  ;;  %2530 = vmatprep.mubr.bf16.mxu0 %v6647_v22  ;;  %v6661_v48 = vpop.permute.xlu1 %4900  ;;  %v1412_v35 = vmax.f32 %v1340_v5, %v8591_v11  ;;  %v6670_v20 = vpop.permute.xlu0 %4875  ;;  %v5465_v51 = vld [vmem:[%s8459_s3 + $0x1b0] ss:$12 sps:$4 sm:$0xff]   ;;  %v8592_v5 = vunpack.i.h.bf16 %v6445_v42  ;;  %v4858_v0 = vunpack.i.h.bf16 %v6561_v23 }
 0x211   : > { %4990 = vrot.lane.b32.xlu0 %v4989_v8, %s5672_s28  ;;  %v4878_v57 = vunpack.i.h.bf16 %v6670_v20  ;;  %v4877_v29 = vunpack.i.l.bf16 %v6670_v20  ;;  %v1282_v12 = vmax.f32 %v1210_v50, %v8593_v60  ;;  %v4857_v28 = vunpack.i.l.bf16 %v6561_v23  ;;  %2509 = vmatpush1.bf16.msra.mxu0 %v5465_v51 }
 0x212   : > { %v1417_v62 = vmax.f32 %v1345_v14, %v1390_v7  ;;  %v1414_v59 = vmax.f32 %v1342_v30, %v8592_v5  ;;  %v1008_v32 = vmax.f32 %v6125_v61, %v4853_v3  ;;  %v1007_v56 = vmax.f32 %v6133_v10, %v979_v54  ;;  %2510 = vmatprep.subr.bf16.mxu0 %v5470_v9  ;;  %v5473_v61 = vld [vmem:[%s8459_s3 + $0x184] ss:$12 sps:$4 sm:$0xff]  }
 0x213   : > { %v1462_v41 = vsel %vm500_vm2, %v4877_v29, %v4878_v57  ;;  %v8594_v23 = vunpack.i.h.bf16 %v6382_v33  ;;  %v1140_v50 = vmax.f32 %v1078_v38, %v6152_v15  ;;  %v8595_v10 = vunpack.i.h.bf16 %v6457_v46 }
 0x214   : > { %v6691_v24 = vpop.permute.xlu1 %4905  ;;  %v6695_v21 = vmax.f32 %v1417_v62, %v1462_v41  ;;  %v4881_v42 = vpop.permute.xlu0 %4880  ;;  %v1344_v11 = vmax.f32 %v1282_v12, %v6130_v4  ;;  %v1051_v15 = vsel %vm500_vm2, %v4857_v28, %v4858_v0  ;;  %v1080_v51 = vmax.f32 %v1008_v32, %v4858_v0  ;;  %v5471_v4 = vld [vmem:[%s8459_s3 + $0x180] ss:$12 sps:$4 sm:$0xff]  }
 0x215   : > { %v6702_v30 = vmax.f32 %v1412_v35, %v8594_v23  ;;  %v4883_v14 = vunpack.i.h.bf16 %v4881_v42  ;;  %v4882_v8 = vunpack.i.l.bf16 %v4881_v42  ;;  %v6710_v3 = vmax.f32 %v1414_v59, %v8595_v10  ;;  %2511 = vmatpush1.bf16.msra.mxu0 %v5468_v25  ;;  %v5474_v23 = vld [vmem:[%s8459_s3 + $0x2e8] ss:$12 sps:$4 sm:$0xff]  }
 0x216   : > { %v6715_v33 = vpack.c.bf16 %v6695_v21, %v6599_v44  ;;  %v1757_v35 = vrot.slane %v6695_v21, 2  ;;  %v1212_v38 = vmax.f32 %v1140_v50, %v4863_v45  ;;  %v1079_v54 = vmax.f32 %v1007_v56, %v1051_v15  ;;  %2512 = vmatprep.subr.bf16.mxu0 %v5473_v61  ;;  %v5479_v61 = vld [vmem:[%s8459_s3 + $0x2d4] ss:$12 sps:$4 sm:$0xff]  }
 0x217   : > { %v4898_v46 = vunpack.i.h.bf16 %v6628_v53  ;;  %v4897_v62 = vunpack.i.l.bf16 %v6628_v53  ;;  %v980_v9 = vsel %vm974_vm5, %v4882_v8, %v4883_v14  ;;  %v1416_v53 = vmax.f32 %v1344_v11, %v4843_v40 }
 0x218   : > { %v4911_v7 = vpop.permute.xlu1 %4910  ;;  %v4886_v29 = vpop.permute.xlu0 %4885  ;;  %v6735_v45 = vsel %vm460_vm1, %v1753_v27, %v1757_v35  ;;  %v1663_v60 = vrot.slane %v6702_v30, 1  ;;  %v1664_v12 = vrot.slane %v6710_v3, 1  ;;  %v6743_v0 = vmax.f32 %v1212_v38, %v4868_v34 }
 0x219   : > { %v4888_v5 = vunpack.i.h.bf16 %v4886_v29  ;;  %v4887_v59 = vunpack.i.l.bf16 %v4886_v29  ;;  %v4913_v28 = vunpack.i.h.bf16 %v4911_v7  ;;  %v4912_v41 = vunpack.i.l.bf16 %v4911_v7  ;;  %2513 = vmatpush1.bf16.msra.mxu0 %v5471_v4 }
 0x21a   : > { %v1257_v42 = vsel %vm500_vm2, %v4897_v62, %v4898_v46  ;;  %v1009_v27 = vmax.f32 %v6141_v16, %v980_v9  ;;  %v1141_v50 = vmax.f32 %v1079_v54, %v6166_v36  ;;  %v1142_v8 = vmax.f32 %v1080_v51, %v6169_v37  ;;  %2514 = vmatprep.subr.bf16.mxu0 %v5476_v1 }
 0x21b   : > { %v1052_v32 = vsel %vm500_vm2, %v4887_v59, %v4888_v5  ;;  %v4903_v16 = vunpack.i.h.bf16 %v6661_v48  ;;  %v4902_v10 = vunpack.i.l.bf16 %v6661_v48  ;;  %v4908_v11 = vunpack.i.h.bf16 %v6691_v24  ;;  %v5477_v59 = vld [vmem:[%s8459_s3 + $0x2d0] ss:$12 sps:$4 sm:$0xff]  }
 0x21c   : > { %v4916_v56 = vpop.permute.xlu1 %4915  ;;  %v4891_v40 = vpop.permute.xlu0 %4890  ;;  %v1081_v15 = vmax.f32 %v1009_v27, %v1052_v32  ;;  %v4907_v38 = vunpack.i.l.bf16 %v6691_v24  ;;  %v981_v7 = vsel %vm974_vm5, %v4912_v41, %v4913_v28  ;;  %v1010_v51 = vmax.f32 %v6143_v17, %v4883_v14  ;;  %v5482_v27 = vld [vmem:[%s8459_s3 + $0x2bc] ss:$12 sps:$4 sm:$0xff]  }
 0x21d   : > { %v4918_v25 = vunpack.i.h.bf16 %v4916_v56  ;;  %v4917_v43 = vunpack.i.l.bf16 %v4916_v56  ;;  %v4893_v2 = vunpack.i.h.bf16 %v4891_v40  ;;  %v4892_v34 = vunpack.i.l.bf16 %v4891_v40  ;;  %2515 = vmatpush2.bf16.msra.mxu0 %v5474_v23 }
 0x21e   : > { %v1012_v62 = vmax.f32 %v6202_v18, %v4913_v28  ;;  %2516 = vmatprep.subr.bf16.mxu0 %v5479_v61  ;;  %v1011_v17 = vmax.f32 %v6200_v13, %v981_v7  ;;  %v1143_v28 = vmax.f32 %v1081_v15, %v6220_v49  ;;  %v1391_v26 = vsel %vm974_vm5, %v4902_v10, %v4903_v16 }
 0x21f   : > { %v1185_v36 = vsel %vm974_vm5, %v4892_v34, %v4893_v2  ;;  %v1214_v54 = vmax.f32 %v1142_v8, %v4893_v2  ;;  %v1053_v29 = vsel %vm500_vm2, %v4917_v43, %v4918_v25  ;;  %v1082_v43 = vmax.f32 %v1010_v51, %v4888_v5  ;;  %v5480_v5 = vld [vmem:[%s8459_s3 + $0x2b8] ss:$12 sps:$4 sm:$0xff]  }
 0x220   : > { %v6762_v37 = vpop.permute.xlu1 %4925  ;;  %v1213_v4 = vmax.f32 %v1141_v50, %v1185_v36  ;;  %v4921_v9 = vpop.permute.xlu0 %4920  ;;  %v6777_v40 = vmax.f32 %v1012_v62, %v4918_v25  ;;  %v1670_v34 = vrot.slane %v6695_v21, 1  ;;  %v6783_v50 = vmax.f32 %v1416_v53, %v4848_v39  ;;  %v8596_v36 = vld [vmem:[#allocation13_spill] sm:$0xff]  ;;  %v8597_v62 = vld [vmem:[#allocation12_spill] sm:$0xff] }
 0x221   : > { %v4928_v1 = vunpack.i.h.bf16 %v6762_v37  ;;  %v4927_v41 = vunpack.i.l.bf16 %v6762_v37  ;;  %v4923_v32 = vunpack.i.h.bf16 %v4921_v9  ;;  %v4922_v56 = vunpack.i.l.bf16 %v4921_v9  ;;  %2517 = vmatpush2.bf16.msra.mxu0 %v5477_v59  ;;  %v5489_v37 = vld [vmem:[%s8459_s3 + $0x270] ss:$12 sps:$4 sm:$0xff]  }
 0x222   : > { %v1285_v14 = vmax.f32 %v1213_v4, %v1257_v42  ;;  %v1286_v18 = vmax.f32 %v1214_v54, %v4898_v46  ;;  %v1083_v13 = vmax.f32 %v1011_v17, %v1053_v29  ;;  %v1346_v25 = vmax.f32 %v6743_v0, %v6175_v47  ;;  %2518 = vmatprep.subr.bf16.mxu0 %v5482_v27  ;;  %v5485_v54 = vld [vmem:[%s8459_s3 + $0x2a4] ss:$12 sps:$4 sm:$0xff]  }
 0x223   : > { %v1186_v23 = vsel %vm974_vm5, %v4922_v56, %v4923_v32  ;;  %v1463_v39 = vsel %vm500_vm2, %v4907_v38, %v4908_v11  ;;  %v1144_v47 = vmax.f32 %v1082_v43, %v6223_v52  ;;  %v1146_v10 = vmax.f32 %v6777_v40, %v8596_v36  ;;  %v5483_v52 = vld [vmem:[%s8459_s3 + $0x2a0] ss:$12 sps:$4 sm:$0xff]  }
 0x224   : > { %v4941_v2 = vpop.permute.xlu1 %4940  ;;  %v1347_v46 = vmax.f32 %v1285_v14, %v6188_v55  ;;  %v1215_v49 = vmax.f32 %v1143_v28, %v1186_v23  ;;  %v6786_v42 = vpop.permute.xlu0 %4930  ;;  %v1258_v55 = vsel %vm500_vm2, %v4927_v41, %v4928_v1  ;;  %v1348_v53 = vmax.f32 %v1286_v18, %v6191_v6  ;;  %v5488_v56 = vld [vmem:[%s8459_s3 + $0x28c] ss:$12 sps:$4 sm:$0xff]  }
 0x225   : > { %v4943_v61 = vunpack.i.h.bf16 %v4941_v2  ;;  %v4942_v15 = vunpack.i.l.bf16 %v4941_v2  ;;  %v1671_v38 = vsel %vm420_vm0, %v1666_v31, %v1670_v34  ;;  %v1145_v29 = vmax.f32 %v1083_v13, %v8597_v62  ;;  %2519 = vmatpush2.bf16.msra.mxu0 %v5480_v5  ;;  %v8598_v27 = vld [vmem:[#allocation10_spill] sm:$0xff]  ;;  %v8599_v23 = vld [vmem:[#allocation7_spill] sm:$0xff] }
 0x226   : > { %v1419_v8 = vmax.f32 %v1347_v46, %v1391_v26  ;;  %v1287_v0 = vmax.f32 %v1215_v49, %v1258_v55  ;;  %v4933_v44 = vunpack.i.h.bf16 %v6786_v42  ;;  %v4932_v31 = vunpack.i.l.bf16 %v6786_v42  ;;  %2520 = vmatprep.subr.bf16.mxu0 %v5485_v54  ;;  %v8600_v49 = vld [vmem:[#allocation6_spill] sm:$0xff] }
 0x227   : > { %v1420_v17 = vmax.f32 %v1348_v53, %v4903_v16  ;;  %v1216_v14 = vmax.f32 %v1144_v47, %v4923_v32  ;;  %v1054_v18 = vsel %vm500_vm2, %v4942_v15, %v4943_v61  ;;  %v5491_v47 = vld [vmem:[%s8459_s3 + $0x274] ss:$12 sps:$4 sm:$0xff]  }
 0x228   : > { %v4946_v7 = vpop.permute.xlu1 %4945  ;;  %v4936_v4 = vpop.permute.xlu0 %4935  ;;  %v6813_v9 = vmax.f32 %v1419_v8, %v1463_v39  ;;  %v1349_v43 = vmax.f32 %v1287_v0, %v8598_v27  ;;  %v5486_v39 = vld [vmem:[%s8459_s3 + $0x288] ss:$12 sps:$4 sm:$0xff]   ;;  %v1392_v55 = vsel %vm974_vm5, %v4932_v31, %v4933_v44  ;;  %v5495_v42 = vld [vmem:[%s8459_s3 + $0x240] ss:$12 sps:$4 sm:$0xff]  }
 0x229   : > { %v4948_v51 = vunpack.i.h.bf16 %v4946_v7  ;;  %v4947_v6 = vunpack.i.l.bf16 %v4946_v7  ;;  %v4938_v59 = vunpack.i.h.bf16 %v4936_v4  ;;  %v4937_v41 = vunpack.i.l.bf16 %v4936_v4  ;;  %2521 = vmatpush2.bf16.msra.mxu0 %v5483_v52  ;;  %v5494_v27 = vld [vmem:[%s8459_s3 + $0x25c] ss:$12 sps:$4 sm:$0xff]  }
 0x22a   : > { %v1674_v28 = vrot.slane %v6813_v9, 1  ;;  %2522 = vmatprep.subr.bf16.mxu0 %v5488_v56  ;;  %v1288_v54 = vmax.f32 %v1216_v14, %v4928_v1  ;;  %v6857_v52 = vmax.f32 %v1346_v25, %v4873_v63  ;;  %v6866_v19 = vmax.f32 %v1420_v17, %v4908_v11  ;;  %v8601_v63 = vld [vmem:[#allocation16_spill] sm:$0xff]  ;;  %v8602_v56 = vld [vmem:[#allocation9_spill] sm:$0xff] }
 0x22b   : > { %v1187_v40 = vsel %vm974_vm5, %v4947_v6, %v4948_v51  ;;  %v1014_v2 = vmax.f32 %v8599_v23, %v4938_v59  ;;  %v982_v13 = vsel %vm974_vm5, %v4937_v41, %v4938_v59  ;;  %v1218_v7 = vmax.f32 %v1146_v10, %v4948_v51  ;;  %v8605_v17 = vld [vmem:[#allocation17_spill] sm:$0xff] }
 0x22c   : > { %v6831_v46 = vpop.permute.xlu1 %4960  ;;  %v1013_v5 = vmax.f32 %v8600_v49, %v982_v13  ;;  %v4951_v32 = vpop.permute.xlu0 %4950  ;;  %v1675_v26 = vsel %vm420_vm0, %v1670_v34, %v1674_v28  ;;  %v1217_v0 = vmax.f32 %v1145_v29, %v1187_v40  ;;  %v1421_v6 = vmax.f32 %v1349_v43, %v1392_v55  ;;  %v8603_v43 = vld [vmem:[#allocation11_spill] sm:$0xff] }
 0x22d   : > { %v4963_v48 = vunpack.i.h.bf16 %v6831_v46  ;;  %v4962_v16 = vunpack.i.l.bf16 %v6831_v46  ;;  %v4953_v53 = vunpack.i.h.bf16 %v4951_v32  ;;  %v4952_v8 = vunpack.i.l.bf16 %v4951_v32  ;;  %2523 = vmatpush2.bf16.msra.mxu0 %v5486_v39  ;;  %v5492_v39 = vld [vmem:[%s8459_s3 + $0x258] ss:$12 sps:$4 sm:$0xff]  }
 0x22e   : > { %v4994_v15 = vpack.i.bf16 %v1675_v26, %v1671_v38  ;;  %v1086_v34 = vmax.f32 %v1014_v2, %v4943_v61  ;;  %v1085_v62 = vmax.f32 %v1013_v5, %v1054_v18  ;;  %2524 = vmatprep.subr.bf16.mxu0 %v5491_v47  ;;  %v1668_v18 = vrot.slane %v6783_v50, 1  ;;  %v8604_v2 = vld [vmem:[#allocation8_spill] sm:$0xff] }
 0x22f   : > { %v1464_v36 = vsel %vm500_vm2, %v4962_v16, %v4963_v48  ;;  %v1259_v4 = vsel %vm500_vm2, %v4952_v8, %v4953_v53  ;;  %v1290_v10 = vmax.f32 %v1218_v7, %v4953_v53  ;;  %v1350_v40 = vmax.f32 %v1288_v54, %v8603_v43 }
 0x230   : > { %4995 = vrot.lane.b32.xlu1 %v4994_v15, %s5672_s28  ;;  %v4966_v38 = vpop.permute.xlu1 %4965  ;;  %v1289_v61 = vmax.f32 %v1217_v0, %v1259_v4  ;;  %v4956_v29 = vpop.permute.xlu0 %4955  ;;  %v6862_v1 = vmax.f32 %v1421_v6, %v1464_v36  ;;  %v1148_v14 = vmax.f32 %v1086_v34, %v8602_v56  ;;  %v1147_v13 = vmax.f32 %v1085_v62, %v8604_v2  ;;  %v8607_v56 = vld [vmem:[#allocation14_spill] sm:$0xff] }
 0x231   : > { %v4968_v51 = vunpack.i.h.bf16 %v4966_v38  ;;  %v4967_v31 = vunpack.i.l.bf16 %v4966_v38  ;;  %v4958_v59 = vunpack.i.h.bf16 %v4956_v29  ;;  %v4957_v41 = vunpack.i.l.bf16 %v4956_v29  ;;  %2525 = vmatpush2.bf16.msra.mxu0 %v5489_v37  ;;  %v8606_v29 = vld [vmem:[#allocation15_spill] sm:$0xff] }
 0x232   : > { %v1351_v25 = vmax.f32 %v1289_v61, %v8601_v63  ;;  %v1352_v49 = vmax.f32 %v1290_v10, %v8605_v17  ;;  %2526 = vmatprep.subr.bf16.mxu0 %v5494_v27  ;;  %v6884_v15 = vpack.c.bf16 %v6862_v1, %v6813_v9  ;;  %v1761_v34 = vrot.slane %v6813_v9, 2 }
 0x233   : > { %v1393_v23 = vsel %vm974_vm5, %v4967_v31, %v4968_v51  ;;  %v1188_v24 = vsel %vm974_vm5, %v4957_v41, %v4958_v59  ;;  %v1220_v5 = vmax.f32 %v1148_v14, %v4958_v59  ;;  %v1422_v36 = vmax.f32 %v1350_v40, %v4933_v44  ;;  %v5497_v44 = vld [vmem:[%s8459_s3 + $0x244] ss:$12 sps:$4 sm:$0xff]  }
 0x234   : > { %v4976_v11 = vpop.permute.xlu1 %4975  ;;  %v4971_v26 = vpop.permute.xlu0 %4970  ;;  %v1219_v55 = vmax.f32 %v1147_v13, %v1188_v24  ;;  %v1423_v47 = vmax.f32 %v1351_v25, %v1393_v23  ;;  %v1678_v4 = vrot.slane %v6862_v1, 1  ;;  %v1424_v38 = vmax.f32 %v1352_v49, %v4968_v51 }
 0x235   : > { %v4978_v16 = vunpack.i.h.bf16 %v4976_v11  ;;  %v4977_v32 = vunpack.i.l.bf16 %v4976_v11  ;;  %v4973_v53 = vunpack.i.h.bf16 %v4971_v26  ;;  %v4972_v8 = vunpack.i.l.bf16 %v4971_v26  ;;  %2527 = vmatpush2.bf16.msra.mxu0 %v5492_v39 }
 0x236   : > { %v1765_v31 = vrot.slane %v6862_v1, 2  ;;  %v5500_v1 = vld [vmem:[%s8459_s3 + $0x34c] ss:$12 sps:$4 sm:$0xff]   ;;  %v1762_v43 = vsel %vm460_vm1, %v1757_v35, %v1761_v34  ;;  %v6911_v40 = vmax.f32 %v1422_v36, %v4963_v48  ;;  %v1679_v2 = vsel %vm420_vm0, %v1674_v28, %v1678_v4  ;;  %2528 = vmatprep.subr.bf16.mxu0 %v5497_v44 }
 0x237   : > { %v1260_v0 = vsel %vm500_vm2, %v4977_v32, %v4978_v16  ;;  %v1292_v7 = vmax.f32 %v1220_v5, %v4978_v16  ;;  %v1465_v6 = vsel %vm500_vm2, %v4972_v8, %v4973_v53  ;;  %v6900_v51 = vmax.f32 %v1424_v38, %v4973_v53  ;;  %2579 = vmatprep.subr.bf16.mxu1 %v5500_v1  ;;  %v5504_v44 = vld [vmem:[%s8459_s3 + $0x318] ss:$12 sps:$4 sm:$0xff]  }
 0x238   : > { %v1291_v54 = vmax.f32 %v1219_v55, %v1260_v0  ;;  %v4986_v62 = vpop.permute.xlu1 %4985  ;;  %v1495_v10 = vmax.f32 %v1423_v47, %v1465_v6  ;;  %v4981_v61 = vpop.permute.xlu0 %4980  ;;  %v6918_v13 = vpack.c.bf16 %v1762_v43, %v6735_v45  ;;  %v1669_v9 = vsel %vm420_vm0, %v1664_v12, %v1668_v18 }
 0x239   : > { %v1354_v37 = vmax.f32 %v1292_v7, %v8606_v29  ;;  %v4988_v59 = vunpack.i.h.bf16 %v4986_v62  ;;  %v4987_v41 = vunpack.i.l.bf16 %v4986_v62  ;;  %v4983_v63 = vunpack.i.h.bf16 %v4981_v61  ;;  %2529 = vmatpush2.bf16.msra.mxu0 %v5495_v42  ;;  %v5506_v42 = vld [vmem:[%s8459_s3 + $0x31c] ss:$12 sps:$4 sm:$0xff]  }
 0x23a   : > { %v4982_v25 = vunpack.i.l.bf16 %v4981_v61  ;;  %v1353_v14 = vmax.f32 %v1291_v54, %v8607_v56  ;;  %v1682_v27 = vrot.slane %v1495_v10, 1  ;;  %v1769_v35 = vrot.slane %v1495_v10, 2  ;;  %v5509_v56 = vld [vmem:[%s8459_s3 + $0x304] ss:$12 sps:$4 sm:$0xff]  }
 0x23b   : > { %v1426_v11 = vmax.f32 %v1354_v37, %v4983_v63  ;;  %v1466_v46 = vsel %vm500_vm2, %v4987_v41, %v4988_v59  ;;  %v1766_v28 = vsel %vm460_vm1, %v1761_v34, %v1765_v31  ;;  %v6931_v45 = vmax.f32 %v6857_v52, %v4878_v57  ;;  %v5498_v41 = vld [vmem:[%s8459_s3 + $0x348] ss:$12 sps:$4 sm:$0xff]  }
 0x23c   : > { %v1394_v23 = vsel %vm974_vm5, %v4982_v25, %v4983_v63  ;;  %v1683_v21 = vsel %vm420_vm0, %v1678_v4, %v1682_v27  ;;  %v1684_v17 = vrot.slane %v6900_v51, 1  ;;  %v1770_v5 = vsel %vm460_vm1, %v1765_v31, %v1769_v35  ;;  %v5503_v63 = vld [vmem:[%s8459_s3 + $0x334] ss:$12 sps:$4 sm:$0xff]   ;;  %v5501_v25 = vld [vmem:[%s8459_s3 + $0x330] ss:$12 sps:$4 sm:$0xff]  }
 0x23d   : > { %v1425_v24 = vmax.f32 %v1353_v14, %v1394_v23  ;;  %v4999_v48 = vpack.i.bf16 %v1683_v21, %v1679_v2  ;;  %v1680_v16 = vrot.slane %v6911_v40, 1  ;;  %v1665_v32 = vsel %vm420_vm0, %v1663_v60, %v1664_v12  ;;  %v5507_v14 = vld [vmem:[%s8459_s3 + $0x300] ss:$12 sps:$4 sm:$0xff]  }
 0x23e   : > { %v1676_v20 = vrot.slane %v6866_v19, 1  ;;  %v6943_v26 = vpack.c.bf16 %v1770_v5, %v1766_v28  ;;  %v6945_v57 = vmax.f32 %v1426_v11, %v4988_v59  ;;  %v5009_v53 = vpack.i.bf16 %v1669_v9, %v1665_v32 }
 0x23f   : > { %v1497_v49 = vmax.f32 %v1425_v24, %v1466_v46  ;;  %5000 = vrot.lane.b32.xlu0 %v4999_v48, %s5672_s28  ;;  %v1672_v8 = vrot.slane %v6931_v45, 1  ;;  %v1685_v0 = vsel %vm420_vm0, %v1680_v16, %v1684_v17 }
 0x240   : > { %v1681_v34 = vsel %vm420_vm0, %v1676_v20, %v1680_v16  ;;  %v1688_v54 = vrot.slane %v6945_v57, 1 }
 0x241   : > { %v1686_v52 = vrot.slane %v1497_v49, 1  ;;  %v6947_v39 = vpack.c.bf16 %v1497_v49, %v1495_v10  ;;  %v1773_v55 = vrot.slane %v1497_v49, 2  ;;  %v1677_v36 = vsel %vm420_vm0, %v1672_v8, %v1676_v20 }
 0x242   : > { %v5019_v6 = vpack.i.bf16 %v1685_v0, %v1681_v34  ;;  %v1673_v62 = vsel %vm420_vm0, %v1668_v18, %v1672_v8  ;;  %v1689_v38 = vsel %vm420_vm0, %v1684_v17, %v1688_v54 }
 0x243   : > { %v1687_v47 = vsel %vm420_vm0, %v1682_v27, %v1686_v52  ;;  %v1774_v7 = vsel %vm460_vm1, %v1769_v35, %v1773_v55  ;;  %5010 = vrot.lane.b32.xlu0 %v5009_v53, %s5672_s28  ;;  %v5014_v4 = vpack.i.bf16 %v1677_v36, %v1673_v62  ;;  %v5024_v10 = vpack.i.bf16 %v1688_v54, %v1689_v38  ;;  %v5510_v27 = vld [vmem:[%s8459_s3 + $0x170] ss:$12 sps:$4 sm:$0xff]  }
 0x244   : > { %v5004_v60 = vpack.i.bf16 %v1686_v52, %v1687_v47  ;;  %v6954_v12 = vpack.c.bf16 %v1773_v55, %v1774_v7 }
 0x246   : > { %5005 = vrot.lane.b32.xlu1 %v5004_v60, %s5672_s28 }
 0x247   : > { %5020 = vrot.lane.b32.xlu0 %v5019_v6, %s5672_s28  ;;  %v1755_v6 = vrot.slane %v6783_v50, 2 }
 0x24a   : > { %5015 = vrot.lane.b32.xlu1 %v5014_v4, %s5672_s28  ;;  %v1751_v4 = vrot.slane %v6710_v3, 2 }
 0x24e   : > { %5025 = vrot.lane.b32.xlu1 %v5024_v10, %s5672_s28  ;;  %v8608_v10 = vmov 0   ;;  %s353_s28 = scalar_lea.vmem [#allocation2], %s4344_s20  ;;  %s5610_s20 = sshll.u32 %s5674_s17, 4  ;;  %s5611_s20 = int_to_ptr.vmem [resolvable:$false] %s5610_s20 }
 0x24f   : > { %s4281_s11 = sshll.u32 %s353_s28, 4  ;;  %s5612_s26 = scalar_lea.vmem %s5611_s20, 64  ;;  %s4282_s11 = int_to_ptr.vmem [resolvable:$true] %s4281_s11 }
 0x250   : > { %s5606_s0 = scalar_lea.vmem %s4282_s11, 32  ;;  %p5613_p0 = scmp.lt.s32.totalorder %s4282_s11, %s5611_s20 }
 0x251   : > { %p5607_p11 = scmp.ne.s32.totalorder %s4282_s11, %s5606_s0  ;;  %p5614_p1 = scmp.lt.s32.totalorder %s5612_s26, %s5606_s0 }
 0x253   : > { %p5608_p12 = pnand %p5607_p11, %p5768_p5  ;;  %p5615_p2 = por %p5614_p1, %p5613_p0 }
 0x255   : > { %p5609_p13 = pneg %p5608_p12 }
 0x257   : > { %p5616_p3 = pnand %p5615_p2, %p5609_p13 }
 0x283   : > { %v4991_v61 = vpop.permute.xlu0 %4990 }
 0x284   : > { %v4993_v29 = vunpack.i.h.bf16 %v4991_v61  ;;  %v4992_v37 = vunpack.i.l.bf16 %v4991_v61 }
 0x286   : > { %v1793_v31 = vsel %vm1722_vm6, %v6702_v30, %v4992_v37  ;;  %v1794_v18 = vsel %vm1722_vm6, %v6710_v3, %v4993_v29  ;;  %v5511_v3 = vld [vmem:[%s8459_s3 + $0xb0] ss:$12 sps:$4 sm:$0xff]  }
 0x287   : > { %v6971_v59 = vpack.c.bf16 %v1794_v18, %v1793_v31  ;;  %v1756_v31 = vsel %vm460_vm1, %v1751_v4, %v1755_v6 }
 0x289   : > { %2457 = vmatprep.mubr.bf16.mxu1 %v6971_v59 }
 0x28a   : > { %2458 = vmatmul.mubr.bf16.vlgmr.msra.gmra.mxu1 %v6553_v58 }
 0x28b   : > { %2580 = vmatpush1.bf16.msra.mxu1 %v5498_v41 }
 0x28c   : > { %2581 = vmatprep.subr.bf16.mxu1 %v5503_v63 }
 0x28f   : > { %2582 = vmatpush1.bf16.msra.mxu1 %v5501_v25 }
 0x290   : > { %2583 = vmatprep.subr.bf16.mxu1 %v5506_v42  ;;  %v1763_v42 = vrot.slane %v6866_v19, 2 }
 0x293   : > { %2584 = vmatpush1.bf16.msra.mxu1 %v5504_v44  ;;  %v1759_v44 = vrot.slane %v6931_v45, 2 }
 0x294   : > { %2585 = vmatprep.subr.bf16.mxu1 %v5509_v56 }
 0x297   : > { %2586 = vmatpush1.bf16.msra.mxu1 %v5507_v14  ;;  %v5513_v14 = vld [vmem:[%s8459_s3 + $0x98] ss:$12 sps:$4 sm:$0xff]  }
 0x298   : > { %4560 = vmatprep.subr.bf16.mxu1 %v5510_v27 }
 0x2a2   : > { %v4996_v1 = vpop.permute.xlu1 %4995 }
 0x2a3   : > { %v4998_v43 = vunpack.i.h.bf16 %v4996_v1  ;;  %v4997_v23 = vunpack.i.l.bf16 %v4996_v1 }
 0x2a5   : > { %v1795_v2 = vsel %vm1722_vm6, %v6783_v50, %v4997_v23  ;;  %v1796_v24 = vsel %vm1722_vm6, %v6931_v45, %v4998_v43  ;;  %v1764_v45 = vsel %vm460_vm1, %v1759_v44, %v1763_v42 }
 0x2a6   : > { %v7003_v11 = vpack.c.bf16 %v1796_v24, %v1795_v2 }
 0x2a8   : > { %2467 = vmatprep.mubr.bf16.mxu1 %v7003_v11 }
 0x2a9   : > { %2468 = vmatmul.mubr.bf16.gmra.mxu1 %v6715_v33 }
 0x2b1   : > { %v5001_v21 = vpop.permute.xlu0 %5000 }
 0x2b2   : > { %v5003_v35 = vunpack.i.h.bf16 %v5001_v21  ;;  %v5002_v46 = vunpack.i.l.bf16 %v5001_v21 }
 0x2b4   : > { %v1797_v48 = vsel %vm1722_vm6, %v6866_v19, %v5002_v46  ;;  %v1798_v9 = vsel %vm1722_vm6, %v6911_v40, %v5003_v35  ;;  %v5514_v19 = vld [vmem:[%s8459_s3 + $0x140] ss:$12 sps:$4 sm:$0xff]  }
 0x2b5   : > { %v5011_v28 = vpop.permute.xlu0 %5010  ;;  %v7011_v17 = vpack.c.bf16 %v1798_v9, %v1797_v48  ;;  %v1767_v48 = vrot.slane %v6911_v40, 2 }
 0x2b6   : > { %v5013_v49 = vunpack.i.h.bf16 %v5011_v28  ;;  %v5012_v5 = vunpack.i.l.bf16 %v5011_v28  ;;  %v5517_v28 = vld [vmem:[%s8459_s3 + $0x68] ss:$12 sps:$4 sm:$0xff]  }
 0x2b7   : > { %2477 = vmatprep.mubr.bf16.mxu1 %v7011_v17  ;;  %v1768_v40 = vsel %vm460_vm1, %v1763_v42, %v1767_v48 }
 0x2b8   : > { %v5006_v16 = vpop.permute.xlu1 %5005  ;;  %v1723_v32 = vsel %vm1722_vm6, %v4992_v37, %v5012_v5  ;;  %v1724_v20 = vsel %vm1722_vm6, %v4993_v29, %v5013_v49  ;;  %2478 = vmatmul.mubr.bf16.gmra.mxu1 %v6884_v15  ;;  %v1750_v37 = vrot.slane %v6702_v30, 2  ;;  %v5512_v30 = vld [vmem:[%s8459_s3 + $0x158] ss:$12 sps:$4 sm:$0xff]   ;;  %v5518_v49 = vld [vmem:[%s8459_s3 + $0x110] ss:$12 sps:$4 sm:$0xff]  }
 0x2b9   : > { %v5008_v52 = vunpack.i.h.bf16 %v5006_v16  ;;  %v5007_v55 = vunpack.i.l.bf16 %v5006_v16  ;;  %v7017_v53 = vpack.c.bf16 %v1724_v20, %v1723_v32  ;;  %v5021_v62 = vpop.permute.xlu0 %5020  ;;  %v5519_v5 = vld [vmem:[%s8459_s3 + $0x50] ss:$12 sps:$4 sm:$0xff]   ;;  %v5520_v32 = vld [vmem:[%s8459_s3 + $0xf8] ss:$12 sps:$4 sm:$0xff]   ;;  %v1775_v20 = vrot.slane %v6945_v57, 2 }
 0x2ba   : > { %v5023_v61 = vunpack.i.h.bf16 %v5021_v62  ;;  %v5022_v29 = vunpack.i.l.bf16 %v5021_v62  ;;  %v1752_v50 = vsel %vm460_vm1, %v1750_v37, %v1751_v4  ;;  %v5531_v62 = vld [vmem:[%s8459_s3 + $0x200] ss:$12 sps:$4 sm:$0xff]   ;;  %v5534_v4 = vld [vmem:[%s8459_s3 + $0x290] ss:$12 sps:$4 sm:$0xff]  }
 0x2bb   : > { %v1799_v8 = vsel %vm1722_vm6, %v6900_v51, %v5007_v55  ;;  %v1800_v47 = vsel %vm1722_vm6, %v6945_v57, %v5008_v52  ;;  %2531 = vmatmul.mubr.bf16.vlgmr.msra.gmra.mxu0 %v7017_v53  ;;  %v7044_v18 = vpack.c.bf16 %v1756_v31, %v1752_v50  ;;  %v5523_v57 = vld [vmem:[%s8459_s3 + $0x20] ss:$12 sps:$4 sm:$0xff]   ;;  %v5542_v31 = vld [vmem:[%s8459_s3 + $0x350] ss:$12 sps:$4 sm:$0xff]   ;;  %v5543_v50 = vld [vmem:[%s8459_s3 + $0x338] ss:$12 sps:$4 sm:$0xff]  }
 0x2bc   : > { %v5016_v0 = vpop.permute.xlu1 %5015  ;;  %v7024_v7 = vpack.c.bf16 %v1800_v47, %v1799_v8  ;;  %2540 = vmatprep.mubr.bf16.mxu0 %v6918_v13  ;;  %v1727_v41 = vsel %vm1722_vm6, %v5002_v46, %v5022_v29  ;;  %v1728_v63 = vsel %vm1722_vm6, %v5003_v35, %v5023_v61  ;;  %v5516_v35 = vld [vmem:[%s8459_s3 + $0x128] ss:$12 sps:$4 sm:$0xff]   ;;  %v1771_v46 = vrot.slane %v6900_v51, 2  ;;  %v5535_v61 = vld [vmem:[%s8459_s3 + $0x1d0] ss:$12 sps:$4 sm:$0xff]  }
 0x2bd   : > { %v5018_v60 = vunpack.i.h.bf16 %v5016_v0  ;;  %v5017_v34 = vunpack.i.l.bf16 %v5016_v0  ;;  %v7055_v56 = vpack.c.bf16 %v1728_v63, %v1727_v41  ;;  %v5524_v0 = vld [vmem:[%s8459_s3 + $0xc8] ss:$12 sps:$4 sm:$0xff]   ;;  %v5538_v29 = vld [vmem:[%s8459_s3 + $0x260] ss:$12 sps:$4 sm:$0xff]  }
 0x2be   : > { %2487 = vmatprep.mubr.bf16.mxu1 %v7024_v7  ;;  %v1772_v51 = vsel %vm460_vm1, %v1767_v48, %v1771_v46  ;;  %v1776_v8 = vsel %vm460_vm1, %v1771_v46, %v1775_v20  ;;  %v5539_v37 = vld [vmem:[%s8459_s3 + $0x1a0] ss:$12 sps:$4 sm:$0xff]  }
 0x2bf   : > { %v1725_v36 = vsel %vm1722_vm6, %v4997_v23, %v5017_v34  ;;  %v1726_v54 = vsel %vm1722_vm6, %v4998_v43, %v5018_v60  ;;  %v1760_v43 = vsel %vm460_vm1, %v1755_v6, %v1759_v44  ;;  %v5515_v23 = vld [vmem:[%s8459_s3 + $0x80] ss:$12 sps:$4 sm:$0xff]   ;;  %v7097_v16 = vpack.c.bf16 %v1772_v51, %v1768_v40  ;;  %v5525_v60 = vld [vmem:[%s8459_s3 + $0x8] ss:$12 sps:$4 sm:$0xff]   ;;  %v5526_v34 = vld [vmem:[%s8459_s3 + $0x2f0] ss:$12 sps:$4 sm:$0xff]  }
 0x2c0   : > { %2488 = vmatmul.mubr.bf16.gmra.mxu1 %v6947_v39  ;;  %v7033_v38 = vpack.c.bf16 %v1726_v54, %v1725_v36  ;;  %v5026_v25 = vpop.permute.xlu1 %5025  ;;  %v7071_v2 = vpack.c.bf16 %v1764_v45, %v1760_v43  ;;  %v7116_v47 = vpack.c.bf16 %v1775_v20, %v1776_v8  ;;  %v5527_v36 = vld [vmem:[%s8459_s3 + $0x230] ss:$12 sps:$4 sm:$0xff]   ;;  %v5528_v54 = vld [vmem:[%s8459_s3 + $0x2d8] ss:$12 sps:$4 sm:$0xff]   ;;  %v5530_v6 = vld [vmem:[%s8459_s3 + $0x2c0] ss:$12 sps:$4 sm:$0xff]  }
 0x2c1   : > { %2603 = vmatprep.mubr.bf16.mxu1 %v8608_v10  ;;  %v5028_v27 = vunpack.i.h.bf16 %v5026_v25  ;;  %v5027_v1 = vunpack.i.l.bf16 %v5026_v25 }
 0x2c3   : > { %2541 = vmatmul.mubr.bf16.gmra.mxu0 %v7033_v38  ;;  %v1729_v24 = vsel %vm1722_vm6, %v5007_v55, %v5027_v1  ;;  %v1730_v21 = vsel %vm1722_vm6, %v5008_v52, %v5028_v27  ;;  %v5521_v52 = vld [vmem:[%s8459_s3 + $0x38] ss:$12 sps:$4 sm:$0xff]   ;;  %v5522_v55 = vld [vmem:[%s8459_s3 + $0xe0] ss:$12 sps:$4 sm:$0xff]  }
 0x2c4   : > { %2550 = vmatprep.mubr.bf16.mxu0 %v6943_v26  ;;  %v7082_v9 = vpack.c.bf16 %v1730_v21, %v1729_v24 }
 0x2c8   : > { %4501 = vmatmul.mubr.msk.bf16.vlgmr.msra.gmra.mxu1 %vm1722_vm6, %v7044_v18 }
 0x2c9   : > { %4561 = vmatpush3.bf16.msra.mxu1 %v5511_v3  ;;  %2613 = vmatprep.mubr.bf16.mxu1 %v8608_v10 }
 0x2ca   : > { %4562 = vmatprep.subr.bf16.mxu1 %v5512_v30 }
 0x2cb   : > { %2551 = vmatmul.mubr.bf16.gmra.mxu0 %v7055_v56 }
 0x2cc   : > { %2560 = vmatprep.mubr.bf16.mxu0 %v6954_v12 }
 0x2cd   : > { %4563 = vmatpush3.bf16.msra.mxu1 %v5513_v14 }
 0x2ce   : > { %4564 = vmatprep.subr.bf16.mxu1 %v5514_v19 }
 0x2d0   : > { %4502 = vmatmul.mubr.msk.bf16.gmra.mxu1 %vm1722_vm6, %v7071_v2 }
 0x2d1   : > { %4565 = vmatpush3.bf16.msra.mxu1 %v5515_v23  ;;  %2623 = vmatprep.mubr.bf16.mxu1 %v8608_v10 }
 0x2d2   : > { %4566 = vmatprep.subr.bf16.mxu1 %v5516_v35 }
 0x2d3   : > { %2561 = vmatmul.mubr.bf16.gmra.mxu0 %v7082_v9 }
 0x2d5   : > { %4567 = vmatpush3.bf16.msra.mxu1 %v5517_v28 }
 0x2d6   : > { %4568 = vmatprep.subr.bf16.mxu1 %v5518_v49 }
 0x2d8   : > { %4503 = vmatmul.mubr.msk.bf16.gmra.mxu1 %vm1722_vm6, %v7097_v16 }
 0x2d9   : > { %4569 = vmatpush3.bf16.msra.mxu1 %v5519_v5  ;;  %2633 = vmatprep.mubr.bf16.mxu1 %v8608_v10 }
 0x2da   : > { %4570 = vmatprep.subr.bf16.mxu1 %v5520_v32 }
 0x2dd   : > { %4571 = vmatpush3.bf16.msra.mxu1 %v5521_v52 }
 0x2de   : > { %4572 = vmatprep.subr.bf16.mxu1 %v5522_v55 }
 0x2e0   : > { %4504 = vmatmul.mubr.msk.bf16.gmra.mxu1 %vm1722_vm6, %v7116_v47 }
 0x2e1   : > { %4573 = vmatpush3.bf16.msra.mxu1 %v5523_v57  ;;  %2676 = vmatprep.mubr.bf16.mxu1 %v6971_v59  ;;  %v5529_v59 = vld [vmem:[%s8459_s3 + $0x218] ss:$12 sps:$4 sm:$0xff]  }
 0x2e2   : > { %4574 = vmatprep.subr.bf16.mxu1 %v5524_v0 }
 0x2e5   : > { %4575 = vmatpush3.bf16.msra.mxu1 %v5525_v60 }
 0x2e6   : > { %4600 = vmatprep.subr.bf16.mxu1 %v5526_v34 }
 0x2e8   : > { %2677 = vmatmul.mubr.bf16.vlgmr.msra.gmra.mxu1 %v6553_v58  ;;  %v5532_v58 = vld [vmem:[%s8459_s3 + $0x2a8] ss:$12 sps:$4 sm:$0xff]  }
 0x2e9   : > { %2684 = vmatprep.mubr.bf16.mxu1 %v7003_v11  ;;  %4601 = vmatpush3.bf16.msra.mxu1 %v5527_v36  ;;  %v5533_v11 = vld [vmem:[%s8459_s3 + $0x1e8] ss:$12 sps:$4 sm:$0xff]  }
 0x2ea   : > { %4602 = vmatprep.subr.bf16.mxu1 %v5528_v54 }
 0x2ed   : > { %4603 = vmatpush3.bf16.msra.mxu1 %v5529_v59 }
 0x2ee   : > { %4604 = vmatprep.subr.bf16.mxu1 %v5530_v6 }
 0x2f0   : > { %2685 = vmatmul.mubr.bf16.gmra.mxu1 %v6715_v33  ;;  %v5536_v33 = vld [vmem:[%s8459_s3 + $0x278] ss:$12 sps:$4 sm:$0xff]  }
 0x2f1   : > { %2692 = vmatprep.mubr.bf16.mxu1 %v7011_v17  ;;  %4605 = vmatpush3.bf16.msra.mxu1 %v5531_v62  ;;  %v5537_v17 = vld [vmem:[%s8459_s3 + $0x1b8] ss:$12 sps:$4 sm:$0xff]  }
 0x2f2   : > { %4606 = vmatprep.subr.bf16.mxu1 %v5532_v58 }
 0x2f5   : > { %4607 = vmatpush3.bf16.msra.mxu1 %v5533_v11 }
 0x2f6   : > { %4608 = vmatprep.subr.bf16.mxu1 %v5534_v4 }
 0x2f8   : > { %2693 = vmatmul.mubr.bf16.gmra.mxu1 %v6884_v15  ;;  %v5540_v15 = vld [vmem:[%s8459_s3 + $0x248] ss:$12 sps:$4 sm:$0xff]  }
 0x2f9   : > { %2700 = vmatprep.mubr.bf16.mxu1 %v7024_v7  ;;  %4609 = vmatpush3.bf16.msra.mxu1 %v5535_v61  ;;  %v5541_v7 = vld [vmem:[%s8459_s3 + $0x188] ss:$12 sps:$4 sm:$0xff]  }
 0x2fa   : > { %4610 = vmatprep.subr.bf16.mxu1 %v5536_v33 }
 0x2fd   : > { %4611 = vmatpush3.bf16.msra.mxu1 %v5537_v17 }
 0x2fe   : > { %4612 = vmatprep.subr.bf16.mxu1 %v5538_v29 }
 0x300   : > { %2701 = vmatmul.mubr.bf16.gmra.mxu1 %v6947_v39  ;;  %v5545_v39 = vld [vmem:[%s8459_s3 + $0x308] ss:$12 sps:$4 sm:$0xff]  }
 0x301   : > { %4613 = vmatpush3.bf16.msra.mxu1 %v5539_v37  ;;  %2741 = vmatprep.mubr.bf16.mxu1 %v6647_v22  ;;  %v5544_v22 = vld [vmem:[%s8459_s3 + $0x320] ss:$12 sps:$4 sm:$0xff]  }
 0x302   : > { %4614 = vmatprep.subr.bf16.mxu1 %v5540_v15 }
 0x305   : > { %4615 = vmatpush3.bf16.msra.mxu1 %v5541_v7 }
 0x306   : > { %4648 = vmatprep.subr.bf16.mxu1 %v5542_v31 }
 0x308   : > { %2742 = vmatmul.mubr.bf16.vlgmr.msra.gmra.mxu1 %v7017_v53 }
 0x309   : > { %2749 = vmatprep.mubr.bf16.mxu1 %v6918_v13  ;;  %4649 = vmatpush3.bf16.msra.mxu1 %v5542_v31  ;;  %v7214_v13 = vld [vmem:[%s8460_s4] sm:$0x7] }
 0x30a   : > { %4650 = vmatprep.subr.bf16.mxu1 %v5543_v50 }
 0x30d   : > { %4651 = vmatpush3.bf16.msra.mxu1 %v5543_v50 }
 0x30e   : > { %4652 = vmatprep.subr.bf16.mxu1 %v5544_v22 }
 0x310   : > { %2750 = vmatmul.mubr.bf16.gmra.mxu1 %v7033_v38 }
 0x311   : > { %2757 = vmatprep.mubr.bf16.mxu1 %v6943_v26  ;;  %4653 = vmatpush3.bf16.msra.mxu1 %v5544_v22  ;;  %v8609_v26 = vld [vmem:[#allocation5_spill] sm:$0xff] }
 0x312   : > { %4654 = vmatprep.subr.bf16.mxu1 %v5545_v39  ;;  %v8611_v28 = vsub.s32 0, %v8609_v26 }
 0x314   : > { %v7238_v49 = vrot.slane %v7214_v13, %v8611_v28 }
 0x315   : > { %4655 = vmatpush3.bf16.msra.mxu1 %v5545_v39 }
 0x318   : > { %2758 = vmatmul.mubr.bf16.gmra.mxu1 %v7055_v56 }
 0x319   : > { %2765 = vmatprep.mubr.bf16.mxu1 %v6954_v12  ;;  %v8610_v12 = vsub.s32 1, %v8609_v26 }
 0x31b   : > { %v7219_v53 = vrot.slane %v7214_v13, %v8610_v12 }
 0x320   : > { %2766 = vmatmul.mubr.bf16.gmra.mxu1 %v7082_v9 }
 0x321   : > { %4656 = vmatprep.mubr.msk.bf16.mxu1 %vm1722_vm6, %v7044_v18 }
 0x328   : > { %4657 = vmatmul.mubr.msk.bf16.vlgmr.msra.gmra.mxu1 %vm1722_vm6, %v7071_v2 }
 0x329   : > { %4660 = vmatprep.mubr.msk.bf16.mxu1 %vm1722_vm6, %v7097_v16 }
 0x330   : > { %4661 = vmatmul.mubr.msk.bf16.gmra.mxu1 %vm1722_vm6, %v7116_v47 }
 0x331   : > { %4016 = vmatprep.mubr.bf16.mxu1 %v8608_v10 }
 0x34a   : > { %v2459_v38 = vpop.f32.mrf.mxu1 }
 0x34b   : > { %v2460_v52 = vadd.f32 %v2459_v38, %v7238_v49 }
 0x34c   : > { %v2461_v3 = vpop.f32.mrf.mxu1 }
 0x34d   : > { %v2462_v18 = vadd.f32 %v2461_v3, %v7219_v53 }
 0x34e   : > { %v2463_v41 = vpop.f32.mrf.mxu1 }
 0x34f   : > { %v2464_v57 = vadd.f32 %v2463_v41, %v7238_v49 }
 0x350   : > { %v2465_v63 = vpop.f32.mrf.mxu1 }
 0x351   : > { %v2466_v30 = vadd.f32 %v2465_v63, %v7219_v53 }
 0x369   : > { %v2469_v25 = vpop.f32.mrf.mxu1 }
 0x36a   : > { %v2470_v58 = vadd.f32 %v2469_v25, %v7238_v49 }
 0x36b   : > { %v2471_v42 = vpop.f32.mrf.mxu1 }
 0x36c   : > { %v2472_v44 = vadd.f32 %v2471_v42, %v7219_v53 }
 0x36d   : > { %v2473_v56 = vpop.f32.mrf.mxu1 }
 0x36e   : > { %v2474_v31 = vadd.f32 %v2473_v56, %v7238_v49 }
 0x36f   : > { %v2475_v14 = vpop.f32.mrf.mxu1 }
 0x370   : > { %v2476_v27 = vadd.f32 %v2475_v14, %v7219_v53 }
 0x378   : > { %v2479_v1 = vpop.f32.mrf.mxu1 }
 0x37a   : > { %v7225_v19 = vpop.f32.mrf.mxu1 }
 0x37b   : > { %v2532_v45 = vpop.f32.mrf.mxu0 }
 0x37c   : > { %v7227_v43 = vpop.f32.mrf.mxu1  ;;  %v2533_v47 = vadd.f32 %v2532_v45, %v2460_v52 }
 0x37d   : > { %v2534_v23 = vpop.f32.mrf.mxu0 }
 0x37e   : > { %v2535_v2 = vadd.f32 %v2534_v23, %v2462_v18  ;;  %v7229_v24 = vpop.f32.mrf.mxu1 }
 0x37f   : > { %v2536_v21 = vpop.f32.mrf.mxu0 }
 0x380   : > { %v7231_v35 = vpop.f32.mrf.mxu1  ;;  %v2537_v36 = vadd.f32 %v2536_v21, %v2464_v57  ;;  %v2482_v57 = vadd.f32 %v7225_v19, %v7219_v53 }
 0x381   : > { %v2538_v46 = vpop.f32.mrf.mxu0 }
 0x382   : > { %v2539_v48 = vadd.f32 %v2538_v46, %v2466_v30  ;;  %v7233_v9 = vpop.f32.mrf.mxu1  ;;  %v2480_v30 = vadd.f32 %v2479_v1, %v7238_v49 }
 0x383   : > { %v2542_v51 = vpop.f32.mrf.mxu0 }
 0x384   : > { %v2493_v40 = vpop.f32.mrf.mxu1  ;;  %v2543_v33 = vadd.f32 %v2542_v51, %v2470_v58 }
 0x385   : > { %v2494_v5 = vadd.f32 %v2493_v40, %v7238_v49  ;;  %v2544_v16 = vpop.f32.mrf.mxu0  ;;  %v2484_v40 = vadd.f32 %v7227_v43, %v7238_v49 }
 0x386   : > { %v2545_v32 = vadd.f32 %v2544_v16, %v2472_v44  ;;  %v7241_v20 = vpop.f32.mrf.mxu1 }
 0x387   : > { %v2546_v55 = vpop.f32.mrf.mxu0 }
 0x388   : > { %v2605_v8 = vpop.f32.mrf.mxu1  ;;  %v2547_v38 = vadd.f32 %v2546_v55, %v2474_v31  ;;  %v2486_v55 = vadd.f32 %v7229_v24, %v7219_v53 }
 0x389   : > { %v2548_v0 = vpop.f32.mrf.mxu0  ;;  %v2606_v54 = vadd.f32 %v2605_v8, %v2533_v47 }
 0x38a   : > { %v2549_v60 = vadd.f32 %v2548_v0, %v2476_v27  ;;  %v2607_v34 = vpop.f32.mrf.mxu1 }
 0x38b   : > { %v7245_v59 = vadd.f32 %v2607_v34, %v2535_v2  ;;  %v2552_v6 = vpop.f32.mrf.mxu0  ;;  %v7248_v17 = vmax.f32 %v2606_v54, 0.0 }
 0x38c   : > { %v2609_v62 = vpop.f32.mrf.mxu1  ;;  %v2553_v27 = vadd.f32 %v2552_v6, %v2480_v30 }
 0x38d   : > { %v2610_v11 = vadd.f32 %v2609_v62, %v2537_v36  ;;  %v2554_v4 = vpop.f32.mrf.mxu0  ;;  %v3083_v56 = vrot.slane %v7248_v17, 1  ;;  %v3366_v36 = vrot.slane %v7248_v17, 2 }
 0x38e   : > { %v2611_v61 = vpop.f32.mrf.mxu1  ;;  %v2555_v62 = vadd.f32 %v2554_v4, %v2482_v57 }
 0x38f   : > { %v7250_v29 = vmax.f32 %v2610_v11, 0.0  ;;  %v7252_v37 = vadd.f32 %v2611_v61, %v2539_v48  ;;  %v2556_v15 = vpop.f32.mrf.mxu0 }
 0x390   : > { %v2615_v7 = vpop.f32.mrf.mxu1  ;;  %v2557_v47 = vadd.f32 %v2556_v15, %v2484_v40 }
 0x391   : > { %v2616_v50 = vadd.f32 %v2615_v7, %v2543_v33  ;;  %v2558_v22 = vpop.f32.mrf.mxu0  ;;  %v5034_v39 = vpack.i.bf16 %v7250_v29, %v7248_v17  ;;  %v3084_v63 = vrot.slane %v7250_v29, 1 }
 0x392   : > { %v2617_v12 = vpop.f32.mrf.mxu1  ;;  %v2559_v34 = vadd.f32 %v2558_v22, %v2486_v55 }
 0x393   : > { %v7257_v3 = vmax.f32 %v2616_v50, 0.0  ;;  %v7259_v18 = vadd.f32 %v2617_v12, %v2545_v32  ;;  %v2562_v41 = vpop.f32.mrf.mxu0  ;;  %5035 = vrot.lane.b32.xlu1 %v5034_v39, %s8612_s12  ;;  %5030 = vrot.lane.b32.xlu0 %v5034_v39, %s5669_s21  ;;  %v7274_v46 = vsel %vm420_vm0, %v3083_v56, %v3084_v63 }
 0x394   : > { %v2619_v25 = vpop.f32.mrf.mxu1 }
 0x395   : > { %v2620_v42 = vadd.f32 %v2619_v25, %v2547_v38  ;;  %v7265_v44 = vpop.f32.mrf.mxu0  ;;  %v3092_v14 = vrot.slane %v7257_v3, 1  ;;  %v3375_v52 = vrot.slane %v7257_v3, 2 }
 0x396   : > { %v2621_v45 = vpop.f32.mrf.mxu1 }
 0x397   : > { %v7269_v23 = vmax.f32 %v2620_v42, 0.0  ;;  %v7271_v2 = vadd.f32 %v2621_v45, %v2549_v60  ;;  %v2566_v21 = vpop.f32.mrf.mxu0  ;;  %v7277_v1 = vsel %vm420_vm0, %v3084_v63, %v3092_v14  ;;  %v2490_v60 = vadd.f32 %v7231_v35, %v7238_v49 }
 0x398   : > { %v2567_v48 = vadd.f32 %v2566_v21, %v2494_v5  ;;  %v2625_v28 = vpop.f32.mrf.mxu1  ;;  %v5039_v51 = vpack.i.bf16 %v7277_v1, %v7274_v46  ;;  %v3367_v5 = vrot.slane %v7250_v29, 2  ;;  %v2492_v63 = vadd.f32 %v7233_v9, %v7219_v53 }
 0x399   : > { %v2626_v16 = vadd.f32 %v2625_v28, %v2553_v27  ;;  %v5059_v32 = vpack.i.bf16 %v7269_v23, %v7257_v3  ;;  %v3098_v43 = vrot.slane %v7269_v23, 1  ;;  %v2563_v58 = vadd.f32 %v2562_v41, %v2490_v60  ;;  %v2568_v30 = vpop.f32.mrf.mxu0 }
 0x39a   : > { %v2627_v8 = vpop.f32.mrf.mxu1  ;;  %5040 = vrot.lane.b32.xlu0 %v5039_v51, %s5669_s21  ;;  %v7302_v6 = vsel %vm460_vm1, %v3367_v5, %v3375_v52  ;;  %v7307_v61 = vsel %vm460_vm1, %v3366_v36, %v3367_v5  ;;  %v3381_v9 = vrot.slane %v7269_v23, 2  ;;  %v2565_v40 = vadd.f32 %v7265_v44, %v2492_v63 }
 0x39b   : > { %v7292_v0 = vmax.f32 %v2626_v16, 0.0  ;;  %5060 = vrot.lane.b32.xlu1 %v5059_v32, %s5669_s21  ;;  %8614 = vst [vmem:[#allocation12_spill] sm:$0xff] %v7302_v6  ;;  %8615 = vst [vmem:[#allocation10_spill] sm:$0xff] %v7307_v61  ;;  %v7313_v33 = vsel %vm420_vm0, %v3092_v14, %v3098_v43  ;;  %v2628_v4 = vadd.f32 %v2627_v8, %v2555_v62 }
 0x39c   : > { %v2629_v24 = vpop.f32.mrf.mxu1  ;;  %v5049_v31 = vpack.i.bf16 %v7302_v6, %v7307_v61  ;;  %v2496_v14 = vadd.f32 %v7241_v20, %v7219_v53 }
 0x39d   : > { %8613 = vst [vmem:[#allocation13_spill] sm:$0xff] %v7292_v0  ;;  %v2630_v54 = vadd.f32 %v2629_v24, %v2557_v47  ;;  %v3104_v19 = vrot.slane %v7292_v0, 1  ;;  %v3387_v38 = vrot.slane %v7292_v0, 2  ;;  %v7332_v25 = vmax.f32 %v2628_v4, 0.0 }
 0x39e   : > { %v2631_v11 = vpop.f32.mrf.mxu1  ;;  %5045 = vrot.lane.b32.xlu0 %v5039_v51, %s8612_s12  ;;  %v2569_v16 = vadd.f32 %v2568_v30, %v2496_v14  ;;  %v7375_v24 = vsel %vm460_vm1, %v3375_v52, %v3381_v9 }
 0x39f   : > { %v7309_v35 = vmax.f32 %v2630_v54, 0.0  ;;  %v2632_v49 = vadd.f32 %v2631_v11, %v2559_v34  ;;  %5065 = vrot.lane.b32.xlu1 %v5059_v32, %s8612_s12  ;;  %v7318_v15 = vsel %vm420_vm0, %v3098_v43, %v3104_v19  ;;  %8618 = vst [vmem:[#allocation16_spill] sm:$0xff] %v7332_v25  ;;  %v7351_v20 = vsel %vm460_vm1, %v3381_v9, %v3387_v38 }
 0x3a0   : > { %v2635_v7 = vpop.f32.mrf.mxu1  ;;  %v5069_v50 = vpack.i.bf16 %v7318_v15, %v7313_v33  ;;  %8620 = vst [vmem:[#allocation11_spill] sm:$0xff] %v7351_v20  ;;  %v5079_v54 = vpack.i.bf16 %v7351_v20, %v7375_v24 }
 0x3a1   : > { %8616 = vst [vmem:[#allocation7_spill] sm:$0xff] %v7309_v35  ;;  %v2636_v22 = vadd.f32 %v2635_v7, %v2563_v58  ;;  %v7324_v39 = vmax.f32 %v2632_v49, 0.0  ;;  %v3393_v41 = vrot.slane %v7309_v35, 2  ;;  %v5089_v21 = vpack.i.bf16 %v7309_v35, %v7292_v0 }
 0x3a2   : > { %v2637_v12 = vpop.f32.mrf.mxu1  ;;  %5050 = vrot.lane.b32.xlu0 %v5049_v31, %s5669_s21  ;;  %v3110_v62 = vrot.slane %v7309_v35, 1 }
 0x3a3   : > { %8617 = vst [vmem:[#allocation6_spill] sm:$0xff] %v7324_v39  ;;  %5070 = vrot.lane.b32.xlu1 %v5069_v50, %s5669_s21  ;;  %v7335_v56 = vsel %vm460_vm1, %v3387_v38, %v3393_v41  ;;  %v7339_v27 = vmax.f32 %v2636_v22, 0.0  ;;  %v8494_v51 = vrot.slane %v7324_v39, 2  ;;  %v2638_v60 = vadd.f32 %v2637_v12, %v2565_v40 }
 0x3a4   : > { %v2639_v42 = vpop.f32.mrf.mxu1  ;;  %8619 = vst [vmem:[#allocation9_spill] sm:$0xff] %v7335_v56  ;;  %v7398_v22 = vsel %vm420_vm0, %v3104_v19, %v3110_v62 }
 0x3a5   : > { %v2640_v45 = vadd.f32 %v2639_v42, %v2567_v48  ;;  %v8496_v48 = vrot.slane %v7332_v25, 2  ;;  %v3116_v55 = vrot.slane %v7339_v27, 1  ;;  %v3399_v43 = vrot.slane %v7339_v27, 2  ;;  %8626 = vst [vmem:[#allocation18_spill] sm:$0xff] %v7398_v22 }
 0x3a6   : > { %v2641_v28 = vpop.f32.mrf.mxu1  ;;  %5055 = vrot.lane.b32.xlu0 %v5049_v31, %s8612_s12  ;;  %v7390_v7 = vmax.f32 %v2638_v60, 0.0 }
 0x3a7   : > { %v2860_v32 = vmax.f32 %v2640_v45, 0.0  ;;  %5090 = vrot.lane.b32.xlu1 %v5089_v21, %s5669_s21  ;;  %v7355_v57 = vadd.f32 %v2641_v28, %v2569_v16  ;;  %v7365_v44 = vsel %vm460_vm1, %v8496_v48, %v8494_v51  ;;  %v7388_v52 = vsel %vm420_vm0, %v3110_v62, %v3116_v55 }
 0x3a8   : > { %v7348_v53 = vpop.f32.mrf.mxu1  ;;  %8621 = vst [vmem:[#allocation8_spill] sm:$0xff] %v7365_v44  ;;  %v5104_v49 = vpack.i.bf16 %v7365_v44, %v7339_v27  ;;  %8624 = vst [vmem:[#allocation14_spill] sm:$0xff] %v7388_v52  ;;  %v5109_v38 = vpack.i.bf16 %v7388_v52, %v7398_v22  ;;  %v8495_v30 = vrot.slane %v7390_v7, 1  ;;  %v7415_v45 = vsel %vm460_vm1, %v3393_v41, %v3399_v43 }
 0x3a9   : > { %v3122_v8 = vrot.slane %v2860_v32, 1  ;;  %v3405_v5 = vrot.slane %v2860_v32, 2  ;;  %v8493_v11 = vmax.f32 %v7355_v57, 0.0  ;;  %8625 = vst [vmem:[#allocation5_spill] sm:$0xff] %v7390_v7  ;;  %8628 = vst [vmem:[#allocation20_spill] sm:$0xff] %v7415_v45 }
 0x3aa   : > { %v7357_v47 = vpop.f32.mrf.mxu1  ;;  %5075 = vrot.lane.b32.xlu0 %v5069_v50, %s8612_s12 }
 0x3ab   : > { %v7369_v34 = vsel %vm420_vm0, %v3116_v55, %v3122_v8  ;;  %5095 = vrot.lane.b32.xlu1 %v5089_v21, %s8612_s12  ;;  %v7381_v58 = vsel %vm460_vm1, %v3399_v43, %v3405_v5  ;;  %v3124_v12 = vrot.slane %v8493_v11, 1 }
 0x3ac   : > { %8622 = vst [vmem:[#allocation17_spill] sm:$0xff] %v7369_v34  ;;  %v4579_v36 = vpop.f32.mrf.mxu1  ;;  %8623 = vst [vmem:[#allocation15_spill] sm:$0xff] %v7381_v58 }
 0x3ad   : > { %v7410_v14 = vsel %vm420_vm0, %v8495_v30, %v3124_v12  ;;  %v5549_v12 = vld [vmem:[%s8461_s5 + $0x60] ss:$8 sps:$4 sm:$0xff]  }
 0x3ae   : > { %v4580_v4 = vpop.f32.mrf.mxu1  ;;  %5080 = vrot.lane.b32.xlu0 %v5079_v54, %s5669_s21  ;;  %8627 = vst [vmem:[#allocation19_spill] sm:$0xff] %v7410_v14  ;;  %v5119_v28 = vpack.i.bf16 %v7410_v14, %v7415_v45 }
 0x3af   : > { %v7392_v31 = vadd.f32 %v4580_v4, %v4579_v36  ;;  %5105 = vrot.lane.b32.xlu1 %v5104_v49, %s8612_s12  ;;  %v5546_v36 = vld [vmem:[%s8461_s5 + $0x70] ss:$8 sps:$4 sm:$0xff]  }
 0x3b0   : > { %v4582_v50 = vpop.f32.mrf.mxu1 }
 0x3b2   : > { %v4583_v63 = vpop.f32.mrf.mxu1  ;;  %5085 = vrot.lane.b32.xlu0 %v5079_v54, %s8612_s12  ;;  %v5548_v54 = vld [vmem:[%s8461_s5 + $0x74] ss:$8 sps:$4 sm:$0xff]  }
 0x3b3   : > { %5110 = vrot.lane.b32.xlu1 %v5109_v38, %s5669_s21  ;;  %3913 = vmatprep.subr.bf16.mxu0 %v5548_v54  ;;  %v4584_v30 = vadd.f32 %v4583_v63, %v4582_v50  ;;  %v5557_v50 = vld [vmem:[%s8461_s5 + $0x44] ss:$8 sps:$4 sm:$0xff]  }
 0x3b4   : > { %v4585_v42 = vpop.f32.mrf.mxu1  ;;  %3914 = vmatpush1.bf16.msra.mxu0 %v5546_v36 }
 0x3b6   : > { %v4586_v19 = vpop.f32.mrf.mxu1  ;;  %5100 = vrot.lane.b32.xlu0 %v5104_v49, %s5669_s21  ;;  %v5551_v49 = vld [vmem:[%s8461_s5 + $0x64] ss:$8 sps:$4 sm:$0xff]  }
 0x3b7   : > { %5115 = vrot.lane.b32.xlu1 %v5109_v38, %s8612_s12  ;;  %3915 = vmatprep.subr.bf16.mxu0 %v5551_v49  ;;  %v5554_v38 = vld [vmem:[%s8461_s5 + $0x54] ss:$8 sps:$4 sm:$0xff]   ;;  %v4587_v14 = vadd.f32 %v4586_v19, %v4585_v42 }
 0x3b8   : > { %v4588_v21 = vpop.f32.mrf.mxu1  ;;  %3916 = vmatpush1.bf16.msra.mxu0 %v5549_v12  ;;  %v1832_v12 = vsub.s32 2, %v8609_v26  ;;  %v5555_v26 = vld [vmem:[%s8461_s5 + $0x40] ss:$8 sps:$4 sm:$0xff]  }
 0x3b9   : > { %3917 = vmatprep.subr.bf16.mxu0 %v5554_v38 }
 0x3ba   : > { %v4589_v9 = vpop.f32.mrf.mxu1  ;;  %5120 = vrot.lane.b32.xlu0 %v5119_v28, %s5669_s21  ;;  %v7459_v38 = vrot.slane %v7214_v13, %v1832_v12 }
 0x3bb   : > { %v7420_v40 = vadd.f32 %v4589_v9, %v4588_v21  ;;  %v5552_v9 = vld [vmem:[%s8461_s5 + $0x50] ss:$8 sps:$4 sm:$0xff]  }
 0x3bc   : > { %v4591_v16 = vpop.f32.mrf.mxu1  ;;  %3918 = vmatpush1.bf16.msra.mxu0 %v5552_v9  ;;  %v4578_v9 = vadd.f32 %v7357_v47, %v7348_v53  ;;  %v2687_v22 = vadd.f32 %v4584_v30, %v7459_v38  ;;  %v2690_v30 = vadd.f32 %v4587_v14, %v7459_v38 }
 0x3bd   : > { %3919 = vmatprep.subr.bf16.mxu0 %v5557_v50 }
 0x3be   : > { %v4592_v32 = vpop.f32.mrf.mxu1  ;;  %5125 = vrot.lane.b32.xlu0 %v5119_v28, %s8612_s12  ;;  %v2679_v63 = vadd.f32 %v4578_v9, %v7459_v38 }
 0x3bf   : > { %v7423_v55 = vadd.f32 %v4592_v32, %v4591_v16 }
 0x3c0   : > { %v7425_v8 = vpop.f32.mrf.mxu1  ;;  %3920 = vmatpush1.bf16.msra.mxu0 %v5555_v26 }
 0x3c2   : > { %v7427_v5 = vpop.f32.mrf.mxu1 }
 0x3c4   : > { %v4597_v41 = vpop.f32.mrf.mxu1 }
 0x3c6   : > { %v4598_v43 = vpop.f32.mrf.mxu1 }
 0x3c7   : > { %v7429_v60 = vadd.f32 %v4598_v43, %v4597_v41 }
 0x3c8   : > { %v4616_v62 = vpop.f32.mrf.mxu1 }
 0x3ca   : > { %v4617_v4 = vpop.f32.mrf.mxu1 }
 0x3cb   : > { %v4618_v52 = vadd.f32 %v4617_v4, %v4616_v62  ;;  %v5558_v62 = vld [vmem:[%s8461_s5 + $0x30] ss:$8 sps:$4 sm:$0xff]   ;;  %v5560_v4 = vld [vmem:[%s8461_s5 + $0x34] ss:$8 sps:$4 sm:$0xff]  }
 0x3cc   : > { %v4619_v21 = vpop.f32.mrf.mxu1  ;;  %3921 = vmatprep.subr.bf16.mxu0 %v5560_v4 }
 0x3cd   : > { %v2744_v19 = vadd.f32 %v4618_v52, %v2679_v63  ;;  %3922 = vmatpush1.bf16.msra.mxu0 %v5558_v62  ;;  %v2682_v52 = vadd.f32 %v7392_v31, %v7459_v38  ;;  %v5563_v63 = vld [vmem:[%s8461_s5 + $0x24] ss:$8 sps:$4 sm:$0xff]  }
 0x3ce   : > { %v4620_v28 = vpop.f32.mrf.mxu1  ;;  %3923 = vmatprep.subr.bf16.mxu0 %v5563_v63 }
 0x3d0   : > { %v4622_v16 = vpop.f32.mrf.mxu1 }
 0x3d2   : > { %v4623_v32 = vpop.f32.mrf.mxu1 }
 0x3d3   : > { %v4624_v45 = vadd.f32 %v4623_v32, %v4622_v16  ;;  %v7483_v32 = vmax.f32 %v7259_v18, 0.0  ;;  %v7494_v18 = vmax.f32 %v7245_v59, 0.0 }
 0x3d4   : > { %v4625_v41 = vpop.f32.mrf.mxu1 }
 0x3d5   : > { %v2752_v47 = vadd.f32 %v4624_v45, %v2687_v22  ;;  %v4621_v22 = vadd.f32 %v4620_v28, %v4619_v21  ;;  %v5561_v28 = vld [vmem:[%s8461_s5 + $0x20] ss:$8 sps:$4 sm:$0xff]  }
 0x3d6   : > { %v4626_v43 = vpop.f32.mrf.mxu1  ;;  %3924 = vmatpush1.bf16.msra.mxu0 %v5561_v28 }
 0x3d7   : > { %v4627_v53 = vadd.f32 %v4626_v43, %v4625_v41 }
 0x3d8   : > { %v7449_v36 = vpop.f32.mrf.mxu1 }
 0x3d9   : > { %v2755_v12 = vadd.f32 %v4627_v53, %v2690_v30  ;;  %v2747_v53 = vadd.f32 %v4621_v22, %v2682_v52  ;;  %v5564_v30 = vld [vmem:[%s8461_s5 + $0x10] ss:$8 sps:$4 sm:$0xff]   ;;  %v5567_v22 = vld [vmem:[%s8461_s5] ss:$8 sps:$4 sm:$0xff]  }
 0x3da   : > { %v7451_v54 = vpop.f32.mrf.mxu1 }
 0x3dc   : > { %v7453_v49 = vpop.f32.mrf.mxu1 }
 0x3de   : > { %v7455_v11 = vpop.f32.mrf.mxu1 }
 0x3e0   : > { %v4634_v51 = vpop.f32.mrf.mxu1 }
 0x3e2   : > { %v4635_v48 = vpop.f32.mrf.mxu1 }
 0x3e3   : > { %v4636_v4 = vadd.f32 %v4635_v48, %v4634_v51 }
 0x3e4   : > { %v7463_v44 = vpop.f32.mrf.mxu1 }
 0x3e6   : > { %v7472_v13 = vpop.f32.mrf.mxu1 }
 0x3e8   : > { %v4658_v16 = vpop.f32.mrf.mxu1 }
 0x3e9   : > { %v2817_v42 = vadd.f32 %v4658_v16, %v2752_v47  ;;  %v7508_v16 = vmax.f32 %v7271_v2, 0.0 }
 0x3ea   : > { %v2808_v41 = vpop.f32.mrf.mxu1 }
 0x3eb   : > { %v7485_v45 = vmax.f32 %v2817_v42, 0.0  ;;  %v2809_v43 = vadd.f32 %v2808_v41, %v2744_v19  ;;  %v5566_v42 = vld [vmem:[%s8461_s5 + $0x14] ss:$8 sps:$4 sm:$0xff]   ;;  %v4596_v19 = vadd.f32 %v7427_v5, %v7425_v8  ;;  %v5569_v8 = vld [vmem:[%s8461_s5 + $0x4] ss:$8 sps:$4 sm:$0xff]   ;;  %v7533_v5 = vmax.f32 %v7252_v37, 0.0 }
 0x3ec   : > { %v4659_v14 = vpop.f32.mrf.mxu1  ;;  %3925 = vmatprep.subr.bf16.mxu0 %v5566_v42  ;;  %v8504_v48 = vrot.slane %v7508_v16, 1  ;;  %v3094_v37 = vrot.slane %v7483_v32, 1  ;;  %v8502_v28 = vrot.slane %v7508_v16, 2 }
 0x3ed   : > { %v7489_v9 = vmax.f32 %v2809_v43, 0.0  ;;  %v2820_v26 = vadd.f32 %v4659_v14, %v2755_v12  ;;  %v5129_v50 = vpack.i.bf16 %v7485_v45, %v7483_v32  ;;  %3926 = vmatpush1.bf16.msra.mxu0 %v5564_v30  ;;  %v2703_v43 = vadd.f32 %v4596_v19, %v7459_v38  ;;  %v5570_v19 = vld [vmem:[%s8461_s5 + $0xf0] ss:$8 sps:$4 sm:$0xff]  }
 0x3ee   : > { %v2811_v21 = vpop.f32.mrf.mxu1  ;;  %v3096_v51 = vrot.slane %v7485_v45, 1  ;;  %3927 = vmatprep.subr.bf16.mxu0 %v5569_v8  ;;  %v3377_v30 = vrot.slane %v7483_v32, 2  ;;  %v5575_v8 = vld [vmem:[%s8461_s5 + $0xe4] ss:$8 sps:$4 sm:$0xff]  }
 0x3ef   : > { %5130 = vrot.lane.b32.xlu1 %v5129_v50, %s5669_s21  ;;  %v7503_v31 = vmax.f32 %v2820_v26, 0.0  ;;  %v5139_v47 = vpack.i.bf16 %v7489_v9, %v7494_v18  ;;  %v2812_v59 = vadd.f32 %v2811_v21, %v2747_v53  ;;  %v2768_v26 = vadd.f32 %v4636_v4, %v2703_v43 }
 0x3f0   : > { %v4662_v12 = vpop.f32.mrf.mxu1  ;;  %v3379_v21 = vrot.slane %v7485_v45, 2  ;;  %v7555_v53 = vsel %vm420_vm0, %v3094_v37, %v8504_v48  ;;  %v5581_v48 = vld [vmem:[%s8461_s5 + $0xc4] ss:$8 sps:$4 sm:$0xff]  }
 0x3f1   : > { %5140 = vrot.lane.b32.xlu0 %v5139_v47, %s5669_s21  ;;  %v5149_v62 = vpack.i.bf16 %v7503_v31, %v7508_v16  ;;  %v7522_v2 = vmax.f32 %v2812_v59, 0.0  ;;  %v8505_v41 = vrot.slane %v7503_v31, 1  ;;  %v8503_v52 = vrot.slane %v7503_v31, 2  ;;  %3928 = vmatpush1.bf16.msra.mxu0 %v5567_v22 }
 0x3f2   : > { %v2833_v63 = vadd.f32 %v4662_v12, %v2768_v26  ;;  %v5573_v12 = vld [vmem:[%s8461_s5 + $0xe0] ss:$8 sps:$4 sm:$0xff]   ;;  %v3087_v26 = vrot.slane %v7533_v5, 1  ;;  %v8635_v35 = vrot.slane %v7503_v31, 1 }
 0x3f3   : > { %5135 = vrot.lane.b32.xlu1 %v5129_v50, %s8612_s12  ;;  %v5159_v14 = vpack.i.bf16 %v7522_v2, %v7533_v5  ;;  %v7547_v50 = vsel %vm420_vm0, %v3096_v51, %v8505_v41  ;;  %v7568_v42 = vsel %vm460_vm1, %v3379_v21, %v8503_v52  ;;  %v3090_v43 = vrot.slane %v7522_v2, 1  ;;  %v2824_v52 = vpop.f32.mrf.mxu1  ;;  %v5588_v41 = vld [vmem:[%s8461_s5 + $0x120] ss:$8 sps:$4 sm:$0xff]  }
 0x3f4   : > { %v5169_v59 = vpack.i.bf16 %v7547_v50, %v7555_v53  ;;  %v7582_v4 = vmax.f32 %v2833_v63, 0.0  ;;  %v3089_v63 = vrot.slane %v7489_v9, 1 }
 0x3f5   : > { %5150 = vrot.lane.b32.xlu0 %v5149_v62, %s5669_s21 }
 0x3f7   : > { %5145 = vrot.lane.b32.xlu1 %v5139_v47, %s8612_s12  ;;  %v5572_v47 = vld [vmem:[%s8461_s5 + $0xf4] ss:$8 sps:$4 sm:$0xff]  }
 0x3f8   : > { %3929 = vmatprep.subr.bf16.mxu0 %v5572_v47  ;;  %v2695_v47 = vadd.f32 %v7420_v40, %v7459_v38 }
 0x3f9   : > { %5155 = vrot.lane.b32.xlu0 %v5149_v62, %s8612_s12  ;;  %v7580_v62 = vsel %vm460_vm1, %v3377_v30, %v8502_v28  ;;  %3930 = vmatpush2.bf16.msra.mxu0 %v5570_v19  ;;  %v5194_v19 = vpack.i.bf16 %v7582_v4, %v7390_v7  ;;  %v3086_v28 = vrot.slane %v7494_v18, 1 }
 0x3fa   : > { %v5179_v22 = vpack.i.bf16 %v7568_v42, %v7580_v62  ;;  %3931 = vmatprep.subr.bf16.mxu0 %v5575_v8 }
 0x3fb   : > { %5160 = vrot.lane.b32.xlu1 %v5159_v14, %s5669_s21  ;;  %v7616_v40 = vsel %vm420_vm0, %v3086_v28, %v3087_v26  ;;  %v5584_v28 = vld [vmem:[%s8461_s5 + $0x134] ss:$8 sps:$4 sm:$0xff]  }
 0x3fc   : > { %3992 = vmatprep.subr.bf16.mxu1 %v5584_v28  ;;  %v5599_v28 = vld [vmem:[%s8461_s5 + $0x94] ss:$8 sps:$4 sm:$0xff]  }
 0x3fd   : > { %5165 = vrot.lane.b32.xlu0 %v5159_v14, %s8612_s12  ;;  %v4630_v14 = vadd.f32 %v7451_v54, %v7449_v36  ;;  %v7605_v36 = vsel %vm420_vm0, %v3089_v63, %v3090_v43  ;;  %3932 = vmatpush2.bf16.msra.mxu0 %v5573_v12  ;;  %v5576_v54 = vld [vmem:[%s8461_s5 + $0xd0] ss:$8 sps:$4 sm:$0xff]  }
 0x3fe   : > { %v5199_v12 = vpack.i.bf16 %v7605_v36, %v7616_v40 }
 0x3ff   : > { %5170 = vrot.lane.b32.xlu1 %v5169_v59, %s5669_s21  ;;  %v2760_v8 = vadd.f32 %v4630_v14, %v2695_v47  ;;  %v5582_v14 = vld [vmem:[%s8461_s5 + $0x130] ss:$8 sps:$4 sm:$0xff]   ;;  %v3373_v47 = vrot.slane %v7522_v2, 2 }
 0x400   : > { %3993 = vmatpush1.bf16.msra.mxu1 %v5582_v14 }
 0x401   : > { %5180 = vrot.lane.b32.xlu0 %v5179_v22, %s5669_s21  ;;  %v2825_v63 = vadd.f32 %v2824_v52, %v2760_v8  ;;  %v5579_v52 = vld [vmem:[%s8461_s5 + $0xc0] ss:$8 sps:$4 sm:$0xff]   ;;  %v3372_v8 = vrot.slane %v7489_v9, 2 }
 0x403   : > { %5175 = vrot.lane.b32.xlu1 %v5169_v59, %s8612_s12  ;;  %v5578_v59 = vld [vmem:[%s8461_s5 + $0xd4] ss:$8 sps:$4 sm:$0xff]  }
 0x404   : > { %3933 = vmatprep.subr.bf16.mxu0 %v5578_v59  ;;  %v3370_v59 = vrot.slane %v7533_v5, 2 }
 0x405   : > { %5195 = vrot.lane.b32.xlu0 %v5194_v19, %s8612_s12  ;;  %3934 = vmatpush2.bf16.msra.mxu0 %v5576_v54 }
 0x406   : > { %3935 = vmatprep.subr.bf16.mxu0 %v5581_v48  ;;  %v5587_v48 = vld [vmem:[%s8461_s5 + $0xb4] ss:$8 sps:$4 sm:$0xff]  }
 0x407   : > { %5185 = vrot.lane.b32.xlu1 %v5179_v22, %s8612_s12  ;;  %v7628_v22 = vsel %vm420_vm0, %v3090_v43, %v3096_v51  ;;  %v7641_v51 = vsel %vm420_vm0, %v3087_v26, %v3094_v37  ;;  %v7643_v43 = vmax.f32 %v2825_v63, 0.0  ;;  %v7655_v37 = vsel %vm460_vm1, %v3372_v8, %v3373_v47  ;;  %v5585_v26 = vld [vmem:[%s8461_s5 + $0xb0] ss:$8 sps:$4 sm:$0xff]   ;;  %v5590_v63 = vld [vmem:[%s8461_s5 + $0x124] ss:$8 sps:$4 sm:$0xff]  }
 0x408   : > { %v5214_v54 = vpack.i.bf16 %v7628_v22, %v7641_v51  ;;  %8630 = vst [vmem:[#allocation22_spill] sm:$0xff] %v7655_v37  ;;  %3994 = vmatprep.subr.bf16.mxu1 %v5590_v63  ;;  %v7674_v8 = vsel %vm460_vm1, %v3373_v47, %v3379_v21  ;;  %v7694_v47 = vsel %vm460_vm1, %v3370_v59, %v3377_v30  ;;  %v4663_v21 = vpop.f32.mrf.mxu1 }
 0x409   : > { %5200 = vrot.lane.b32.xlu0 %v5199_v12, %s5669_s21  ;;  %8629 = vst [vmem:[#allocation21_spill] sm:$0xff] %v7643_v43  ;;  %3936 = vmatpush2.bf16.msra.mxu0 %v5579_v52  ;;  %8632 = vst [vmem:[#allocation24_spill] sm:$0xff] %v7674_v8  ;;  %v5234_v63 = vpack.i.bf16 %v7674_v8, %v7694_v47 }
 0x40a   : > { %3937 = vmatprep.subr.bf16.mxu0 %v5587_v48  ;;  %3995 = vmatpush1.bf16.msra.mxu1 %v5588_v41  ;;  %v5593_v48 = vld [vmem:[%s8461_s5 + $0xa4] ss:$8 sps:$4 sm:$0xff]   ;;  %v5596_v41 = vld [vmem:[%s8461_s5 + $0x114] ss:$8 sps:$4 sm:$0xff]   ;;  %8633 = vst [vmem:[#allocation25_spill] sm:$0xff] %v7694_v47 }
 0x40b   : > { %5190 = vrot.lane.b32.xlu1 %v5194_v19, %s5669_s21  ;;  %v3369_v19 = vrot.slane %v7494_v18, 2  ;;  %3996 = vmatprep.subr.bf16.mxu1 %v5596_v41 }
 0x40d   : > { %5215 = vrot.lane.b32.xlu0 %v5214_v54, %s8612_s12  ;;  %v7666_v14 = vsel %vm460_vm1, %v3369_v19, %v3370_v59  ;;  %3938 = vmatpush2.bf16.msra.mxu0 %v5585_v26  ;;  %v5594_v19 = vld [vmem:[%s8461_s5 + $0x110] ss:$8 sps:$4 sm:$0xff]   ;;  %v4639_v26 = vadd.f32 %v7472_v13, %v7463_v44  ;;  %v2706_v13 = vadd.f32 %v7429_v60, %v7459_v38  ;;  %v8637_v60 = vrot.slane %v7508_v16, 1 }
 0x40e   : > { %8631 = vst [vmem:[#allocation23_spill] sm:$0xff] %v7666_v14  ;;  %v5219_v52 = vpack.i.bf16 %v7655_v37, %v7666_v14  ;;  %3939 = vmatprep.subr.bf16.mxu0 %v5593_v48  ;;  %3997 = vmatpush1.bf16.msra.mxu1 %v5594_v19  ;;  %v5597_v44 = vld [vmem:[%s8461_s5 + $0x90] ss:$8 sps:$4 sm:$0xff]   ;;  %v4633_v59 = vadd.f32 %v7455_v11, %v7453_v49  ;;  %v8636_v48 = vrot.slane %v7332_v25, 1  ;;  %v5605_v11 = vld [vmem:[%s8461_s5 + $0x84] ss:$8 sps:$4 sm:$0xff]  }
 0x40f   : > { %5205 = vrot.lane.b32.xlu1 %v5214_v54, %s5669_s21  ;;  %v5591_v54 = vld [vmem:[%s8461_s5 + $0xa0] ss:$8 sps:$4 sm:$0xff]   ;;  %v2698_v49 = vadd.f32 %v7423_v55, %v7459_v38  ;;  %v5239_v38 = vpack.i.bf16 %v7643_v43, %v7332_v25 }
 0x410   : > { %v7730_v19 = vsel %vm420_vm0, %v8637_v60, %v8636_v48  ;;  %v5603_v48 = vld [vmem:[%s8461_s5 + $0x80] ss:$8 sps:$4 sm:$0xff]  }
 0x411   : > { %5220 = vrot.lane.b32.xlu0 %v5219_v52, %s5669_s21  ;;  %3940 = vmatpush2.bf16.msra.mxu0 %v5591_v54  ;;  %v5602_v54 = vld [vmem:[%s8461_s5 + $0x104] ss:$8 sps:$4 sm:$0xff]   ;;  %v2763_v20 = vadd.f32 %v4633_v59, %v2698_v49  ;;  %v8641_v59 = vrot.slane %v7508_v16, 2 }
 0x412   : > { %3941 = vmatprep.subr.bf16.mxu0 %v5599_v28  ;;  %v2771_v28 = vadd.f32 %v4639_v26, %v2706_v13  ;;  %3998 = vmatprep.subr.bf16.mxu1 %v5602_v54  ;;  %v8638_v26 = vrot.slane %v7503_v31, 2 }
 0x413   : > { %5210 = vrot.lane.b32.xlu1 %v5199_v12, %s8612_s12  ;;  %v8634_v12 = vrot.slane %v7643_v43, 1 }
 0x414   : > { %v2836_v60 = vadd.f32 %v4663_v21, %v2771_v28  ;;  %v8640_v21 = vrot.slane %v7332_v25, 2 }
 0x415   : > { %v7708_v30 = vsel %vm420_vm0, %v8635_v35, %v8634_v12  ;;  %5235 = vrot.lane.b32.xlu0 %v5234_v63, %s8612_s12  ;;  %v5600_v35 = vld [vmem:[%s8461_s5 + $0x100] ss:$8 sps:$4 sm:$0xff]   ;;  %v2827_v12 = vpop.f32.mrf.mxu1  ;;  %3942 = vmatpush2.bf16.msra.mxu0 %v5597_v44 }
 0x416   : > { %v5249_v41 = vpack.i.bf16 %v7708_v30, %v7730_v19  ;;  %3999 = vmatpush1.bf16.msra.mxu1 %v5600_v35  ;;  %3943 = vmatprep.subr.bf16.mxu0 %v5605_v11  ;;  %v2828_v55 = vadd.f32 %v2827_v12, %v2763_v20  ;;  %v2862_v13 = vmax.f32 %v2836_v60, 0.0  ;;  %v7759_v20 = vsel %vm460_vm1, %v8641_v59, %v8640_v21  ;;  %v7774_v12 = vpop.permute.xlu0 %5030 }
 0x417   : > { %5225 = vrot.lane.b32.xlu1 %v5234_v63, %s5669_s21  ;;  %v3391_v63 = vrot.slane %v7643_v43, 2  ;;  %8642 = vst [vmem:[#allocation27_spill] sm:$0xff] %v7759_v20  ;;  %v3120_v11 = vrot.slane %v7582_v4, 1  ;;  %v8648_v59 = vrot.slane %v7390_v7, 1 }
 0x418   : > { %v3126_v54 = vrot.slane %v2862_v13, 1 }
 0x419   : > { %5250 = vrot.lane.b32.xlu0 %v5249_v41, %s5669_s21  ;;  %v7750_v44 = vsel %vm460_vm1, %v8638_v26, %v3391_v63  ;;  %3944 = vmatpush2.bf16.msra.mxu0 %v5603_v48  ;;  %v3112_v48 = vrot.slane %v7324_v39, 1  ;;  %v8646_v26 = vrot.slane %v7643_v43, 1 }
 0x41a   : > { %8639 = vst [vmem:[#allocation26_spill] sm:$0xff] %v7750_v44  ;;  %v5264_v35 = vpack.i.bf16 %v7750_v44, %v7759_v20  ;;  %v7810_v44 = vpop.permute.xlu1 %5035  ;;  %v3409_v20 = vrot.slane %v2862_v13, 2 }
 0x41b   : > { %5230 = vrot.lane.b32.xlu1 %v5219_v52, %s8612_s12  ;;  %v7761_v52 = vmax.f32 %v2828_v55, 0.0 }
 0x41d   : > { %5255 = vrot.lane.b32.xlu0 %v5249_v41, %s8612_s12  ;;  %8643 = vst [vmem:[#allocation28_spill] sm:$0xff] %v7761_v52  ;;  %v5269_v49 = vpack.i.bf16 %v7761_v52, %v7324_v39  ;;  %v3114_v28 = vrot.slane %v7761_v52, 1  ;;  %v7772_v41 = vsel %vm420_vm0, %v3120_v11, %v3126_v54 }
 0x41e   : > { %8644 = vst [vmem:[#allocation29_spill] sm:$0xff] %v7772_v41  ;;  %v5279_v60 = vpack.i.bf16 %v7369_v34, %v7772_v41 }
 0x41f   : > { %5240 = vrot.lane.b32.xlu1 %v5239_v38, %s5669_s21  ;;  %v7782_v55 = vsel %vm420_vm0, %v3114_v28, %v3120_v11  ;;  %v7790_v21 = vsel %vm420_vm0, %v8646_v26, %v3114_v28  ;;  %v8650_v11 = vrot.slane %v7332_v25, 1  ;;  %v3401_v26 = vrot.slane %v7390_v7, 2 }
 0x420   : > { %8645 = vst [vmem:[#allocation30_spill] sm:$0xff] %v7782_v55  ;;  %8647 = vst [vmem:[#allocation31_spill] sm:$0xff] %v7790_v21 }
 0x421   : > { %5265 = vrot.lane.b32.xlu0 %v5264_v35, %s8612_s12  ;;  %v7803_v41 = vsel %vm420_vm0, %v8650_v11, %v3112_v48 }
 0x422   : > { %8651 = vst [vmem:[#allocation33_spill] sm:$0xff] %v7803_v41  ;;  %v5284_v28 = vpack.i.bf16 %v7790_v21, %v7803_v41  ;;  %v7823_v21 = vpop.permute.xlu1 %5060  ;;  %v8655_v41 = vrot.slane %v7324_v39, 2 }
 0x423   : > { %5245 = vrot.lane.b32.xlu1 %v5239_v38, %s8612_s12  ;;  %v7784_v38 = vpop.permute.xlu0 %5040  ;;  %v5062_v43 = vunpack.i.l.bf16 %v7823_v21 }
 0x425   : > { %5270 = vrot.lane.b32.xlu0 %v5269_v49, %s5669_s21 }
 0x427   : > { %5260 = vrot.lane.b32.xlu1 %v5264_v35, %s5669_s21  ;;  %v7796_v35 = vsel %vm420_vm0, %v3112_v48, %v8648_v59  ;;  %v3403_v59 = vrot.slane %v7582_v4, 2 }
 0x428   : > { %8649 = vst [vmem:[#allocation32_spill] sm:$0xff] %v7796_v35  ;;  %v5289_v54 = vpack.i.bf16 %v7782_v55, %v7796_v35  ;;  %v7814_v35 = vpop.permute.xlu0 %5045  ;;  %v7829_v55 = vsel %vm460_vm1, %v8655_v41, %v3401_v26  ;;  %v7844_v41 = vpop.permute.xlu1 %5065 }
 0x429   : > { %5275 = vrot.lane.b32.xlu0 %v5269_v49, %s8612_s12  ;;  %v3397_v49 = vrot.slane %v7761_v52, 2  ;;  %8652 = vst [vmem:[#allocation34_spill] sm:$0xff] %v7814_v35  ;;  %8656 = vst [vmem:[#allocation37_spill] sm:$0xff] %v7829_v55 }
 0x42b   : > { %5280 = vrot.lane.b32.xlu1 %v5279_v60, %s5669_s21  ;;  %v7817_v48 = vsel %vm460_vm1, %v3391_v63, %v3397_v49  ;;  %v7821_v11 = vsel %vm460_vm1, %v3397_v49, %v3403_v59  ;;  %v8658_v49 = vmax.f32 %v7355_v57, 0.0 }
 0x42c   : > { %8653 = vst [vmem:[#allocation35_spill] sm:$0xff] %v7817_v48  ;;  %8654 = vst [vmem:[#allocation36_spill] sm:$0xff] %v7821_v11  ;;  %v5304_v52 = vpack.i.bf16 %v7829_v55, %v7817_v48  ;;  %v5309_v63 = vpack.i.bf16 %v7335_v56, %v7821_v11  ;;  %v5032_v56 = vunpack.i.l.bf16 %v7774_v12 }
 0x42d   : > { %5290 = vrot.lane.b32.xlu0 %v5289_v54, %s5669_s21  ;;  %v3407_v25 = vrot.slane %v8658_v49, 2  ;;  %v7856_v49 = vpop.permute.xlu1 %5070 }
 0x42f   : > { %5285 = vrot.lane.b32.xlu1 %v5284_v28, %s5669_s21  ;;  %v7848_v13 = vsel %vm460_vm1, %v3401_v26, %v3407_v25 }
 0x430   : > { %8660 = vst [vmem:[#allocation40_spill] sm:$0xff] %v7848_v13 }
 0x431   : > { %5295 = vrot.lane.b32.xlu0 %v5284_v28, %s8612_s12  ;;  %v7835_v28 = vpop.permute.xlu0 %5050  ;;  %v7864_v25 = vpop.permute.xlu1 %5090 }
 0x432   : > { %8657 = vst [vmem:[#allocation38_spill] sm:$0xff] %v7835_v28  ;;  %8662 = vst [vmem:[#allocation42_spill] sm:$0xff] %v7864_v25 }
 0x433   : > { %5300 = vrot.lane.b32.xlu1 %v5289_v54, %s8612_s12  ;;  %v7842_v54 = vsel %vm460_vm1, %v3403_v59, %v3409_v20 }
 0x434   : > { %8659 = vst [vmem:[#allocation39_spill] sm:$0xff] %v7842_v54  ;;  %v5329_v57 = vpack.i.bf16 %v7842_v54, %v7848_v13 }
 0x435   : > { %5305 = vrot.lane.b32.xlu0 %v5304_v52, %s5669_s21  ;;  %v7851_v55 = vpop.permute.xlu0 %5055  ;;  %v7870_v26 = vpop.permute.xlu1 %5095 }
 0x436   : > { %8661 = vst [vmem:[#allocation41_spill] sm:$0xff] %v7851_v55  ;;  %8663 = vst [vmem:[#allocation43_spill] sm:$0xff] %v7870_v26 }
 0x437   : > { %5310 = vrot.lane.b32.xlu1 %v5309_v63, %s5669_s21 }
 0x439   : > { %5315 = vrot.lane.b32.xlu0 %v5304_v52, %s8612_s12  ;;  %v7859_v20 = vpop.permute.xlu0 %5075 }
 0x43b   : > { %5320 = vrot.lane.b32.xlu1 %v5309_v63, %s8612_s12  ;;  %v7874_v63 = vpop.permute.xlu1 %5105 }
 0x43d   : > { %5330 = vrot.lane.b32.xlu0 %v5329_v57, %s5669_s21  ;;  %v7868_v52 = vpop.permute.xlu0 %5080 }
 0x43f   : > { %5325 = vrot.lane.b32.xlu1 %v5279_v60, %s8612_s12  ;;  %v7878_v13 = vpop.permute.xlu1 %5110 }
 0x440   : > { %8664 = vst [vmem:[#allocation44_spill] sm:$0xff] %v7878_v13 }
 0x441   : > { %5335 = vrot.lane.b32.xlu0 %v5329_v57, %s8612_s12  ;;  %v7872_v59 = vpop.permute.xlu0 %5085 }
 0x443   : > { %3489 = vrot.lane.b32.xlu1 %v7381_v58, %s5669_s21  ;;  %v7888_v0 = vpop.permute.xlu1 %5115 }
 0x444   : > { %8666 = vst [vmem:[#allocation46_spill] sm:$0xff] %v7888_v0 }
 0x445   : > { %v7876_v60 = vpop.permute.xlu0 %5100 }
 0x447   : > { %3587 = vrot.lane.b32.xlu1 %v7381_v58, %s8612_s12  ;;  %v5067_v58 = vunpack.i.l.bf16 %v7844_v41  ;;  %s8421_s12 = scalar_lea.hbm %s8466_s10, %s4557_s29 }
 0x449   : > { %v7880_v57 = vpop.permute.xlu0 %5120 }
 0x44a   : > { %8665 = vst [vmem:[#allocation45_spill] sm:$0xff] %v7880_v57 }
 0x44d   : > { %v7902_v61 = vpop.permute.xlu0 %5125 }
 0x44e   : > { %v5127_v39 = vunpack.i.l.bf16 %v7902_v61 }
 0x461   : > { %v5131_v37 = vpop.permute.xlu1 %5130 }
 0x462   : > { %v5133_v6 = vunpack.i.h.bf16 %v5131_v37  ;;  %v5132_v28 = vunpack.i.l.bf16 %v5131_v37 }
 0x463   : > { %v5141_v25 = vpop.permute.xlu0 %5140 }
 0x464   : > { %v2930_v48 = vsel %vm500_vm2, %v5062_v43, %v5132_v28  ;;  %v5143_v10 = vunpack.i.h.bf16 %v5141_v25  ;;  %v5142_v26 = vunpack.i.l.bf16 %v5141_v25  ;;  %v2931_v54 = vsel %vm500_vm2, %v5132_v28, %v5133_v6 }
 0x465   : > { %v5136_v14 = vpop.permute.xlu1 %5135  ;;  %v2967_v35 = vmax.f32 %v7257_v3, %v2930_v48  ;;  %v2968_v28 = vmax.f32 %v7483_v32, %v2931_v54 }
 0x466   : > { %v5138_v34 = vunpack.i.h.bf16 %v5136_v14  ;;  %v5137_v8 = vunpack.i.l.bf16 %v5136_v14  ;;  %v2926_v37 = vsel %vm500_vm2, %v5032_v56, %v5142_v26  ;;  %v2927_v14 = vsel %vm500_vm2, %v5142_v26, %v5143_v10 }
 0x467   : > { %v5151_v13 = vpop.permute.xlu0 %5150  ;;  %v2969_v56 = vmax.f32 %v7485_v45, %v5133_v6  ;;  %v2963_v57 = vmax.f32 %v7489_v9, %v5143_v10  ;;  %v2962_v32 = vmax.f32 %v7494_v18, %v2927_v14  ;;  %v8668_v26 = vunpack.i.l.bf16 %v7810_v44 }
 0x468   : > { %v3028_v25 = vsel %vm509_vm3, %v5067_v58, %v5137_v8  ;;  %v3029_v55 = vsel %vm509_vm3, %v5137_v8, %v5138_v34  ;;  %v5153_v7 = vunpack.i.h.bf16 %v5151_v13  ;;  %v5152_v0 = vunpack.i.l.bf16 %v5151_v13 }
 0x469   : > { %v3065_v11 = vmax.f32 %v2967_v35, %v3028_v25  ;;  %v5146_v47 = vpop.permute.xlu1 %5145  ;;  %v2961_v58 = vmax.f32 %v7248_v17, %v2926_v37  ;;  %v3066_v8 = vmax.f32 %v2968_v28, %v3029_v55  ;;  %v8667_v35 = vunpack.i.h.bf16 %v7823_v21 }
 0x46a   : > { %v5148_v3 = vunpack.i.h.bf16 %v5146_v47  ;;  %v5147_v48 = vunpack.i.l.bf16 %v5146_v47  ;;  %v3067_v25 = vmax.f32 %v2969_v56, %v5138_v34  ;;  %v2933_v43 = vsel %vm500_vm2, %v5152_v0, %v5153_v7 }
 0x46b   : > { %v2932_v54 = vsel %vm500_vm2, %v8667_v35, %v5152_v0  ;;  %v5156_v47 = vpop.permute.xlu0 %5155  ;;  %v2972_v10 = vmax.f32 %v7503_v31, %v5153_v7  ;;  %v3155_v28 = vmax.f32 %v3065_v11, %v7313_v33  ;;  %v3156_v14 = vmax.f32 %v3066_v8, %v7555_v53 }
 0x46c   : > { %v3024_v13 = vsel %vm509_vm3, %v8668_v26, %v5147_v48  ;;  %v3025_v6 = vsel %vm509_vm3, %v5147_v48, %v5148_v3  ;;  %v5158_v9 = vunpack.i.h.bf16 %v5156_v47  ;;  %v5157_v18 = vunpack.i.l.bf16 %v5156_v47 }
 0x46d   : > { %v7946_v17 = vmax.f32 %v2961_v58, %v3024_v13  ;;  %v5161_v45 = vpop.permute.xlu1 %5160  ;;  %v2970_v21 = vmax.f32 %v7269_v23, %v2932_v54  ;;  %v2971_v34 = vmax.f32 %v7508_v16, %v2933_v43  ;;  %v7953_v0 = vmax.f32 %v2962_v32, %v3025_v6 }
 0x46e   : > { %v5163_v55 = vunpack.i.h.bf16 %v5161_v45  ;;  %v5162_v37 = vunpack.i.l.bf16 %v5161_v45  ;;  %v7955_v48 = vmax.f32 %v2963_v57, %v5148_v3  ;;  %v8669_v56 = vunpack.i.h.bf16 %v7844_v41 }
 0x46f   : > { %v5166_v31 = vpop.permute.xlu0 %5165  ;;  %v3031_v58 = vsel %vm509_vm3, %v5157_v18, %v5158_v9  ;;  %v8670_v23 = vunpack.i.h.bf16 %v7774_v12  ;;  %v3157_v54 = vmax.f32 %v3067_v25, %v7547_v50  ;;  %v8671_v12 = vunpack.i.h.bf16 %v7810_v44 }
 0x470   : > { %v3030_v7 = vsel %vm509_vm3, %v8669_v56, %v5157_v18  ;;  %v2929_v53 = vsel %vm500_vm2, %v5162_v37, %v5163_v55  ;;  %v5168_v43 = vunpack.i.h.bf16 %v5166_v31  ;;  %v5167_v41 = vunpack.i.l.bf16 %v5166_v31 }
 0x471   : > { %v7961_v35 = vmax.f32 %v2970_v21, %v3030_v7  ;;  %v2928_v33 = vsel %vm500_vm2, %v8670_v23, %v5162_v37  ;;  %v5171_v16 = vpop.permute.xlu1 %5170  ;;  %v2965_v57 = vmax.f32 %v7533_v5, %v2929_v53  ;;  %v2966_v3 = vmax.f32 %v7522_v2, %v5163_v55 }
 0x472   : > { %v2964_v11 = vmax.f32 %v7250_v29, %v2928_v33  ;;  %v5173_v8 = vunpack.i.h.bf16 %v5171_v16  ;;  %v5172_v32 = vunpack.i.l.bf16 %v5171_v16  ;;  %v7971_v26 = vmax.f32 %v2971_v34, %v3031_v58 }
 0x473   : > { %v3026_v13 = vsel %vm509_vm3, %v8671_v12, %v5167_v41  ;;  %v3027_v47 = vsel %vm509_vm3, %v5167_v41, %v5168_v43  ;;  %v5181_v6 = vpop.permute.xlu0 %5180  ;;  %v3149_v29 = vmax.f32 %v7946_v17, %v7274_v46  ;;  %v8672_v2 = vunpack.i.l.bf16 %v7856_v49 }
 0x474   : > { %v7979_v5 = vmax.f32 %v2964_v11, %v3026_v13  ;;  %v3217_v50 = vsel %vm500_vm2, %v5172_v32, %v5173_v8  ;;  %v3150_v44 = vmax.f32 %v7953_v0, %v7616_v40  ;;  %v7987_v18 = vmax.f32 %v2972_v10, %v5158_v9 }
 0x475   : > { %v3216_v45 = vsel %vm500_vm2, %v8672_v2, %v5172_v32  ;;  %v5176_v25 = vpop.permute.xlu1 %5175  ;;  %v7989_v55 = vmax.f32 %v2965_v57, %v3027_v47  ;;  %v3151_v46 = vmax.f32 %v7955_v48, %v7605_v36  ;;  %v7993_v17 = vmax.f32 %v2966_v3, %v5168_v43 }
 0x476   : > { %v3253_v21 = vmax.f32 %v3155_v28, %v3216_v45  ;;  %v5178_v37 = vunpack.i.h.bf16 %v5176_v25  ;;  %v5177_v34 = vunpack.i.l.bf16 %v5176_v25  ;;  %v3158_v56 = vmax.f32 %v7961_v35, %v7318_v15 }
 0x477   : > { %v3254_v7 = vmax.f32 %v3156_v14, %v3217_v50  ;;  %v3255_v31 = vmax.f32 %v3157_v54, %v5173_v8  ;;  %v5183_v58 = vunpack.i.h.bf16 %v5181_v6  ;;  %v5196_v23 = vpop.permute.xlu0 %5195  ;;  %v3159_v10 = vmax.f32 %v7971_v26, %v7730_v19 }
 0x478   : > { %v5182_v9 = vunpack.i.l.bf16 %v5181_v6  ;;  %v8673_v28 = vunpack.i.l.bf16 %v7859_v20  ;;  %v3315_v36 = vsel %vm509_vm3, %v5177_v34, %v5178_v37  ;;  %v3152_v53 = vmax.f32 %v7979_v5, %v7277_v1 }
 0x479   : > { %v5186_v48 = vpop.permute.xlu1 %5185  ;;  %v3352_v11 = vmax.f32 %v3254_v7, %v3315_v36  ;;  %v3353_v14 = vmax.f32 %v3255_v31, %v5178_v37  ;;  %v3153_v57 = vmax.f32 %v7989_v55, %v7641_v51  ;;  %v5198_v43 = vunpack.i.h.bf16 %v5196_v23 }
 0x47a   : > { %v3314_v33 = vsel %vm509_vm3, %v8673_v28, %v5177_v34  ;;  %v5197_v41 = vunpack.i.l.bf16 %v5196_v23  ;;  %v5187_v3 = vunpack.i.l.bf16 %v5186_v48  ;;  %v3154_v8 = vmax.f32 %v7993_v17, %v7628_v22 }
 0x47b   : > { %v3351_v16 = vmax.f32 %v3253_v21, %v3314_v33  ;;  %v3439_v54 = vmax.f32 %v3352_v11, %v7580_v62  ;;  %v3440_v12 = vmax.f32 %v3353_v14, %v7568_v42  ;;  %v5188_v1 = vunpack.i.h.bf16 %v5186_v48  ;;  %v5201_v13 = vpop.permute.xlu0 %5200 }
 0x47c   : > { %v8674_v47 = vunpack.i.l.bf16 %v7868_v52  ;;  %v3500_v51 = vsel %vm500_vm2, %v5182_v9, %v5183_v58  ;;  %v8675_v5 = vunpack.i.l.bf16 %v7874_v63  ;;  %v5203_v45 = vunpack.i.h.bf16 %v5201_v13 }
 0x47d   : > { %v8010_v32 = vmax.f32 %v3351_v16, %v7375_v24  ;;  %v5191_v2 = vpop.permute.xlu1 %5190  ;;  %v3160_v24 = vmax.f32 %v7987_v18, %v7708_v30  ;;  %v3538_v62 = vmax.f32 %v3440_v12, %v5183_v58  ;;  %v5202_v42 = vunpack.i.l.bf16 %v5201_v13  ;;  %v8679_v13 = vld [vmem:[#allocation5_spill] sm:$0xff] }
 0x47e   : > { %v8017_v6 = vsel %vm500_vm2, %v8674_v47, %v5182_v9  ;;  %v3036_v22 = vsel %vm509_vm3, %v8675_v5, %v5197_v41  ;;  %v5193_v50 = vunpack.i.h.bf16 %v5191_v2  ;;  %v3037_v25 = vsel %vm509_vm3, %v5197_v41, %v5198_v43 }
 0x47f   : > { %v8676_v55 = vunpack.i.l.bf16 %v7872_v59  ;;  %v5192_v17 = vunpack.i.l.bf16 %v5191_v2  ;;  %v3536_v37 = vmax.f32 %v8010_v32, %v8017_v6  ;;  %v3598_v34 = vsel %vm509_vm3, %v5187_v3, %v5188_v1  ;;  %v5216_v23 = vpop.permute.xlu0 %5215  ;;  %v8680_v2 = vld [vmem:[#allocation34_spill] sm:$0xff] }
 0x480   : > { %v8034_v7 = vmax.f32 %v3538_v62, %v5188_v1  ;;  %v8677_v31 = vunpack.i.l.bf16 %v7784_v38  ;;  %v3537_v9 = vmax.f32 %v3439_v54, %v3500_v51  ;;  %v3213_v28 = vsel %vm500_vm2, %v5202_v42, %v5203_v45 }
 0x481   : > { %v8029_v21 = vsel %vm509_vm3, %v8676_v55, %v5187_v3  ;;  %v2981_v36 = vmax.f32 %v7582_v4, %v5193_v50  ;;  %v8678_v48 = vunpack.i.l.bf16 %v7876_v60  ;;  %v5206_v11 = vpop.permute.xlu1 %5205  ;;  %v2939_v14 = vsel %vm500_vm2, %v5192_v17, %v5193_v50 }
 0x482   : > { %v3212_v58 = vsel %vm500_vm2, %v8677_v31, %v5202_v42  ;;  %v5218_v3 = vunpack.i.h.bf16 %v5216_v23  ;;  %v5217_v12 = vunpack.i.l.bf16 %v5216_v23  ;;  %v3249_v1 = vmax.f32 %v3151_v46, %v5203_v45 }
 0x483   : > { %v3247_v33 = vmax.f32 %v3149_v29, %v3212_v58  ;;  %v2938_v16 = vsel %vm500_vm2, %v8678_v48, %v5192_v17  ;;  %v2980_v47 = vmax.f32 %v8679_v13, %v2939_v14  ;;  %v5208_v54 = vunpack.i.h.bf16 %v5206_v11 }
 0x484   : > { %v2979_v41 = vmax.f32 %v7339_v27, %v2938_v16  ;;  %v5207_v51 = vunpack.i.l.bf16 %v5206_v11  ;;  %v3248_v4 = vmax.f32 %v3150_v44, %v3213_v28  ;;  %v8052_v5 = vmax.f32 %v2981_v36, %v5198_v43  ;;  %v5221_v27 = vpop.permute.xlu0 %5220  ;;  %v8683_v11 = vld [vmem:[#allocation17_spill] sm:$0xff] }
 0x485   : > { %v8681_v62 = vunpack.i.h.bf16 %v8680_v2  ;;  %v3313_v50 = vsel %vm509_vm3, %v5217_v12, %v5218_v3  ;;  %v8682_v46 = vunpack.i.h.bf16 %v7784_v38  ;;  %v3252_v17 = vmax.f32 %v3154_v8, %v5208_v54  ;;  %v5211_v40 = vpop.permute.xlu1 %5210 }
 0x486   : > { %v8050_v29 = vmax.f32 %v2979_v41, %v3036_v22  ;;  %v3215_v55 = vsel %vm500_vm2, %v5207_v51, %v5208_v54  ;;  %v5222_v22 = vunpack.i.l.bf16 %v5221_v27  ;;  %v8062_v43 = vmax.f32 %v3537_v9, %v3598_v34  ;;  %v8684_v41 = vld [vmem:[#allocation38_spill] sm:$0xff] }
 0x487   : > { %v3312_v42 = vsel %vm509_vm3, %v8681_v62, %v5217_v12  ;;  %v3214_v45 = vsel %vm500_vm2, %v8682_v46, %v5207_v51  ;;  %v3251_v44 = vmax.f32 %v3153_v57, %v3215_v55  ;;  %v8064_v31 = vmax.f32 %v2980_v47, %v3037_v25  ;;  %v8687_v62 = vld [vmem:[#allocation22_spill] sm:$0xff] }
 0x488   : > { %v3250_v0 = vmax.f32 %v3152_v53, %v3214_v45  ;;  %v5223_v58 = vunpack.i.h.bf16 %v5221_v27  ;;  %v5213_v23 = vunpack.i.h.bf16 %v5211_v40  ;;  %v5212_v28 = vunpack.i.l.bf16 %v5211_v40  ;;  %v5236_v38 = vpop.permute.xlu0 %5235  ;;  %v8688_v46 = vld [vmem:[#allocation10_spill] sm:$0xff] }
 0x489   : > { %v3349_v48 = vmax.f32 %v3251_v44, %v3313_v50  ;;  %v3350_v16 = vmax.f32 %v3252_v17, %v5218_v3  ;;  %v3167_v14 = vmax.f32 %v8050_v29, %v8683_v11  ;;  %v8685_v8 = vunpack.i.l.bf16 %v8684_v41  ;;  %v5226_v12 = vpop.permute.xlu1 %5225  ;;  %v8690_v17 = vld [vmem:[#allocation12_spill] sm:$0xff] }
 0x48a   : > { %v3348_v36 = vmax.f32 %v3250_v0, %v3312_v42  ;;  %v8686_v57 = vunpack.i.l.bf16 %v8680_v2  ;;  %v3311_v25 = vsel %vm509_vm3, %v5212_v28, %v5213_v23  ;;  %v3347_v9 = vmax.f32 %v3249_v1, %v5213_v23  ;;  %v8689_v2 = vld [vmem:[#allocation23_spill] sm:$0xff]  ;;  %v8691_v0 = vld [vmem:[#allocation25_spill] sm:$0xff]  ;;  %v8724_v29 = vld [vmem:[#allocation32_spill] sm:$0xff] }
 0x48b   : > { %v3495_v53 = vsel %vm500_vm2, %v8685_v8, %v5222_v22  ;;  %v3346_v47 = vmax.f32 %v3248_v4, %v3311_v25  ;;  %v5237_v54 = vunpack.i.l.bf16 %v5236_v38  ;;  %v5228_v3 = vunpack.i.h.bf16 %v5226_v12 }
 0x48c   : > { %v3310_v34 = vsel %vm509_vm3, %v8686_v57, %v5212_v28  ;;  %v8076_v51 = vsel %vm500_vm2, %v5222_v22, %v5223_v58  ;;  %v3434_v42 = vmax.f32 %v3347_v9, %v8687_v62  ;;  %v5238_v27 = vunpack.i.h.bf16 %v5236_v38  ;;  %v5251_v44 = vpop.permute.xlu0 %5250  ;;  %v8694_v28 = vld [vmem:[#allocation24_spill] sm:$0xff] }
 0x48d   : > { %v3345_v13 = vmax.f32 %v3247_v33, %v3310_v34  ;;  %v5227_v50 = vunpack.i.l.bf16 %v5226_v12  ;;  %v3433_v55 = vmax.f32 %v3346_v47, %v8689_v2  ;;  %v3435_v40 = vmax.f32 %v3348_v36, %v8690_v17  ;;  %v8692_v33 = vld [vmem:[#allocation41_spill] sm:$0xff]  ;;  %v5231_v34 = vpop.permute.xlu1 %5230 }
 0x48e   : > { %v3436_v1 = vmax.f32 %v3349_v48, %v8691_v0  ;;  %v8693_v4 = vunpack.i.h.bf16 %v8692_v33  ;;  %v3437_v22 = vmax.f32 %v3350_v16, %v8694_v28  ;;  %v8695_v8 = vunpack.i.h.bf16 %v8684_v41 }
 0x48f   : > { %v3432_v45 = vmax.f32 %v3345_v13, %v8688_v46  ;;  %v5253_v57 = vunpack.i.h.bf16 %v5251_v44  ;;  %v3498_v25 = vsel %vm500_vm2, %v5227_v50, %v5228_v3  ;;  %v5252_v12 = vunpack.i.l.bf16 %v5251_v44 }
 0x490   : > { %v3595_v23 = vsel %vm509_vm3, %v8693_v4, %v5237_v54  ;;  %v3497_v38 = vsel %vm500_vm2, %v8695_v8, %v5227_v50  ;;  %v5233_v36 = vunpack.i.h.bf16 %v5231_v34  ;;  %v3596_v48 = vsel %vm509_vm3, %v5237_v54, %v5238_v27  ;;  %v5256_v0 = vpop.permute.xlu0 %5255  ;;  %v8699_v8 = vld [vmem:[#allocation42_spill] sm:$0xff] }
 0x491   : > { %v3533_v9 = vmax.f32 %v3435_v40, %v3497_v38  ;;  %v3535_v13 = vmax.f32 %v3437_v22, %v5228_v3  ;;  %v5232_v47 = vunpack.i.l.bf16 %v5231_v34  ;;  %v3530_v62 = vmax.f32 %v3432_v45, %v3495_v53 }
 0x492   : > { %v8696_v2 = vunpack.i.h.bf16 %v7856_v49  ;;  %v3219_v41 = vsel %vm500_vm2, %v5252_v12, %v5253_v57  ;;  %v3532_v17 = vmax.f32 %v3434_v42, %v5223_v58  ;;  %v3534_v4 = vmax.f32 %v3436_v1, %v3498_v25  ;;  %v5241_v49 = vpop.permute.xlu1 %5240 }
 0x493   : > { %v3631_v46 = vmax.f32 %v3533_v9, %v3595_v23  ;;  %v3258_v54 = vmax.f32 %v3160_v24, %v5253_v57  ;;  %v8697_v53 = vunpack.i.l.bf16 %v8692_v33  ;;  %v3633_v45 = vmax.f32 %v3535_v13, %v5238_v27  ;;  %v8703_v13 = vld [vmem:[#allocation13_spill] sm:$0xff] }
 0x494   : > { %v3218_v16 = vsel %vm500_vm2, %v8696_v2, %v5252_v12  ;;  %v3630_v44 = vmax.f32 %v3532_v17, %v5233_v36  ;;  %v5258_v23 = vunpack.i.h.bf16 %v5256_v0  ;;  %v3257_v58 = vmax.f32 %v3159_v10, %v3219_v41  ;;  %v5266_v24 = vpop.permute.xlu0 %5265 }
 0x495   : > { %v3256_v50 = vmax.f32 %v3158_v56, %v3218_v16  ;;  %v3593_v3 = vsel %vm509_vm3, %v8697_v53, %v5232_v47  ;;  %v5257_v42 = vunpack.i.l.bf16 %v5256_v0  ;;  %v5243_v15 = vunpack.i.h.bf16 %v5241_v49  ;;  %v8707_v53 = vld [vmem:[#allocation27_spill] sm:$0xff] }
 0x496   : > { %v3628_v40 = vmax.f32 %v3530_v62, %v3593_v3  ;;  %v5242_v35 = vunpack.i.l.bf16 %v5241_v49  ;;  %v3594_v56 = vsel %vm509_vm3, %v5232_v47, %v5233_v36  ;;  %v3651_v18 = vpack.c.bf16 %v3633_v45, %v3630_v44  ;;  %v5246_v10 = vpop.permute.xlu1 %5245  ;;  %v8704_v62 = vld [vmem:[#allocation16_spill] sm:$0xff]  ;;  %v8708_v45 = vld [vmem:[#allocation43_spill] sm:$0xff] }
 0x497   : > { %v3531_v1 = vmax.f32 %v3433_v55, %v8076_v51  ;;  %v8698_v33 = vunpack.i.h.bf16 %v7859_v20  ;;  %v3317_v28 = vsel %vm509_vm3, %v5257_v42, %v5258_v23  ;;  %v3356_v22 = vmax.f32 %v3258_v54, %v5258_v23  ;;  %v8701_v51 = vld [vmem:[#allocation21_spill] sm:$0xff] }
 0x498   : > { %v3649_v30 = vpack.c.bf16 %v3631_v46, %v3628_v40  ;;  %v8700_v19 = vunpack.i.l.bf16 %v8699_v8  ;;  %v3355_v57 = vmax.f32 %v3257_v58, %v3317_v28  ;;  %v2935_v34 = vsel %vm500_vm2, %v5242_v35, %v5243_v15  ;;  %4549 = vmatmul.mubr.msk.bf16.vlgmr.msra.gmra.mxu1 %vm1722_vm6, %v3651_v18  ;;  %v5271_v41 = vpop.permute.xlu0 %5270 }
 0x499   : > { %v3316_v27 = vsel %vm509_vm3, %v8698_v33, %v5257_v42  ;;  %v3632_v25 = vmax.f32 %v3534_v4, %v3596_v48  ;;  %v2975_v55 = vmax.f32 %v8701_v51, %v5243_v15  ;;  %v5268_v20 = vunpack.i.h.bf16 %v5266_v24  ;;  %v8711_v33 = vld [vmem:[#allocation26_spill] sm:$0xff] }
 0x49a   : > { %v2934_v26 = vsel %vm500_vm2, %v8700_v19, %v5242_v35  ;;  %v3354_v38 = vmax.f32 %v3256_v50, %v3316_v27  ;;  %v5267_v9 = vunpack.i.l.bf16 %v5266_v24  ;;  %v5248_v12 = vunpack.i.h.bf16 %v5246_v10  ;;  %v5261_v4 = vpop.permute.xlu1 %5260  ;;  %v8706_v50 = vld [vmem:[#allocation11_spill] sm:$0xff]  ;;  %v8712_v19 = vld [vmem:[#allocation28_spill] sm:$0xff]  ;;  %v8714_v51 = vld [vmem:[#allocation6_spill] sm:$0xff] }
 0x49b   : > { %v8702_v36 = vmov 0   ;;  %v2973_v47 = vmax.f32 %v8703_v13, %v2934_v26  ;;  %v2974_v46 = vmax.f32 %v8704_v62, %v2935_v34  ;;  %v5247_v2 = vunpack.i.l.bf16 %v5246_v10  ;;  %v8713_v10 = vld [vmem:[#allocation7_spill] sm:$0xff] }
 0x49c   : > { %4026 = vmatprep.mubr.bf16.mxu1 %v8702_v36  ;;  %v3629_v16 = vmax.f32 %v3531_v1, %v3594_v56  ;;  %v8705_v17 = vunpack.i.h.bf16 %v7872_v59  ;;  %v5273_v48 = vunpack.i.h.bf16 %v5271_v41  ;;  %v8129_v54 = vmax.f32 %v3354_v38, %v8706_v50  ;;  %v5276_v28 = vpop.permute.xlu0 %5275 }
 0x49d   : > { %v8132_v3 = vmax.f32 %v3355_v57, %v8707_v53  ;;  %v8135_v49 = vsel %vm509_vm3, %v5267_v9, %v5268_v20  ;;  %v8709_v40 = vunpack.i.l.bf16 %v8708_v45  ;;  %v5272_v59 = vunpack.i.l.bf16 %v5271_v41  ;;  %v8717_v53 = vld [vmem:[#allocation29_spill] sm:$0xff] }
 0x49e   : > { %v8126_v0 = vsel %vm509_vm3, %v8705_v17, %v5267_v9  ;;  %v3650_v23 = vpack.c.bf16 %v3632_v25, %v3629_v16  ;;  %v3033_v58 = vsel %vm509_vm3, %v5247_v2, %v5248_v12  ;;  %v3073_v15 = vmax.f32 %v2975_v55, %v5248_v12  ;;  %v5281_v25 = vpop.permute.xlu1 %5280 }
 0x49f   : > { %v3032_v44 = vsel %vm509_vm3, %v8709_v40, %v5247_v2  ;;  %v5263_v35 = vunpack.i.h.bf16 %v5261_v4  ;;  %v8710_v56 = vunpack.i.h.bf16 %v8699_v8  ;;  %v2937_v24 = vsel %vm500_vm2, %v5272_v59, %v5273_v48 }
 0x4a0   : > { %v3071_v42 = vmax.f32 %v2973_v47, %v3032_v44  ;;  %3945 = vmatprep.mubr.bf16.mxu0 %v3650_v23  ;;  %v5262_v1 = vunpack.i.l.bf16 %v5261_v4  ;;  %v3443_v27 = vmax.f32 %v3356_v22, %v8711_v33  ;;  %v2978_v26 = vmax.f32 %v8712_v19, %v5273_v48  ;;  %v5291_v4 = vpop.permute.xlu0 %5290  ;;  %v8723_v33 = vld [vmem:[#allocation30_spill] sm:$0xff] }
 0x4a1   : > { %v2936_v18 = vsel %vm500_vm2, %v8710_v56, %v5272_v59  ;;  %3946 = vmatmul.mubr.bf16.vlgmr.msra.gmra.mxu0 %v3649_v30  ;;  %v5278_v57 = vunpack.i.h.bf16 %v5276_v28  ;;  %v5277_v34 = vunpack.i.l.bf16 %v5276_v28  ;;  %v2977_v55 = vmax.f32 %v8714_v51, %v2937_v24  ;;  %v8727_v51 = vld [vmem:[#allocation18_spill] sm:$0xff] }
 0x4a2   : > { %v2976_v38 = vmax.f32 %v8713_v10, %v2936_v18  ;;  %v8715_v8 = vunpack.i.h.bf16 %v7868_v52  ;;  %v3541_v12 = vmax.f32 %v3443_v27, %v5263_v35  ;;  %v5283_v13 = vunpack.i.h.bf16 %v5281_v25  ;;  %v8721_v18 = vld [vmem:[#allocation19_spill] sm:$0xff] }
 0x4a3   : > { %v3072_v47 = vmax.f32 %v2974_v46, %v3033_v58  ;;  %v8716_v30 = vunpack.i.h.bf16 %v8708_v45  ;;  %v3035_v2 = vsel %vm509_vm3, %v5277_v34, %v5278_v57  ;;  %v3502_v16 = vsel %vm500_vm2, %v5262_v1, %v5263_v35  ;;  %v8718_v46 = vld [vmem:[#allocation45_spill] sm:$0xff]  ;;  %v5286_v45 = vpop.permute.xlu1 %5285  ;;  %v8720_v35 = vld [vmem:[#allocation14_spill] sm:$0xff] }
 0x4a4   : > { %v3501_v9 = vsel %vm500_vm2, %v8715_v8, %v5262_v1  ;;  %v3075_v17 = vmax.f32 %v2977_v55, %v3035_v2  ;;  %v3076_v48 = vmax.f32 %v2978_v26, %v5278_v57  ;;  %v3639_v52 = vmax.f32 %v3541_v12, %v5268_v20  ;;  %v8728_v8 = vld [vmem:[#allocation33_spill] sm:$0xff]  ;;  %v8729_v12 = vld [vmem:[#allocation31_spill] sm:$0xff] }
 0x4a5   : > { %v3539_v22 = vmax.f32 %v8129_v54, %v3501_v9  ;;  %v3034_v62 = vsel %vm509_vm3, %v8716_v30, %v5277_v34  ;;  %v5282_v50 = vunpack.i.l.bf16 %v5281_v25  ;;  %v3169_v40 = vmax.f32 %v8052_v5, %v8717_v53  ;;  %v8731_v53 = vld [vmem:[#allocation46_spill] sm:$0xff] }
 0x4a6   : > { %v3074_v41 = vmax.f32 %v2976_v38, %v3034_v62  ;;  %v8719_v44 = vunpack.i.h.bf16 %v8718_v46  ;;  %v5293_v59 = vunpack.i.h.bf16 %v5291_v4  ;;  %v5292_v58 = vunpack.i.l.bf16 %v5291_v4  ;;  %v5296_v38 = vpop.permute.xlu0 %5295 }
 0x4a7   : > { %v3540_v20 = vmax.f32 %v8132_v3, %v3502_v16  ;;  %v3168_v24 = vmax.f32 %v8064_v31, %v8721_v18  ;;  %v3166_v27 = vmax.f32 %v3076_v48, %v8723_v33  ;;  %v8176_v28 = vmax.f32 %v3169_v40, %v5282_v50  ;;  %v5301_v25 = vpop.permute.xlu1 %5300 }
 0x4a8   : > { %v3224_v54 = vsel %vm500_vm2, %v5283_v13, %v8719_v44  ;;  %v3164_v56 = vmax.f32 %v3074_v41, %v8720_v35  ;;  %v8722_v5 = vmov %v8719_v44  ;;  %v3165_v11 = vmax.f32 %v3075_v17, %v8724_v29 }
 0x4a9   : > { %v8166_v23 = vmax.f32 %v3167_v14, %v3224_v54  ;;  %v3225_v1 = vsel %vm500_vm2, %v8722_v5, %v5282_v50  ;;  %v8725_v14 = vld [vmem:[#allocation44_spill] sm:$0xff]  ;;  %v5288_v10 = vunpack.i.h.bf16 %v5286_v45  ;;  %v3223_v3 = vsel %vm500_vm2, %v5292_v58, %v5293_v59 }
 0x4aa   : > { %v8726_v19 = vunpack.i.h.bf16 %v8725_v14  ;;  %v3264_v31 = vmax.f32 %v3166_v27, %v5293_v59  ;;  %v5287_v34 = vunpack.i.l.bf16 %v5286_v45  ;;  %v3161_v55 = vmax.f32 %v3071_v42, %v8727_v51 }
 0x4ab   : > { %v3162_v9 = vmax.f32 %v3072_v47, %v8728_v8  ;;  %v3163_v13 = vmax.f32 %v3073_v15, %v8729_v12  ;;  %v3654_v30 = vpack.c.bf16 %v3639_v52, %v8034_v7  ;;  %v8730_v62 = vunpack.i.l.bf16 %v8725_v14  ;;  %v5306_v47 = vpop.permute.xlu0 %5305  ;;  %v5311_v54 = vpop.permute.xlu1 %5310  ;;  %v8740_v8 = vld [vmem:[#allocation20_spill] sm:$0xff]  ;;  %v8741_v12 = vld [vmem:[#allocation37_spill] sm:$0xff] }
 0x4ac   : > { %v3222_v26 = vsel %vm500_vm2, %v8726_v19, %v5292_v58  ;;  %v3221_v16 = vsel %vm500_vm2, %v5287_v34, %v5288_v10  ;;  %v5298_v41 = vunpack.i.h.bf16 %v5296_v38  ;;  %v5297_v17 = vunpack.i.l.bf16 %v5296_v38 }
 0x4ad   : > { %v3262_v57 = vmax.f32 %v3164_v56, %v3222_v26  ;;  %v3220_v2 = vsel %vm500_vm2, %v8730_v62, %v5287_v34  ;;  %v3260_v4 = vmax.f32 %v3162_v9, %v3221_v16  ;;  %v3261_v50 = vmax.f32 %v3163_v13, %v5288_v10  ;;  %4550 = vmatmul.mubr.msk.bf16.gmra.mxu1 %vm1722_vm6, %v3654_v30 }
 0x4ae   : > { %v3259_v48 = vmax.f32 %v3161_v55, %v3220_v2  ;;  %v3638_v42 = vmax.f32 %v3540_v20, %v8135_v49  ;;  %v8732_v15 = vunpack.i.l.bf16 %v8731_v53  ;;  %v3319_v52 = vsel %vm509_vm3, %v5297_v17, %v5298_v41  ;;  %4036 = vmatprep.mubr.bf16.mxu1 %v8702_v36  ;;  %v8739_v55 = vld [vmem:[#allocation36_spill] sm:$0xff] }
 0x4af   : > { %v3634_v40 = vmax.f32 %v3536_v37, %v8029_v21  ;;  %v3637_v44 = vmax.f32 %v3539_v22, %v8126_v0  ;;  %v3359_v45 = vmax.f32 %v3261_v50, %v5298_v41  ;;  %v3358_v49 = vmax.f32 %v3260_v4, %v3319_v52  ;;  %v5316_v21 = vpop.permute.xlu0 %5315  ;;  %v5321_v14 = vpop.permute.xlu1 %5320 }
 0x4b0   : > { %v3318_v7 = vsel %vm509_vm3, %v8732_v15, %v5297_v17  ;;  %v3653_v58 = vpack.c.bf16 %v3638_v42, %v8062_v43  ;;  %v5303_v56 = vunpack.i.h.bf16 %v5301_v25  ;;  %v5302_v20 = vunpack.i.l.bf16 %v5301_v25  ;;  %v8734_v43 = vld [vmem:[#allocation35_spill] sm:$0xff]  ;;  %v8738_v25 = vld [vmem:[#allocation9_spill] sm:$0xff] }
 0x4b1   : > { %v3357_v59 = vmax.f32 %v3259_v48, %v3318_v7  ;;  %v3652_v35 = vpack.c.bf16 %v3637_v44, %v3634_v40  ;;  %v5308_v18 = vunpack.i.h.bf16 %v5306_v47  ;;  %v8204_v5 = vmax.f32 %v3168_v24, %v3225_v1  ;;  %v8735_v24 = vld [vmem:[#allocation8_spill] sm:$0xff] }
 0x4b2   : > { %v3263_v33 = vmax.f32 %v3165_v11, %v3223_v3  ;;  %3955 = vmatprep.mubr.bf16.mxu0 %v3653_v58  ;;  %v5307_v32 = vunpack.i.l.bf16 %v5306_v47  ;;  %v5313_v6 = vunpack.i.h.bf16 %v5311_v54  ;;  %v8733_v37 = vunpack.i.h.bf16 %v8731_v53 }
 0x4b3   : > { %3956 = vmatmul.mubr.bf16.gmra.mxu0 %v3652_v35  ;;  %v3321_v22 = vsel %vm509_vm3, %v5302_v20, %v5303_v56  ;;  %v3362_v27 = vmax.f32 %v3264_v31, %v5303_v56  ;;  %v3446_v29 = vmax.f32 %v3359_v45, %v8734_v43  ;;  %v3445_v1 = vmax.f32 %v3358_v49, %v8735_v24  ;;  %v5331_v62 = vpop.permute.xlu0 %5330  ;;  %v5326_v48 = vpop.permute.xlu1 %5325 }
 0x4b4   : > { %v3320_v0 = vsel %vm509_vm3, %v8733_v37, %v5302_v20  ;;  %v3361_v26 = vmax.f32 %v3263_v33, %v3321_v22  ;;  %v8736_v11 = vunpack.i.l.bf16 %v8718_v46  ;;  %v8737_v38 = vunpack.i.h.bf16 %v7876_v60 }
 0x4b5   : > { %v3360_v19 = vmax.f32 %v3262_v57, %v3320_v0  ;;  %v5312_v34 = vunpack.i.l.bf16 %v5311_v54  ;;  %v3444_v51 = vmax.f32 %v3357_v59, %v8738_v25  ;;  %v3449_v31 = vmax.f32 %v3362_v27, %v8739_v55 }
 0x4b6   : > { %v3505_v10 = vsel %vm500_vm2, %v8736_v11, %v5308_v18  ;;  %v3504_v3 = vsel %vm500_vm2, %v8737_v38, %v5307_v32  ;;  %v3448_v57 = vmax.f32 %v3361_v26, %v8741_v12  ;;  %v8742_v13 = vmov %v8737_v38 }
 0x4b7   : > { %v3447_v9 = vmax.f32 %v3360_v19, %v8740_v8  ;;  %v3503_v30 = vsel %vm500_vm2, %v5313_v6, %v8742_v13  ;;  %v5318_v46 = vunpack.i.h.bf16 %v5316_v21  ;;  %v3544_v2 = vmax.f32 %v3446_v29, %v5307_v32  ;;  %v5336_v59 = vpop.permute.xlu0 %5335  ;;  %v8747_v29 = vld [vmem:[#allocation39_spill] sm:$0xff] }
 0x4b8   : > { %v3506_v16 = vsel %vm500_vm2, %v5308_v18, %v5312_v34  ;;  %v3542_v41 = vmax.f32 %v3444_v51, %v3503_v30  ;;  %v5317_v17 = vunpack.i.l.bf16 %v5316_v21  ;;  %v3543_v4 = vmax.f32 %v3445_v1, %v3504_v3  ;;  %v3490_v18 = vpop.permute.xlu1 %3489 }
 0x4b9   : > { %v3545_v50 = vmax.f32 %v3447_v9, %v3505_v10  ;;  %v3547_v42 = vmax.f32 %v3449_v31, %v5312_v34  ;;  %v5323_v47 = vunpack.i.h.bf16 %v5321_v14  ;;  %v3546_v53 = vmax.f32 %v3448_v57, %v3506_v16  ;;  %v8749_v10 = vld [vmem:[#allocation40_spill] sm:$0xff] }
 0x4ba   : > { %v8743_v15 = vunpack.i.h.bf16 %v7874_v63  ;;  %v3603_v60 = vsel %vm509_vm3, %v5127_v39, %v5318_v46  ;;  %v5322_v52 = vunpack.i.l.bf16 %v5321_v14  ;;  %v5333_v40 = vunpack.i.h.bf16 %v5331_v62  ;;  %v4171_v16 = vld [vmem:[%s8464_s8 + $0x60] sm:$0xff] }
 0x4bb   : > { %v5332_v44 = vunpack.i.l.bf16 %v5331_v62  ;;  %v5328_v54 = vunpack.i.h.bf16 %v5326_v48  ;;  %v5327_v45 = vunpack.i.l.bf16 %v5326_v48  ;;  %v3642_v49 = vmax.f32 %v3544_v2, %v5317_v17  ;;  %v4173_v62 = vld [vmem:[%s8464_s8 + $0x70] sm:$0xff]  ;;  %v4172_v2 = vld [vmem:[%s8464_s8 + $0x68] sm:$0xff] }
 0x4bc   : > { %v3602_v7 = vsel %vm509_vm3, %v8743_v15, %v5317_v17  ;;  %v8744_v58 = vmov %v8743_v15  ;;  %v3604_v56 = vsel %vm509_vm3, %v5318_v46, %v5322_v52  ;;  %v3645_v20 = vmax.f32 %v3547_v42, %v5322_v52  ;;  %v4169_v17 = vld [vmem:[%s8464_s8 + $0x50] sm:$0xff]  ;;  %v4168_v48 = vld [vmem:[%s8464_s8 + $0x48] sm:$0xff]  ;;  %v4162_v15 = vld [vmem:[%s8464_s8 + $0x18] sm:$0xff] }
 0x4bd   : > { %v3601_v35 = vsel %vm509_vm3, %v5323_v47, %v8744_v58  ;;  %v8745_v33 = vunpack.i.h.bf16 %v7902_v61  ;;  %v3365_v21 = vmax.f32 %v8176_v28, %v5327_v45  ;;  %v5338_v37 = vunpack.i.h.bf16 %v5336_v59  ;;  %v8748_v61 = vld [vmem:[#allocation15_spill] sm:$0xff]  ;;  %v3588_v28 = vpop.permute.xlu1 %3587  ;;  %v4164_v47 = vld [vmem:[%s8464_s8 + $0x28] sm:$0xff]  ;;  %v4159_v52 = vld [vmem:[%s8464_s8] sm:$0xff] }
 0x4be   : > { %v3657_v0 = vpack.c.bf16 %v3645_v20, %v3642_v49  ;;  %v5337_v22 = vunpack.i.l.bf16 %v5336_v59  ;;  %v3508_v43 = vsel %vm500_vm2, %v5332_v44, %v5333_v40  ;;  %v3641_v19 = vmax.f32 %v3543_v4, %v3602_v7  ;;  %v4167_v4 = vld [vmem:[%s8464_s8 + $0x40] sm:$0xff]  ;;  %v4165_v42 = vld [vmem:[%s8464_s8 + $0x30] sm:$0xff]  ;;  %v4178_v49 = vld [vmem:[%s8464_s8 + $0x98] sm:$0xff] }
 0x4bf   : > { %v3322_v32 = vsel %vm509_vm3, %v5328_v54, %v8745_v33  ;;  %v8746_v39 = vmov %v8745_v33  ;;  %v3452_v14 = vmax.f32 %v3365_v21, %v8747_v29  ;;  %v3644_v26 = vmax.f32 %v3546_v53, %v3604_v56  ;;  %v4163_v53 = vld [vmem:[%s8464_s8 + $0x20] sm:$0xff]  ;;  %v4161_v7 = vld [vmem:[%s8464_s8 + $0x10] sm:$0xff] }
 0x4c0   : > { %v3323_v6 = vsel %vm509_vm3, %v8746_v39, %v5327_v45  ;;  %v3363_v27 = vmax.f32 %v8166_v23, %v3322_v32  ;;  %4551 = vmatmul.mubr.msk.bf16.gmra.mxu1 %vm1722_vm6, %v3657_v0  ;;  %v3640_v1 = vmax.f32 %v3542_v41, %v3601_v35  ;;  %v3643_v11 = vmax.f32 %v3545_v50, %v3603_v60  ;;  %v4170_v41 = vld [vmem:[%s8464_s8 + $0x58] sm:$0xff]  ;;  %v4160_v60 = vld [vmem:[%s8464_s8 + $0x8] sm:$0xff]  ;;  %v4181_v54 = vld [vmem:[%s8464_s8 + $0xb0] sm:$0xff] }
 0x4c1   : > { %v3364_v63 = vmax.f32 %v8204_v5, %v3323_v6  ;;  %v3550_v3 = vmax.f32 %v3452_v14, %v5333_v40  ;;  %v3507_v5 = vsel %vm500_vm2, %v3490_v18, %v5332_v44  ;;  %v3656_v34 = vpack.c.bf16 %v3644_v26, %v3641_v19  ;;  %4046 = vmatprep.mubr.bf16.mxu1 %v8702_v36  ;;  %v4174_v36 = vld [vmem:[%s8464_s8 + $0x78] sm:$0xff]  ;;  %v4183_v40 = vld [vmem:[%s8464_s8 + $0xc0] sm:$0xff]  ;;  %v4180_v45 = vld [vmem:[%s8464_s8 + $0xa8] sm:$0xff] }
 0x4c2   : > { %v3450_v24 = vmax.f32 %v3363_v27, %v8748_v61  ;;  %v3605_v23 = vsel %vm509_vm3, %v3588_v28, %v5337_v22  ;;  %v3655_v51 = vpack.c.bf16 %v3643_v11, %v3640_v1  ;;  %v3606_v31 = vsel %vm509_vm3, %v5337_v22, %v5338_v37  ;;  %v4166_v50 = vld [vmem:[%s8464_s8 + $0x38] sm:$0xff]  ;;  %v4179_v59 = vld [vmem:[%s8464_s8 + $0xa0] sm:$0xff]  ;;  %v4177_v58 = vld [vmem:[%s8464_s8 + $0x90] sm:$0xff] }
 0x4c3   : > { %v3451_v38 = vmax.f32 %v3364_v63, %v8749_v10  ;;  %v3648_v8 = vmax.f32 %v3550_v3, %v5338_v37  ;;  %3965 = vmatprep.mubr.bf16.mxu0 %v3656_v34  ;;  %v5673_v46 = vmov 0.0   ;;  %v4182_v44 = vld [vmem:[%s8464_s8 + $0xb8] sm:$0xff] }
 0x4c4   : > { %v3548_v25 = vmax.f32 %v3450_v24, %v3507_v5  ;;  %3966 = vmatmul.mubr.bf16.gmra.mxu0 %v3655_v51  ;;  %4195 = vmatprep.subr.mxu0 %v5673_v46 }
 0x4c5   : > { %v3549_v55 = vmax.f32 %v3451_v38, %v3508_v43  ;;  %v3660_v57 = vpack.c.bf16 %v3648_v8, %v3648_v8  ;;  %4196 = vmatpush1.msra.mxu0 %v4174_v36 }
 0x4c6   : > { %v3646_v9 = vmax.f32 %v3548_v25, %v3605_v23  ;;  %4197 = vmatprep.subr.mxu0 %v5673_v46  ;;  %v4068_v25 = vld [vmem:[%s8462_s6 + $0x68] sm:$0xff] }
 0x4c7   : > { %v3647_v12 = vmax.f32 %v3549_v55, %v3606_v31  ;;  %4198 = vmatpush1.msra.mxu0 %v4173_v62  ;;  %v4067_v31 = vld [vmem:[%s8462_s6 + $0x60] sm:$0xff] }
 0x4c8   : > { %v3658_v30 = vpack.c.bf16 %v3646_v9, %v3646_v9  ;;  %4552 = vmatmul.mubr.msk.bf16.gmra.mxu1 %vm1722_vm6, %v3660_v57  ;;  %4199 = vmatprep.subr.mxu0 %v5673_v46 }
 0x4c9   : > { %v3659_v13 = vpack.c.bf16 %v3647_v12, %v3647_v12  ;;  %4152 = vmatprep.mubr.f32.mxu1 %v5673_v46  ;;  %4200 = vmatpush1.msra.mxu0 %v4172_v2  ;;  %v4066_v12 = vld [vmem:[%s8462_s6 + $0x58] sm:$0xff]  ;;  %v4064_v2 = vld [vmem:[%s8462_s6 + $0x48] sm:$0xff] }
 0x4ca   : > { %4201 = vmatprep.subr.mxu0 %v5673_v46 }
 0x4cb   : > { %3975 = vmatprep.mubr.bf16.mxu0 %v3659_v13  ;;  %4202 = vmatpush1.msra.mxu0 %v4171_v16 }
 0x4cc   : > { %3976 = vmatmul.mubr.bf16.gmra.mxu0 %v3658_v30  ;;  %4203 = vmatprep.subr.mxu0 %v5673_v46  ;;  %v4065_v30 = vld [vmem:[%s8462_s6 + $0x50] sm:$0xff] }
 0x4cd   : > { %4204 = vmatpush1.msra.mxu0 %v4170_v41 }
 0x4ce   : > { %4205 = vmatprep.subr.mxu0 %v5673_v46 }
 0x4cf   : > { %4206 = vmatpush1.msra.mxu0 %v4169_v17 }
 0x4d0   : > { %4207 = vmatprep.subr.mxu0 %v5673_v46 }
 0x4d1   : > { %4208 = vmatpush1.msra.mxu0 %v4168_v48  ;;  %v4063_v48 = vld [vmem:[%s8462_s6 + $0x40] sm:$0xff] }
 0x4d2   : > { %4209 = vmatprep.subr.mxu0 %v5673_v46 }
 0x4d3   : > { %4210 = vmatpush1.msra.mxu0 %v4167_v4 }
 0x4d4   : > { %4211 = vmatprep.subr.mxu0 %v5673_v46 }
 0x4d5   : > { %4212 = vmatpush1.msra.mxu0 %v4166_v50 }
 0x4d6   : > { %4213 = vmatprep.subr.mxu0 %v5673_v46 }
 0x4d7   : > { %4214 = vmatpush1.msra.mxu0 %v4165_v42  ;;  %v4062_v42 = vld [vmem:[%s8462_s6 + $0x38] sm:$0xff] }
 0x4d8   : > { %4215 = vmatprep.subr.mxu0 %v5673_v46 }
 0x4d9   : > { %4216 = vmatpush1.msra.mxu0 %v4164_v47 }
 0x4da   : > { %4217 = vmatprep.subr.mxu0 %v5673_v46 }
 0x4db   : > { %4218 = vmatpush1.msra.mxu0 %v4163_v53 }
 0x4dc   : > { %4219 = vmatprep.subr.mxu0 %v5673_v46 }
 0x4dd   : > { %4220 = vmatpush1.msra.mxu0 %v4162_v15  ;;  %v4061_v15 = vld [vmem:[%s8462_s6 + $0x30] sm:$0xff] }
 0x4de   : > { %4221 = vmatprep.subr.mxu0 %v5673_v46 }
 0x4df   : > { %4222 = vmatpush1.msra.mxu0 %v4161_v7 }
 0x4e0   : > { %4223 = vmatprep.subr.mxu0 %v5673_v46 }
 0x4e1   : > { %4224 = vmatpush1.msra.mxu0 %v4160_v60 }
 0x4e2   : > { %4225 = vmatprep.subr.mxu0 %v5673_v46 }
 0x4e3   : > { %4226 = vmatpush1.msra.mxu0 %v4159_v52  ;;  %v4060_v52 = vld [vmem:[%s8462_s6 + $0x28] sm:$0xff] }
 0x4e4   : > { %4241 = vmatprep.subr.mxu0 %v5673_v46 }
 0x4e5   : > { %4242 = vmatpush2.msra.mxu0 %v4183_v40 }
 0x4e6   : > { %4243 = vmatprep.subr.mxu0 %v5673_v46 }
 0x4e7   : > { %4244 = vmatpush2.msra.mxu0 %v4182_v44 }
 0x4e8   : > { %4245 = vmatprep.subr.mxu0 %v5673_v46 }
 0x4e9   : > { %4246 = vmatpush2.msra.mxu0 %v4181_v54  ;;  %v4059_v54 = vld [vmem:[%s8462_s6 + $0x20] sm:$0xff] }
 0x4ea   : > { %4247 = vmatprep.subr.mxu0 %v5673_v46 }
 0x4eb   : > { %4248 = vmatpush2.msra.mxu0 %v4180_v45 }
 0x4ec   : > { %4249 = vmatprep.subr.mxu0 %v5673_v46 }
 0x4ed   : > { %4250 = vmatpush2.msra.mxu0 %v4179_v59 }
 0x4ee   : > { %4251 = vmatprep.subr.mxu0 %v5673_v46 }
 0x4ef   : > { %4252 = vmatpush2.msra.mxu0 %v4178_v49  ;;  %v4058_v49 = vld [vmem:[%s8462_s6 + $0x18] sm:$0xff] }
 0x4f0   : > { %4253 = vmatprep.subr.mxu0 %v5673_v46 }
 0x4f1   : > { %4254 = vmatpush2.msra.mxu0 %v4177_v58 }
 0x4f2   : > { %4255 = vmatprep.subr.mxu0 %v5673_v46 }
 0x558   : > { %v8349_v35 = vpop.f32.mrf.mxu1 }
 0x55a   : > { %v8353_v20 = vpop.f32.mrf.mxu1 }
 0x55c   : > { %v4022_v33 = vpop.f32.mrf.mxu1 }
 0x55e   : > { %v4024_v39 = vpop.f32.mrf.mxu1 }
 0x561   : > { %v8351_v56 = vpop.f32.mrf.mxu0 }
 0x563   : > { %v8355_v18 = vpop.f32.mrf.mxu0 }
 0x565   : > { %v3951_v32 = vpop.f32.mrf.mxu0 }
 0x566   : > { %v4023_v59 = vadd.f32 %v4022_v33, %v3951_v32  ;;  %v4056_v33 = vld [vmem:[%s8462_s6 + $0x8] sm:$0xff] }
 0x567   : > { %v3953_v21 = vpop.f32.mrf.mxu0 }
 0x568   : > { %v4025_v44 = vadd.f32 %v4024_v39, %v3953_v21  ;;  %v4057_v39 = vld [vmem:[%s8462_s6 + $0x10] sm:$0xff] }
 0x56d   : > { %v4028_v6 = vpop.f32.mrf.mxu1 }
 0x56f   : > { %v4030_v0 = vpop.f32.mrf.mxu1 }
 0x571   : > { %v4032_v22 = vpop.f32.mrf.mxu1 }
 0x573   : > { %v3957_v37 = vpop.f32.mrf.mxu0  ;;  %v4034_v43 = vpop.f32.mrf.mxu1 }
 0x574   : > { %v4029_v60 = vadd.f32 %v4028_v6, %v3957_v37  ;;  %v4021_v6 = vadd.f32 %v8353_v20, %v8355_v18  ;;  %v4019_v37 = vadd.f32 %v8349_v35, %v8351_v56  ;;  %v4072_v20 = vmul.f32 %v4058_v49, %v4025_v44  ;;  %v4083_v35 = vld [vmem:[%s8463_s7] sm:$0x3]  ;;  %v4176_v56 = vld [vmem:[%s8464_s8 + $0x88] sm:$0xff] }
 0x575   : > { %v3959_v63 = vpop.f32.mrf.mxu0  ;;  %v4071_v18 = vmul.f32 %v4057_v39, %v4023_v59  ;;  %4256 = vmatpush2.msra.mxu0 %v4176_v56 }
 0x576   : > { %v4031_v53 = vadd.f32 %v4030_v0, %v3959_v63  ;;  %v4073_v32 = vmul.f32 %v4059_v54, %v4029_v60  ;;  %v4055_v0 = vld [vmem:[%s8462_s6] sm:$0xff]  ;;  %v4070_v63 = vmul.f32 %v4056_v33, %v4021_v6  ;;  %4257 = vmatprep.subr.mxu0 %v5673_v46 }
 0x577   : > { %v3961_v27 = vpop.f32.mrf.mxu0 }
 0x578   : > { %v4033_v50 = vadd.f32 %v4032_v22, %v3961_v27  ;;  %v4074_v21 = vmul.f32 %v4060_v52, %v4031_v53  ;;  %v4069_v22 = vmul.f32 %v4055_v0, %v4019_v37  ;;  %v4175_v27 = vld [vmem:[%s8464_s8 + $0x80] sm:$0xff] }
 0x579   : > { %v3963_v14 = vpop.f32.mrf.mxu0  ;;  %4258 = vmatpush2.msra.mxu0 %v4175_v27 }
 0x57a   : > { %v4035_v17 = vadd.f32 %v4034_v43, %v3963_v14  ;;  %v4075_v58 = vmul.f32 %v4061_v15, %v4033_v50  ;;  %v4554_v14 = vld [vmem:[%s8465_s9] ss:$0 sm:$0xff] }
 0x57c   : > { %v4076_v45 = vmul.f32 %v4062_v42, %v4035_v17 }
 0x580   : > { %v4038_v29 = vpop.f32.mrf.mxu1 }
 0x582   : > { %v4040_v19 = vpop.f32.mrf.mxu1 }
 0x584   : > { %v3967_v26 = vpop.f32.mrf.mxu0  ;;  %v4042_v61 = vpop.f32.mrf.mxu1 }
 0x585   : > { %v4039_v62 = vadd.f32 %v4038_v29, %v3967_v26 }
 0x586   : > { %v3969_v24 = vpop.f32.mrf.mxu0  ;;  %v4044_v1 = vpop.f32.mrf.mxu1 }
 0x587   : > { %v4041_v13 = vadd.f32 %v4040_v19, %v3969_v24  ;;  %v4077_v40 = vmul.f32 %v4063_v48, %v4039_v62 }
 0x588   : > { %v3971_v11 = vpop.f32.mrf.mxu0  ;;  %v4048_v28 = vpop.f32.mrf.mxu1 }
 0x589   : > { %v4043_v9 = vadd.f32 %v4042_v61, %v3971_v11  ;;  %v4078_v7 = vmul.f32 %v4064_v2, %v4041_v13 }
 0x58a   : > { %v3973_v10 = vpop.f32.mrf.mxu0  ;;  %v4050_v38 = vpop.f32.mrf.mxu1 }
 0x58b   : > { %v4045_v55 = vadd.f32 %v4044_v1, %v3973_v10  ;;  %v4079_v47 = vmul.f32 %v4065_v30, %v4043_v9 }
 0x58c   : > { %v3977_v3 = vpop.f32.mrf.mxu0  ;;  %v4052_v5 = vpop.f32.mrf.mxu1 }
 0x58d   : > { %v4049_v34 = vadd.f32 %v4048_v28, %v3977_v3  ;;  %v4080_v4 = vmul.f32 %v4066_v12, %v4045_v55 }
 0x58e   : > { %v3979_v23 = vpop.f32.mrf.mxu0  ;;  %v4053_v51 = vpop.f32.mrf.mxu1 }
 0x58f   : > { %v4051_v8 = vadd.f32 %v4050_v38, %v3979_v23  ;;  %v4081_v16 = vmul.f32 %v4067_v31, %v4049_v34 }
 0x590   : > { %v3981_v57 = vpop.f32.mrf.mxu0 }
 0x591   : > { %v4082_v36 = vmul.f32 %v4068_v25, %v4051_v8 }
 0x592   : > { %v3982_v41 = vpop.f32.mrf.mxu0 }
 0x593   : > { %4106 = vmatprep.subr.mxu1 %v4082_v36 }
 0x594   : > { %4107 = vmatpush1.msra.mxu1 %v4081_v16 }
 0x595   : > { %4108 = vmatprep.subr.mxu1 %v4080_v4 }
 0x596   : > { %4109 = vmatpush1.msra.mxu1 %v4079_v47 }
 0x597   : > { %4110 = vmatprep.subr.mxu1 %v4078_v7 }
 0x598   : > { %4111 = vmatpush1.msra.mxu1 %v4077_v40 }
 0x599   : > { %4112 = vmatprep.subr.mxu1 %v4076_v45 }
 0x59a   : > { %4113 = vmatpush1.msra.mxu1 %v4075_v58 }
 0x59b   : > { %4114 = vmatprep.subr.mxu1 %v4074_v21 }
 0x59c   : > { %4115 = vmatpush1.msra.mxu1 %v4073_v32 }
 0x59d   : > { %4116 = vmatprep.subr.mxu1 %v4072_v20 }
 0x59e   : > { %4117 = vmatpush1.msra.mxu1 %v4071_v18 }
 0x59f   : > { %4118 = vmatprep.subr.mxu1 %v4070_v63 }
 0x5a0   : > { %4119 = vmatpush1.msra.mxu1 %v4069_v22 }
 0x5a1   : > { %4553 = vmatmul.mubr.msk.f32.vlgmr.msra.gmra.mxu1 %vm4084_vm7, %v4083_v35 }
 0x661   : > { %v4154_v43 = vpop.f32.mrf.mxu1 }
 0x663   : > { %v4156_v29 = vpop.f32.mrf.mxu1 }
 0x664   : > { %4555 = vmatprep.mubr.msk.f32.mxu0 %vm4191_vm8, %v4156_v29 }
 0x665   : > { %4260 = vmatmul.mubr.f32.vlgmr.msra.gmra.mxu0 %v4154_v43 }
 0x725   : > { %v4261_v46 = vpop.f32.mrf.mxu0 }
 0x726   : > { %v4262_v19 = vadd.f32 %v4554_v14, %v4261_v46 }
 0x727   : > { %v4263_v26 = vpop.f32.mrf.mxu0 }
 0x728   : > { %4266 = vst.msk [vmem:[%s353_s28] sm:$0x3] %vm4265_vm9, %v4262_v19 }
 0x729   : > { %5619 = shalt.err (!%p5616_p3)
}
 0x72a   : > { %s5620_s27 = scalar_lea.hbm %s8421_s12, 32  ;;  %s5624_s28 = scalar_lea.hbm %s8466_s10, 64 }
 0x72b   : > { %p5621_p4 = scmp.ne.s32.totalorder %s8421_s12, %s5620_s27  ;;  %p5625_p9 = scmp.lt.s32.totalorder %s8421_s12, %s8466_s10 }
 0x72c   : > { %p5626_p10 = scmp.lt.s32.totalorder %s5624_s28, %s5620_s27 }
 0x72d   : > { %p5622_p7 = pnand %p5621_p4, %p5768_p5 }
 0x72e   : > { %p5627_p11 = por %p5626_p10, %p5625_p9 }
 0x72f   : > { %p5623_p8 = pneg %p5622_p7 }
 0x731   : > { %p5628_p12 = pnand %p5627_p11, %p5623_p8 }
 0x733   : > { %5631 = shalt.err (!%p5628_p12)
}
 0x734   : > { %4664 = dma.vmem_to_hbm [thread:$0]  (%p5768_p5), %s4282_s11, 32, %s8421_s12, %s4268_s25  }
 0x735 PF: > { %p4670_p13 = scmp.ge.s32.totalorder %s5666_s16, 2  ;;  %s4293_s0 = sand.u32 1, %s5654_s13  }
 0x736   : > { %s4294_s17 = scalar_lea.sflag [#allocation3], %s4293_s0 }
 0x737   : > { %p4667_p0 = pnand %p4670_p13, %p5772_p6 }
 0x739   : > { %p4668_p1 = pneg %p4667_p0 }
 0x73b   : > { %5649 = dma.done.wait (%p4668_p1), %s4294_s17, 32  }
 0x73c   : > { %5651 = vsyncadd (%p4668_p1), %s4294_s17, 4294967264  ;;  %p20_p2 = scmp.ge.s32.totalorder %s5755_s19, 4   ;;  %s8750_s13 = smov %s5658_s14 }
 0x73d   : > { %s8751_s14 = smov %s5662_s15  ;;  %s8752_s15 = smov %s5766_s22 }
 0x73e   : > { %s8753_s16 = smov %s5755_s19  ;;  %22 = sbr.rel (!%p20_p2) target bundleno = 5 (0x5), region = 95 }
 0x743   :  { %4299 = vsyncpa [#allocation3], 1 }
 0x744   :  { %4301 = vsyncpa [#allocation3 + $0x1], 1 }

</bundles_post_ra>
